<compile_context>
chip_gen: v7x
topology: tpu7x:2x2x1
jax: 0.10.0
libtpu: 0.0.40
codegen_flags: <defaults>
</compile_context>

<pallas_src>
import functools

import jax
import jax.numpy as jnp
from jax.experimental import pallas as pl
from jax.experimental.pallas import tpu as pltpu

# ----------------------------- model config (small, lane-dense) -------------------
VOCAB = 64
MAX_POS = 16
HIDDEN = 128          # lane-dense (multiple of 128)
HEADS = 4
HEAD_DIM = HIDDEN // HEADS   # 32 (matches MiniLM head dim)
FFN = 256
LAYERS = 2
SEQ = 8
BATCH = 2             # number of text chunks produced by the chunker
LN_EPS = 1e-12


def _layernorm(x, g, b, eps=LN_EPS):
    mu = jnp.mean(x, axis=-1, keepdims=True)
    var = jnp.mean((x - mu) ** 2, axis=-1, keepdims=True)
    return (x - mu) * jax.lax.rsqrt(var + eps) * g + b


# ----------------------------- fused Pallas kernel --------------------------------
def fused_encoder_kernel(x_ref, abias_ref, mcol_ref,
                         elng_ref, elnb_ref,
                         wqkv_ref, bqkv_ref, wo_ref, bo_ref,
                         ln1g_ref, ln1b_ref,
                         w1_ref, b1_ref, w2_ref, b2_ref,
                         ln2g_ref, ln2b_ref,
                         o_ref, *, num_layers, num_heads):
    S, H = x_ref.shape                     # one chunk: S tokens, H lane-dense
    hd = H // num_heads

    # embedding LayerNorm (f32)
    x = _layernorm(x_ref[...], elng_ref[...], elnb_ref[...])            # (S, H)
    bias = abias_ref[...]                                                # (1, 1, S)

    # transformer layers: static Python loop, all weights resident in VMEM
    for l in range(num_layers):
        xb = x.astype(jnp.bfloat16)                                      # one cast/layer

        # fused QKV: single lane-dense (S,H)x(H,3H) matmul; 1/sqrt(hd) folded into Wq
        qkv = (jnp.dot(xb, wqkv_ref[l], preferred_element_type=jnp.float32)
               + bqkv_ref[l]).astype(jnp.bfloat16)                       # (S, 3H)
        q = qkv[:, 0 * H:1 * H].reshape(S, num_heads, hd).transpose(1, 0, 2)
        k = qkv[:, 1 * H:2 * H].reshape(S, num_heads, hd).transpose(1, 0, 2)
        v = qkv[:, 2 * H:3 * H].reshape(S, num_heads, hd).transpose(1, 0, 2)

        # heads-batched self-attention for this chunk
        s = jnp.einsum("hqd,hkd->hqk", q, k,
                       preferred_element_type=jnp.float32)               # (HEADS, S, S)
        s = s + bias                                                     # key-padding bias
        s = s - jnp.max(s, axis=-1, keepdims=True)
        p = jnp.exp(s)
        p = p * pl.reciprocal(jnp.sum(p, axis=-1, keepdims=True), approx=True)
        ctx = jnp.einsum("hqk,hkd->hqd", p.astype(jnp.bfloat16), v,
                         preferred_element_type=jnp.float32)             # (HEADS, S, hd)
        ctx = ctx.transpose(1, 0, 2).reshape(S, H).astype(jnp.bfloat16)  # (S, H)

        # single lane-dense output projection
        attn = jnp.dot(ctx, wo_ref[l], preferred_element_type=jnp.float32) + bo_ref[l]
        h1 = _layernorm(x + attn, ln1g_ref[l], ln1b_ref[l])

        # feed-forward (bf16 matmuls, f32 accumulation / activations)
        ff = jnp.dot(h1.astype(jnp.bfloat16), w1_ref[l],
                     preferred_element_type=jnp.float32) + b1_ref[l]     # (S, F)
        # TODO(synk): HF MiniLM uses the erf-based gelu; tanh approximation kept here.
        ff = jax.nn.gelu(ff, approximate=True)
        ff = jnp.dot(ff.astype(jnp.bfloat16), w2_ref[l],
                     preferred_element_type=jnp.float32) + b2_ref[l]     # (S, H)
        x = _layernorm(h1 + ff, ln2g_ref[l], ln2b_ref[l])

    # masked mean pooling (SentenceTransformer Pooling) for this chunk
    mcol = mcol_ref[...]                                                 # (S, 1)
    ssum = jnp.sum(x * mcol, axis=0, keepdims=True)                      # (1, H)
    denom = jnp.maximum(jnp.sum(mcol, axis=0, keepdims=True), 1e-9)      # (1, 1)
    o_ref[0] = ssum / denom                                              # exact divide


# ----------------------------- wrapper ---------------------------------------------
def pallas_fused_encoder(x, attn_bias, mask_col, params):
    T, H = x.shape
    B = attn_bias.shape[0]
    S = T // B

    weights = (params["emb_lng"], params["emb_lnb"],
               params["wqkv"], params["bqkv"], params["wo"], params["bo"],
               params["ln1g"], params["ln1b"],
               params["w1"], params["b1"], params["w2"], params["b2"],
               params["ln2g"], params["ln2b"])

    def const_spec(shape):
        return pl.BlockSpec(shape, lambda b, _nd=len(shape): (0,) * _nd)

    in_specs = ([pl.BlockSpec((S, H), lambda b: (b, 0)),        # tokens of chunk b
                 pl.BlockSpec((1, 1, S), lambda b: (b, 0, 0)),  # key-padding bias
                 pl.BlockSpec((S, 1), lambda b: (b, 0))]        # pooling mask column
                + [const_spec(w.shape) for w in weights])       # resident weights

    # rough per-call cost (matmul flops, softmax/gelu transcendentals, HBM traffic)
    flops = 2 * B * LAYERS * (S * H * 3 * H + 2 * HEADS * S * S * HEAD_DIM
                              + S * H * H + 2 * S * H * FFN)
    transcendentals = B * LAYERS * (HEADS * S * S + S * FFN)
    bytes_accessed = (sum(int(w.size) * w.dtype.itemsize for w in weights)
                      + int(x.size) * 4 + B * H * 4)

    out = pl.pallas_call(
        functools.partial(fused_encoder_kernel, num_layers=LAYERS, num_heads=HEADS),
        grid=(B,),
        out_shape=jax.ShapeDtypeStruct((B, 1, H), jnp.float32),
        in_specs=in_specs,
        out_specs=pl.BlockSpec((1, 1, H), lambda b: (b, 0, 0)),
        compiler_params=pltpu.CompilerParams(dimension_semantics=("parallel",)),
        cost_estimate=pl.CostEstimate(flops=flops,
                                      transcendentals=transcendentals,
                                      bytes_accessed=bytes_accessed),
    )(x, attn_bias, mask_col, *weights)
    return out.reshape(B, H)


# ----------------------------- parameter init --------------------------------------
def init_params(key):
    def dense(k, fan_in, fan_out):
        std = (2.0 / (fan_in + fan_out)) ** 0.5
        return std * jax.random.normal(k, (fan_in, fan_out), jnp.float32)

    keys = iter(jax.random.split(key, 3 + LAYERS * 6))
    scale = 1.0 / float(HEAD_DIM) ** 0.5
    params = {
        "tok_emb": 0.02 * jax.random.normal(next(keys), (VOCAB, HIDDEN), jnp.float32),
        "pos_emb": 0.02 * jax.random.normal(next(keys), (MAX_POS, HIDDEN), jnp.float32),
        "type_emb": 0.02 * jax.random.normal(next(keys), (1, HIDDEN), jnp.float32),
        "emb_lng": jnp.ones((1, HIDDEN), jnp.float32),
        "emb_lnb": jnp.zeros((1, HIDDEN), jnp.float32),
    }
    wqkv, wo, w1, w2 = [], [], [], []
    for _ in range(LAYERS):
        wq = dense(next(keys), HIDDEN, HIDDEN) * scale   # fold 1/sqrt(head_dim) into Wq
        wk = dense(next(keys), HIDDEN, HIDDEN)
        wv = dense(next(keys), HIDDEN, HIDDEN)
        wqkv.append(jnp.concatenate([wq, wk, wv], axis=1))    # (H, 3H) lane-dense
        wo.append(dense(next(keys), HIDDEN, HIDDEN))          # (H, H) lane-dense
        w1.append(dense(next(keys), HIDDEN, FFN))
        w2.append(dense(next(keys), FFN, HIDDEN))
    params.update(
        # matmul weights stacked over layers, stored bf16 for the MXU, lane-dense
        wqkv=jnp.stack(wqkv).astype(jnp.bfloat16),
        wo=jnp.stack(wo).astype(jnp.bfloat16),
        w1=jnp.stack(w1).astype(jnp.bfloat16),
        w2=jnp.stack(w2).astype(jnp.bfloat16),
        # biases / LayerNorm params stay f32 (bq slice of bqkv is pre-scaled too; zeros here)
        bqkv=jnp.zeros((LAYERS, 1, 3 * HIDDEN), jnp.float32),
        bo=jnp.zeros((LAYERS, 1, HIDDEN), jnp.float32),
        ln1g=jnp.ones((LAYERS, 1, HIDDEN), jnp.float32),
        ln1b=jnp.zeros((LAYERS, 1, HIDDEN), jnp.float32),
        b1=jnp.zeros((LAYERS, 1, FFN), jnp.float32),
        b2=jnp.zeros((LAYERS, 1, HIDDEN), jnp.float32),
        ln2g=jnp.ones((LAYERS, 1, HIDDEN), jnp.float32),
        ln2b=jnp.zeros((LAYERS, 1, HIDDEN), jnp.float32),
    )
    return params


# ----------------------------- forward (encode) -------------------------------------
def time_series_encoder_forward(params, token_ids, attention_mask):
    """Equivalent of SentenceTransformer.encode on the chunked time-series text.

    token_ids:       int32 [B, S]
    attention_mask:  float32 [B, S]  (1 = real token, 0 = padding)
    returns          float32 [B, HIDDEN] sentence embeddings
    """
    B, S = token_ids.shape
    # embedding lookup (gather) — plain JAX glue
    pos_ids = jnp.arange(S)
    emb = (params["tok_emb"][token_ids]
           + params["pos_emb"][pos_ids][None, :, :]
           + params["type_emb"][0][None, None, :]).astype(jnp.float32)
    x = emb.reshape(B * S, HIDDEN)                                    # (T, H)
    mask = attention_mask.astype(jnp.float32)
    attn_bias = ((mask - 1.0) * 1e9)[:, None, :]                      # (B, 1, S)
    mask_col = mask.reshape(B * S, 1)                                 # (T, 1)
    return pallas_fused_encoder(x, attn_bias, mask_col, params)


# ----------------------------- main --------------------------------------------------
if __name__ == "__main__":
    key = jax.random.PRNGKey(0)
    pkey, tkey = jax.random.split(key)
    params = init_params(pkey)

    # synthetic tokenized "time-series text chunks": batch=2 chunks, seq=8 tokens
    token_ids = jax.random.randint(tkey, (BATCH, SEQ), 0, VOCAB, dtype=jnp.int32)
    # second chunk has 2 padding tokens at the end to exercise mask handling
    attention_mask = jnp.array(
        [[1, 1, 1, 1, 1, 1, 1, 1],
         [1, 1, 1, 1, 1, 1, 0, 0]], dtype=jnp.float32)

    embeddings = time_series_encoder_forward(params, token_ids, attention_mask)
    embeddings = jax.block_until_ready(embeddings)

    assert embeddings.shape == (BATCH, HIDDEN)
    assert embeddings.dtype == jnp.float32
    assert bool(jnp.all(jnp.isfinite(embeddings)))
    print("KERNEL_OK")
</pallas_src>

<mosaic_0001>
module attributes {stable_mosaic.version = 11 : i64} {
  func.func @fused_encoder_kernel(%arg0: i32, %arg1: memref<8x128xf32, #tpu.memory_space<vmem>>, %arg2: memref<1x1x8xf32, #tpu.memory_space<vmem>>, %arg3: memref<8x1xf32, #tpu.memory_space<vmem>>, %arg4: memref<1x128xf32, #tpu.memory_space<vmem>>, %arg5: memref<1x128xf32, #tpu.memory_space<vmem>>, %arg6: memref<2x128x384xbf16, #tpu.memory_space<vmem>>, %arg7: memref<2x1x384xf32, #tpu.memory_space<vmem>>, %arg8: memref<2x128x128xbf16, #tpu.memory_space<vmem>>, %arg9: memref<2x1x128xf32, #tpu.memory_space<vmem>>, %arg10: memref<2x1x128xf32, #tpu.memory_space<vmem>>, %arg11: memref<2x1x128xf32, #tpu.memory_space<vmem>>, %arg12: memref<2x128x256xbf16, #tpu.memory_space<vmem>>, %arg13: memref<2x1x256xf32, #tpu.memory_space<vmem>>, %arg14: memref<2x256x128xbf16, #tpu.memory_space<vmem>>, %arg15: memref<2x1x128xf32, #tpu.memory_space<vmem>>, %arg16: memref<2x1x128xf32, #tpu.memory_space<vmem>>, %arg17: memref<2x1x128xf32, #tpu.memory_space<vmem>>, %arg18: memref<1x1x128xf32, #tpu.memory_space<vmem>>) attributes {dimension_semantics = [#tpu.dimension_semantics<parallel>], iteration_bounds = array<i64: 2>, scalar_prefetch = 0 : i64, scratch_operands = 0 : i64, tpu.core_type = #tpu.core_type<tc>, window_params = [{transform_indices = @transform_0, window_bounds = array<i64: 8, 128>}, {transform_indices = @transform_1, window_bounds = array<i64: 1, 1, 8>}, {transform_indices = @transform_2, window_bounds = array<i64: 8, 1>}, {pipeline_mode = #tpu.pipeline_mode<synchronous>, transform_indices = @transform_3, window_bounds = array<i64: 1, 128>}, {pipeline_mode = #tpu.pipeline_mode<synchronous>, transform_indices = @transform_4, window_bounds = array<i64: 1, 128>}, {pipeline_mode = #tpu.pipeline_mode<synchronous>, transform_indices = @transform_5, window_bounds = array<i64: 2, 128, 384>}, {pipeline_mode = #tpu.pipeline_mode<synchronous>, transform_indices = @transform_6, window_bounds = array<i64: 2, 1, 384>}, {pipeline_mode = #tpu.pipeline_mode<synchronous>, transform_indices = @transform_7, window_bounds = array<i64: 2, 128, 128>}, {pipeline_mode = #tpu.pipeline_mode<synchronous>, transform_indices = @transform_8, window_bounds = array<i64: 2, 1, 128>}, {pipeline_mode = #tpu.pipeline_mode<synchronous>, transform_indices = @transform_9, window_bounds = array<i64: 2, 1, 128>}, {pipeline_mode = #tpu.pipeline_mode<synchronous>, transform_indices = @transform_10, window_bounds = array<i64: 2, 1, 128>}, {pipeline_mode = #tpu.pipeline_mode<synchronous>, transform_indices = @transform_11, window_bounds = array<i64: 2, 128, 256>}, {pipeline_mode = #tpu.pipeline_mode<synchronous>, transform_indices = @transform_12, window_bounds = array<i64: 2, 1, 256>}, {pipeline_mode = #tpu.pipeline_mode<synchronous>, transform_indices = @transform_13, window_bounds = array<i64: 2, 256, 128>}, {pipeline_mode = #tpu.pipeline_mode<synchronous>, transform_indices = @transform_14, window_bounds = array<i64: 2, 1, 128>}, {pipeline_mode = #tpu.pipeline_mode<synchronous>, transform_indices = @transform_15, window_bounds = array<i64: 2, 1, 128>}, {pipeline_mode = #tpu.pipeline_mode<synchronous>, transform_indices = @transform_16, window_bounds = array<i64: 2, 1, 128>}, {transform_indices = @transform_17, window_bounds = array<i64: 1, 1, 128>}]} {
    %c0 = arith.constant 0 : index
    %c0_0 = arith.constant 0 : index
    %0 = vector.load %arg1[%c0, %c0_0] : memref<8x128xf32, #tpu.memory_space<vmem>>, vector<8x128xf32>
    %c0_1 = arith.constant 0 : index
    %c0_2 = arith.constant 0 : index
    %1 = vector.load %arg4[%c0_1, %c0_2] : memref<1x128xf32, #tpu.memory_space<vmem>>, vector<1x128xf32>
    %c0_3 = arith.constant 0 : index
    %c0_4 = arith.constant 0 : index
    %2 = vector.load %arg5[%c0_3, %c0_4] : memref<1x128xf32, #tpu.memory_space<vmem>>, vector<1x128xf32>
    %cst = arith.constant dense<0.000000e+00> : vector<8xf32>
    %3 = vector.multi_reduction <add>, %0, %cst [1] : vector<8x128xf32> to vector<8xf32>
    %4 = vector.shape_cast %3 : vector<8xf32> to vector<8x1xf32>
    %cst_5 = arith.constant 1.280000e+02 : f32
    %5 = vector.broadcast %cst_5 : f32 to vector<8x1xf32>
    %6 = arith.divf %4, %5 : vector<8x1xf32>
    %7 = vector.broadcast %6 : vector<8x1xf32> to vector<8x128xf32>
    %8 = arith.subf %0, %7 : vector<8x128xf32>
    %9 = arith.mulf %8, %8 : vector<8x128xf32>
    %cst_6 = arith.constant dense<0.000000e+00> : vector<8xf32>
    %10 = vector.multi_reduction <add>, %9, %cst_6 [1] : vector<8x128xf32> to vector<8xf32>
    %11 = vector.shape_cast %10 : vector<8xf32> to vector<8x1xf32>
    %cst_7 = arith.constant 1.280000e+02 : f32
    %12 = vector.broadcast %cst_7 : f32 to vector<8x1xf32>
    %13 = arith.divf %11, %12 : vector<8x1xf32>
    %14 = vector.broadcast %6 : vector<8x1xf32> to vector<8x128xf32>
    %15 = arith.subf %0, %14 : vector<8x128xf32>
    %cst_8 = arith.constant 9.99999996E-13 : f32
    %16 = vector.broadcast %cst_8 : f32 to vector<8x1xf32>
    %17 = arith.addf %13, %16 : vector<8x1xf32>
    %18 = math.rsqrt %17 : vector<8x1xf32>
    %19 = vector.broadcast %18 : vector<8x1xf32> to vector<8x128xf32>
    %20 = arith.mulf %15, %19 : vector<8x128xf32>
    %21 = vector.broadcast %1 : vector<1x128xf32> to vector<8x128xf32>
    %22 = arith.mulf %20, %21 : vector<8x128xf32>
    %23 = vector.broadcast %2 : vector<1x128xf32> to vector<8x128xf32>
    %24 = arith.addf %22, %23 : vector<8x128xf32>
    %c0_9 = arith.constant 0 : index
    %c0_10 = arith.constant 0 : index
    %c0_11 = arith.constant 0 : index
    %25 = vector.load %arg2[%c0_9, %c0_10, %c0_11] : memref<1x1x8xf32, #tpu.memory_space<vmem>>, vector<1x1x8xf32>
    %26 = arith.truncf %24 : vector<8x128xf32> to vector<8x128xbf16>
    %c0_12 = arith.constant 0 : index
    %c0_13 = arith.constant 0 : index
    %c0_14 = arith.constant 0 : index
    %27 = vector.load %arg6[%c0_12, %c0_13, %c0_14] : memref<2x128x384xbf16, #tpu.memory_space<vmem>>, vector<1x128x384xbf16>
    %28 = vector.shape_cast %27 : vector<1x128x384xbf16> to vector<128x384xbf16>
    %cst_15 = arith.constant dense<0.000000e+00> : vector<8x384xf32>
    %29 = tpu.matmul %26, %28, %cst_15 {dimension_numbers = #tpu.dot_dimension_numbers<[1], [0], [0], [1], [0, 0, 1, 1], [], []>} : vector<8x128xbf16>, vector<128x384xbf16>, vector<8x384xf32> -> vector<8x384xf32>
    %c0_16 = arith.constant 0 : index
    %c0_17 = arith.constant 0 : index
    %c0_18 = arith.constant 0 : index
    %30 = vector.load %arg7[%c0_16, %c0_17, %c0_18] : memref<2x1x384xf32, #tpu.memory_space<vmem>>, vector<1x1x384xf32>
    %31 = vector.shape_cast %30 : vector<1x1x384xf32> to vector<1x384xf32>
    %32 = vector.broadcast %31 : vector<1x384xf32> to vector<8x384xf32>
    %33 = arith.addf %29, %32 : vector<8x384xf32>
    %34 = arith.truncf %33 : vector<8x384xf32> to vector<8x384xbf16>
    %35 = vector.extract_strided_slice %34 {offsets = [0, 0], sizes = [8, 128], strides = [1, 1]} : vector<8x384xbf16> to vector<8x128xbf16>
    %36 = vector.shape_cast %35 : vector<8x128xbf16> to vector<8x4x32xbf16>
    %37 = tpu.transpose %36, [1, 0, 2] : vector<8x4x32xbf16> -> vector<4x8x32xbf16>
    %38 = vector.extract_strided_slice %34 {offsets = [0, 128], sizes = [8, 128], strides = [1, 1]} : vector<8x384xbf16> to vector<8x128xbf16>
    %39 = vector.shape_cast %38 : vector<8x128xbf16> to vector<8x4x32xbf16>
    %40 = tpu.transpose %39, [1, 0, 2] : vector<8x4x32xbf16> -> vector<4x8x32xbf16>
    %41 = vector.extract_strided_slice %34 {offsets = [0, 256], sizes = [8, 128], strides = [1, 1]} : vector<8x384xbf16> to vector<8x128xbf16>
    %42 = vector.shape_cast %41 : vector<8x128xbf16> to vector<8x4x32xbf16>
    %43 = tpu.transpose %42, [1, 0, 2] : vector<8x4x32xbf16> -> vector<4x8x32xbf16>
    "tpu.trace_start"() <{level = 10 : i32, message = "hqd,hkd->hqk"}> : () -> ()
    %cst_19 = arith.constant dense<0.000000e+00> : vector<4x8x8xf32>
    %44 = tpu.matmul %37, %40, %cst_19 {dimension_numbers = #tpu.dot_dimension_numbers<[2], [2], [1], [1], [0, 0, 0, 1, 1, 1], [0], [0]>} : vector<4x8x32xbf16>, vector<4x8x32xbf16>, vector<4x8x8xf32> -> vector<4x8x8xf32>
    "tpu.trace_stop"() : () -> ()
    %45 = vector.broadcast %25 : vector<1x1x8xf32> to vector<4x8x8xf32>
    %46 = arith.addf %44, %45 : vector<4x8x8xf32>
    %cst_20 = arith.constant dense<0xFF800000> : vector<4x8xf32>
    %47 = vector.multi_reduction <maximumf>, %46, %cst_20 [2] : vector<4x8x8xf32> to vector<4x8xf32>
    %48 = vector.shape_cast %47 : vector<4x8xf32> to vector<4x8x1xf32>
    %49 = vector.broadcast %48 : vector<4x8x1xf32> to vector<4x8x8xf32>
    %50 = arith.subf %46, %49 : vector<4x8x8xf32>
    %51 = math.exp %50 : vector<4x8x8xf32>
    %cst_21 = arith.constant dense<0.000000e+00> : vector<4x8xf32>
    %52 = vector.multi_reduction <add>, %51, %cst_21 [2] : vector<4x8x8xf32> to vector<4x8xf32>
    %53 = vector.shape_cast %52 : vector<4x8xf32> to vector<4x8x1xf32>
    %54 = tpu.reciprocal %53 {approx = true} : vector<4x8x1xf32> -> vector<4x8x1xf32>
    %55 = vector.broadcast %54 : vector<4x8x1xf32> to vector<4x8x8xf32>
    %56 = arith.mulf %51, %55 : vector<4x8x8xf32>
    %57 = arith.truncf %56 : vector<4x8x8xf32> to vector<4x8x8xbf16>
    "tpu.trace_start"() <{level = 10 : i32, message = "hqk,hkd->hqd"}> : () -> ()
    %cst_22 = arith.constant dense<0.000000e+00> : vector<4x8x32xf32>
    %58 = tpu.matmul %57, %43, %cst_22 {dimension_numbers = #tpu.dot_dimension_numbers<[2], [1], [1], [2], [0, 0, 0, 1, 1, 2], [0], [0]>} : vector<4x8x8xbf16>, vector<4x8x32xbf16>, vector<4x8x32xf32> -> vector<4x8x32xf32>
    "tpu.trace_stop"() : () -> ()
    %59 = tpu.transpose %58, [1, 0, 2] : vector<4x8x32xf32> -> vector<8x4x32xf32>
    %60 = vector.shape_cast %59 : vector<8x4x32xf32> to vector<8x128xf32>
    %61 = arith.truncf %60 : vector<8x128xf32> to vector<8x128xbf16>
    %c0_23 = arith.constant 0 : index
    %c0_24 = arith.constant 0 : index
    %c0_25 = arith.constant 0 : index
    %62 = vector.load %arg8[%c0_23, %c0_24, %c0_25] : memref<2x128x128xbf16, #tpu.memory_space<vmem>>, vector<1x128x128xbf16>
    %63 = vector.shape_cast %62 : vector<1x128x128xbf16> to vector<128x128xbf16>
    %cst_26 = arith.constant dense<0.000000e+00> : vector<8x128xf32>
    %64 = tpu.matmul %61, %63, %cst_26 {dimension_numbers = #tpu.dot_dimension_numbers<[1], [0], [0], [1], [0, 0, 1, 1], [], []>} : vector<8x128xbf16>, vector<128x128xbf16>, vector<8x128xf32> -> vector<8x128xf32>
    %c0_27 = arith.constant 0 : index
    %c0_28 = arith.constant 0 : index
    %c0_29 = arith.constant 0 : index
    %65 = vector.load %arg9[%c0_27, %c0_28, %c0_29] : memref<2x1x128xf32, #tpu.memory_space<vmem>>, vector<1x1x128xf32>
    %66 = vector.shape_cast %65 : vector<1x1x128xf32> to vector<1x128xf32>
    %67 = vector.broadcast %66 : vector<1x128xf32> to vector<8x128xf32>
    %68 = arith.addf %64, %67 : vector<8x128xf32>
    %69 = arith.addf %24, %68 : vector<8x128xf32>
    %c0_30 = arith.constant 0 : index
    %c0_31 = arith.constant 0 : index
    %c0_32 = arith.constant 0 : index
    %70 = vector.load %arg10[%c0_30, %c0_31, %c0_32] : memref<2x1x128xf32, #tpu.memory_space<vmem>>, vector<1x1x128xf32>
    %71 = vector.shape_cast %70 : vector<1x1x128xf32> to vector<1x128xf32>
    %c0_33 = arith.constant 0 : index
    %c0_34 = arith.constant 0 : index
    %c0_35 = arith.constant 0 : index
    %72 = vector.load %arg11[%c0_33, %c0_34, %c0_35] : memref<2x1x128xf32, #tpu.memory_space<vmem>>, vector<1x1x128xf32>
    %73 = vector.shape_cast %72 : vector<1x1x128xf32> to vector<1x128xf32>
    %cst_36 = arith.constant dense<0.000000e+00> : vector<8xf32>
    %74 = vector.multi_reduction <add>, %69, %cst_36 [1] : vector<8x128xf32> to vector<8xf32>
    %75 = vector.shape_cast %74 : vector<8xf32> to vector<8x1xf32>
    %cst_37 = arith.constant 1.280000e+02 : f32
    %76 = vector.broadcast %cst_37 : f32 to vector<8x1xf32>
    %77 = arith.divf %75, %76 : vector<8x1xf32>
    %78 = vector.broadcast %77 : vector<8x1xf32> to vector<8x128xf32>
    %79 = arith.subf %69, %78 : vector<8x128xf32>
    %80 = arith.mulf %79, %79 : vector<8x128xf32>
    %cst_38 = arith.constant dense<0.000000e+00> : vector<8xf32>
    %81 = vector.multi_reduction <add>, %80, %cst_38 [1] : vector<8x128xf32> to vector<8xf32>
    %82 = vector.shape_cast %81 : vector<8xf32> to vector<8x1xf32>
    %cst_39 = arith.constant 1.280000e+02 : f32
    %83 = vector.broadcast %cst_39 : f32 to vector<8x1xf32>
    %84 = arith.divf %82, %83 : vector<8x1xf32>
    %85 = vector.broadcast %77 : vector<8x1xf32> to vector<8x128xf32>
    %86 = arith.subf %69, %85 : vector<8x128xf32>
    %cst_40 = arith.constant 9.99999996E-13 : f32
    %87 = vector.broadcast %cst_40 : f32 to vector<8x1xf32>
    %88 = arith.addf %84, %87 : vector<8x1xf32>
    %89 = math.rsqrt %88 : vector<8x1xf32>
    %90 = vector.broadcast %89 : vector<8x1xf32> to vector<8x128xf32>
    %91 = arith.mulf %86, %90 : vector<8x128xf32>
    %92 = vector.broadcast %71 : vector<1x128xf32> to vector<8x128xf32>
    %93 = arith.mulf %91, %92 : vector<8x128xf32>
    %94 = vector.broadcast %73 : vector<1x128xf32> to vector<8x128xf32>
    %95 = arith.addf %93, %94 : vector<8x128xf32>
    %96 = arith.truncf %95 : vector<8x128xf32> to vector<8x128xbf16>
    %c0_41 = arith.constant 0 : index
    %c0_42 = arith.constant 0 : index
    %c0_43 = arith.constant 0 : index
    %97 = vector.load %arg12[%c0_41, %c0_42, %c0_43] : memref<2x128x256xbf16, #tpu.memory_space<vmem>>, vector<1x128x256xbf16>
    %98 = vector.shape_cast %97 : vector<1x128x256xbf16> to vector<128x256xbf16>
    %cst_44 = arith.constant dense<0.000000e+00> : vector<8x256xf32>
    %99 = tpu.matmul %96, %98, %cst_44 {dimension_numbers = #tpu.dot_dimension_numbers<[1], [0], [0], [1], [0, 0, 1, 1], [], []>} : vector<8x128xbf16>, vector<128x256xbf16>, vector<8x256xf32> -> vector<8x256xf32>
    %c0_45 = arith.constant 0 : index
    %c0_46 = arith.constant 0 : index
    %c0_47 = arith.constant 0 : index
    %100 = vector.load %arg13[%c0_45, %c0_46, %c0_47] : memref<2x1x256xf32, #tpu.memory_space<vmem>>, vector<1x1x256xf32>
    %101 = vector.shape_cast %100 : vector<1x1x256xf32> to vector<1x256xf32>
    %102 = vector.broadcast %101 : vector<1x256xf32> to vector<8x256xf32>
    %103 = arith.addf %99, %102 : vector<8x256xf32>
    %104 = arith.mulf %103, %103 : vector<8x256xf32>
    %105 = arith.mulf %103, %104 : vector<8x256xf32>
    %cst_48 = arith.constant 4.471500e-02 : f32
    %106 = vector.broadcast %cst_48 : f32 to vector<8x256xf32>
    %107 = arith.mulf %106, %105 : vector<8x256xf32>
    %108 = arith.addf %103, %107 : vector<8x256xf32>
    %cst_49 = arith.constant 0.797884583 : f32
    %109 = vector.broadcast %cst_49 : f32 to vector<8x256xf32>
    %110 = arith.mulf %109, %108 : vector<8x256xf32>
    %111 = math.tanh %110 : vector<8x256xf32>
    %cst_50 = arith.constant 1.000000e+00 : f32
    %112 = vector.broadcast %cst_50 : f32 to vector<8x256xf32>
    %113 = arith.addf %112, %111 : vector<8x256xf32>
    %cst_51 = arith.constant 5.000000e-01 : f32
    %114 = vector.broadcast %cst_51 : f32 to vector<8x256xf32>
    %115 = arith.mulf %114, %113 : vector<8x256xf32>
    %116 = arith.mulf %103, %115 : vector<8x256xf32>
    %117 = arith.truncf %116 : vector<8x256xf32> to vector<8x256xbf16>
    %c0_52 = arith.constant 0 : index
    %c0_53 = arith.constant 0 : index
    %c0_54 = arith.constant 0 : index
    %118 = vector.load %arg14[%c0_52, %c0_53, %c0_54] : memref<2x256x128xbf16, #tpu.memory_space<vmem>>, vector<1x256x128xbf16>
    %119 = vector.shape_cast %118 : vector<1x256x128xbf16> to vector<256x128xbf16>
    %cst_55 = arith.constant dense<0.000000e+00> : vector<8x128xf32>
    %120 = tpu.matmul %117, %119, %cst_55 {dimension_numbers = #tpu.dot_dimension_numbers<[1], [0], [0], [1], [0, 0, 1, 1], [], []>} : vector<8x256xbf16>, vector<256x128xbf16>, vector<8x128xf32> -> vector<8x128xf32>
    %c0_56 = arith.constant 0 : index
    %c0_57 = arith.constant 0 : index
    %c0_58 = arith.constant 0 : index
    %121 = vector.load %arg15[%c0_56, %c0_57, %c0_58] : memref<2x1x128xf32, #tpu.memory_space<vmem>>, vector<1x1x128xf32>
    %122 = vector.shape_cast %121 : vector<1x1x128xf32> to vector<1x128xf32>
    %123 = vector.broadcast %122 : vector<1x128xf32> to vector<8x128xf32>
    %124 = arith.addf %120, %123 : vector<8x128xf32>
    %125 = arith.addf %95, %124 : vector<8x128xf32>
    %c0_59 = arith.constant 0 : index
    %c0_60 = arith.constant 0 : index
    %c0_61 = arith.constant 0 : index
    %126 = vector.load %arg16[%c0_59, %c0_60, %c0_61] : memref<2x1x128xf32, #tpu.memory_space<vmem>>, vector<1x1x128xf32>
    %127 = vector.shape_cast %126 : vector<1x1x128xf32> to vector<1x128xf32>
    %c0_62 = arith.constant 0 : index
    %c0_63 = arith.constant 0 : index
    %c0_64 = arith.constant 0 : index
    %128 = vector.load %arg17[%c0_62, %c0_63, %c0_64] : memref<2x1x128xf32, #tpu.memory_space<vmem>>, vector<1x1x128xf32>
    %129 = vector.shape_cast %128 : vector<1x1x128xf32> to vector<1x128xf32>
    %cst_65 = arith.constant dense<0.000000e+00> : vector<8xf32>
    %130 = vector.multi_reduction <add>, %125, %cst_65 [1] : vector<8x128xf32> to vector<8xf32>
    %131 = vector.shape_cast %130 : vector<8xf32> to vector<8x1xf32>
    %cst_66 = arith.constant 1.280000e+02 : f32
    %132 = vector.broadcast %cst_66 : f32 to vector<8x1xf32>
    %133 = arith.divf %131, %132 : vector<8x1xf32>
    %134 = vector.broadcast %133 : vector<8x1xf32> to vector<8x128xf32>
    %135 = arith.subf %125, %134 : vector<8x128xf32>
    %136 = arith.mulf %135, %135 : vector<8x128xf32>
    %cst_67 = arith.constant dense<0.000000e+00> : vector<8xf32>
    %137 = vector.multi_reduction <add>, %136, %cst_67 [1] : vector<8x128xf32> to vector<8xf32>
    %138 = vector.shape_cast %137 : vector<8xf32> to vector<8x1xf32>
    %cst_68 = arith.constant 1.280000e+02 : f32
    %139 = vector.broadcast %cst_68 : f32 to vector<8x1xf32>
    %140 = arith.divf %138, %139 : vector<8x1xf32>
    %141 = vector.broadcast %133 : vector<8x1xf32> to vector<8x128xf32>
    %142 = arith.subf %125, %141 : vector<8x128xf32>
    %cst_69 = arith.constant 9.99999996E-13 : f32
    %143 = vector.broadcast %cst_69 : f32 to vector<8x1xf32>
    %144 = arith.addf %140, %143 : vector<8x1xf32>
    %145 = math.rsqrt %144 : vector<8x1xf32>
    %146 = vector.broadcast %145 : vector<8x1xf32> to vector<8x128xf32>
    %147 = arith.mulf %142, %146 : vector<8x128xf32>
    %148 = vector.broadcast %127 : vector<1x128xf32> to vector<8x128xf32>
    %149 = arith.mulf %147, %148 : vector<8x128xf32>
    %150 = vector.broadcast %129 : vector<1x128xf32> to vector<8x128xf32>
    %151 = arith.addf %149, %150 : vector<8x128xf32>
    %152 = arith.truncf %151 : vector<8x128xf32> to vector<8x128xbf16>
    %c1 = arith.constant 1 : index
    %c0_70 = arith.constant 0 : index
    %c0_71 = arith.constant 0 : index
    %153 = vector.load %arg6[%c1, %c0_70, %c0_71] : memref<2x128x384xbf16, #tpu.memory_space<vmem>>, vector<1x128x384xbf16>
    %154 = vector.shape_cast %153 : vector<1x128x384xbf16> to vector<128x384xbf16>
    %cst_72 = arith.constant dense<0.000000e+00> : vector<8x384xf32>
    %155 = tpu.matmul %152, %154, %cst_72 {dimension_numbers = #tpu.dot_dimension_numbers<[1], [0], [0], [1], [0, 0, 1, 1], [], []>} : vector<8x128xbf16>, vector<128x384xbf16>, vector<8x384xf32> -> vector<8x384xf32>
    %c1_73 = arith.constant 1 : index
    %c0_74 = arith.constant 0 : index
    %c0_75 = arith.constant 0 : index
    %156 = vector.load %arg7[%c1_73, %c0_74, %c0_75] : memref<2x1x384xf32, #tpu.memory_space<vmem>>, vector<1x1x384xf32>
    %157 = vector.shape_cast %156 : vector<1x1x384xf32> to vector<1x384xf32>
    %158 = vector.broadcast %157 : vector<1x384xf32> to vector<8x384xf32>
    %159 = arith.addf %155, %158 : vector<8x384xf32>
    %160 = arith.truncf %159 : vector<8x384xf32> to vector<8x384xbf16>
    %161 = vector.extract_strided_slice %160 {offsets = [0, 0], sizes = [8, 128], strides = [1, 1]} : vector<8x384xbf16> to vector<8x128xbf16>
    %162 = vector.shape_cast %161 : vector<8x128xbf16> to vector<8x4x32xbf16>
    %163 = tpu.transpose %162, [1, 0, 2] : vector<8x4x32xbf16> -> vector<4x8x32xbf16>
    %164 = vector.extract_strided_slice %160 {offsets = [0, 128], sizes = [8, 128], strides = [1, 1]} : vector<8x384xbf16> to vector<8x128xbf16>
    %165 = vector.shape_cast %164 : vector<8x128xbf16> to vector<8x4x32xbf16>
    %166 = tpu.transpose %165, [1, 0, 2] : vector<8x4x32xbf16> -> vector<4x8x32xbf16>
    %167 = vector.extract_strided_slice %160 {offsets = [0, 256], sizes = [8, 128], strides = [1, 1]} : vector<8x384xbf16> to vector<8x128xbf16>
    %168 = vector.shape_cast %167 : vector<8x128xbf16> to vector<8x4x32xbf16>
    %169 = tpu.transpose %168, [1, 0, 2] : vector<8x4x32xbf16> -> vector<4x8x32xbf16>
    "tpu.trace_start"() <{level = 10 : i32, message = "hqd,hkd->hqk"}> : () -> ()
    %cst_76 = arith.constant dense<0.000000e+00> : vector<4x8x8xf32>
    %170 = tpu.matmul %163, %166, %cst_76 {dimension_numbers = #tpu.dot_dimension_numbers<[2], [2], [1], [1], [0, 0, 0, 1, 1, 1], [0], [0]>} : vector<4x8x32xbf16>, vector<4x8x32xbf16>, vector<4x8x8xf32> -> vector<4x8x8xf32>
    "tpu.trace_stop"() : () -> ()
    %171 = vector.broadcast %25 : vector<1x1x8xf32> to vector<4x8x8xf32>
    %172 = arith.addf %170, %171 : vector<4x8x8xf32>
    %cst_77 = arith.constant dense<0xFF800000> : vector<4x8xf32>
    %173 = vector.multi_reduction <maximumf>, %172, %cst_77 [2] : vector<4x8x8xf32> to vector<4x8xf32>
    %174 = vector.shape_cast %173 : vector<4x8xf32> to vector<4x8x1xf32>
    %175 = vector.broadcast %174 : vector<4x8x1xf32> to vector<4x8x8xf32>
    %176 = arith.subf %172, %175 : vector<4x8x8xf32>
    %177 = math.exp %176 : vector<4x8x8xf32>
    %cst_78 = arith.constant dense<0.000000e+00> : vector<4x8xf32>
    %178 = vector.multi_reduction <add>, %177, %cst_78 [2] : vector<4x8x8xf32> to vector<4x8xf32>
    %179 = vector.shape_cast %178 : vector<4x8xf32> to vector<4x8x1xf32>
    %180 = tpu.reciprocal %179 {approx = true} : vector<4x8x1xf32> -> vector<4x8x1xf32>
    %181 = vector.broadcast %180 : vector<4x8x1xf32> to vector<4x8x8xf32>
    %182 = arith.mulf %177, %181 : vector<4x8x8xf32>
    %183 = arith.truncf %182 : vector<4x8x8xf32> to vector<4x8x8xbf16>
    "tpu.trace_start"() <{level = 10 : i32, message = "hqk,hkd->hqd"}> : () -> ()
    %cst_79 = arith.constant dense<0.000000e+00> : vector<4x8x32xf32>
    %184 = tpu.matmul %183, %169, %cst_79 {dimension_numbers = #tpu.dot_dimension_numbers<[2], [1], [1], [2], [0, 0, 0, 1, 1, 2], [0], [0]>} : vector<4x8x8xbf16>, vector<4x8x32xbf16>, vector<4x8x32xf32> -> vector<4x8x32xf32>
    "tpu.trace_stop"() : () -> ()
    %185 = tpu.transpose %184, [1, 0, 2] : vector<4x8x32xf32> -> vector<8x4x32xf32>
    %186 = vector.shape_cast %185 : vector<8x4x32xf32> to vector<8x128xf32>
    %187 = arith.truncf %186 : vector<8x128xf32> to vector<8x128xbf16>
    %c1_80 = arith.constant 1 : index
    %c0_81 = arith.constant 0 : index
    %c0_82 = arith.constant 0 : index
    %188 = vector.load %arg8[%c1_80, %c0_81, %c0_82] : memref<2x128x128xbf16, #tpu.memory_space<vmem>>, vector<1x128x128xbf16>
    %189 = vector.shape_cast %188 : vector<1x128x128xbf16> to vector<128x128xbf16>
    %cst_83 = arith.constant dense<0.000000e+00> : vector<8x128xf32>
    %190 = tpu.matmul %187, %189, %cst_83 {dimension_numbers = #tpu.dot_dimension_numbers<[1], [0], [0], [1], [0, 0, 1, 1], [], []>} : vector<8x128xbf16>, vector<128x128xbf16>, vector<8x128xf32> -> vector<8x128xf32>
    %c1_84 = arith.constant 1 : index
    %c0_85 = arith.constant 0 : index
    %c0_86 = arith.constant 0 : index
    %191 = vector.load %arg9[%c1_84, %c0_85, %c0_86] : memref<2x1x128xf32, #tpu.memory_space<vmem>>, vector<1x1x128xf32>
    %192 = vector.shape_cast %191 : vector<1x1x128xf32> to vector<1x128xf32>
    %193 = vector.broadcast %192 : vector<1x128xf32> to vector<8x128xf32>
    %194 = arith.addf %190, %193 : vector<8x128xf32>
    %195 = arith.addf %151, %194 : vector<8x128xf32>
    %c1_87 = arith.constant 1 : index
    %c0_88 = arith.constant 0 : index
    %c0_89 = arith.constant 0 : index
    %196 = vector.load %arg10[%c1_87, %c0_88, %c0_89] : memref<2x1x128xf32, #tpu.memory_space<vmem>>, vector<1x1x128xf32>
    %197 = vector.shape_cast %196 : vector<1x1x128xf32> to vector<1x128xf32>
    %c1_90 = arith.constant 1 : index
    %c0_91 = arith.constant 0 : index
    %c0_92 = arith.constant 0 : index
    %198 = vector.load %arg11[%c1_90, %c0_91, %c0_92] : memref<2x1x128xf32, #tpu.memory_space<vmem>>, vector<1x1x128xf32>
    %199 = vector.shape_cast %198 : vector<1x1x128xf32> to vector<1x128xf32>
    %cst_93 = arith.constant dense<0.000000e+00> : vector<8xf32>
    %200 = vector.multi_reduction <add>, %195, %cst_93 [1] : vector<8x128xf32> to vector<8xf32>
    %201 = vector.shape_cast %200 : vector<8xf32> to vector<8x1xf32>
    %cst_94 = arith.constant 1.280000e+02 : f32
    %202 = vector.broadcast %cst_94 : f32 to vector<8x1xf32>
    %203 = arith.divf %201, %202 : vector<8x1xf32>
    %204 = vector.broadcast %203 : vector<8x1xf32> to vector<8x128xf32>
    %205 = arith.subf %195, %204 : vector<8x128xf32>
    %206 = arith.mulf %205, %205 : vector<8x128xf32>
    %cst_95 = arith.constant dense<0.000000e+00> : vector<8xf32>
    %207 = vector.multi_reduction <add>, %206, %cst_95 [1] : vector<8x128xf32> to vector<8xf32>
    %208 = vector.shape_cast %207 : vector<8xf32> to vector<8x1xf32>
    %cst_96 = arith.constant 1.280000e+02 : f32
    %209 = vector.broadcast %cst_96 : f32 to vector<8x1xf32>
    %210 = arith.divf %208, %209 : vector<8x1xf32>
    %211 = vector.broadcast %203 : vector<8x1xf32> to vector<8x128xf32>
    %212 = arith.subf %195, %211 : vector<8x128xf32>
    %cst_97 = arith.constant 9.99999996E-13 : f32
    %213 = vector.broadcast %cst_97 : f32 to vector<8x1xf32>
    %214 = arith.addf %210, %213 : vector<8x1xf32>
    %215 = math.rsqrt %214 : vector<8x1xf32>
    %216 = vector.broadcast %215 : vector<8x1xf32> to vector<8x128xf32>
    %217 = arith.mulf %212, %216 : vector<8x128xf32>
    %218 = vector.broadcast %197 : vector<1x128xf32> to vector<8x128xf32>
    %219 = arith.mulf %217, %218 : vector<8x128xf32>
    %220 = vector.broadcast %199 : vector<1x128xf32> to vector<8x128xf32>
    %221 = arith.addf %219, %220 : vector<8x128xf32>
    %222 = arith.truncf %221 : vector<8x128xf32> to vector<8x128xbf16>
    %c1_98 = arith.constant 1 : index
    %c0_99 = arith.constant 0 : index
    %c0_100 = arith.constant 0 : index
    %223 = vector.load %arg12[%c1_98, %c0_99, %c0_100] : memref<2x128x256xbf16, #tpu.memory_space<vmem>>, vector<1x128x256xbf16>
    %224 = vector.shape_cast %223 : vector<1x128x256xbf16> to vector<128x256xbf16>
    %cst_101 = arith.constant dense<0.000000e+00> : vector<8x256xf32>
    %225 = tpu.matmul %222, %224, %cst_101 {dimension_numbers = #tpu.dot_dimension_numbers<[1], [0], [0], [1], [0, 0, 1, 1], [], []>} : vector<8x128xbf16>, vector<128x256xbf16>, vector<8x256xf32> -> vector<8x256xf32>
    %c1_102 = arith.constant 1 : index
    %c0_103 = arith.constant 0 : index
    %c0_104 = arith.constant 0 : index
    %226 = vector.load %arg13[%c1_102, %c0_103, %c0_104] : memref<2x1x256xf32, #tpu.memory_space<vmem>>, vector<1x1x256xf32>
    %227 = vector.shape_cast %226 : vector<1x1x256xf32> to vector<1x256xf32>
    %228 = vector.broadcast %227 : vector<1x256xf32> to vector<8x256xf32>
    %229 = arith.addf %225, %228 : vector<8x256xf32>
    %230 = arith.mulf %229, %229 : vector<8x256xf32>
    %231 = arith.mulf %229, %230 : vector<8x256xf32>
    %cst_105 = arith.constant 4.471500e-02 : f32
    %232 = vector.broadcast %cst_105 : f32 to vector<8x256xf32>
    %233 = arith.mulf %232, %231 : vector<8x256xf32>
    %234 = arith.addf %229, %233 : vector<8x256xf32>
    %cst_106 = arith.constant 0.797884583 : f32
    %235 = vector.broadcast %cst_106 : f32 to vector<8x256xf32>
    %236 = arith.mulf %235, %234 : vector<8x256xf32>
    %237 = math.tanh %236 : vector<8x256xf32>
    %cst_107 = arith.constant 1.000000e+00 : f32
    %238 = vector.broadcast %cst_107 : f32 to vector<8x256xf32>
    %239 = arith.addf %238, %237 : vector<8x256xf32>
    %cst_108 = arith.constant 5.000000e-01 : f32
    %240 = vector.broadcast %cst_108 : f32 to vector<8x256xf32>
    %241 = arith.mulf %240, %239 : vector<8x256xf32>
    %242 = arith.mulf %229, %241 : vector<8x256xf32>
    %243 = arith.truncf %242 : vector<8x256xf32> to vector<8x256xbf16>
    %c1_109 = arith.constant 1 : index
    %c0_110 = arith.constant 0 : index
    %c0_111 = arith.constant 0 : index
    %244 = vector.load %arg14[%c1_109, %c0_110, %c0_111] : memref<2x256x128xbf16, #tpu.memory_space<vmem>>, vector<1x256x128xbf16>
    %245 = vector.shape_cast %244 : vector<1x256x128xbf16> to vector<256x128xbf16>
    %cst_112 = arith.constant dense<0.000000e+00> : vector<8x128xf32>
    %246 = tpu.matmul %243, %245, %cst_112 {dimension_numbers = #tpu.dot_dimension_numbers<[1], [0], [0], [1], [0, 0, 1, 1], [], []>} : vector<8x256xbf16>, vector<256x128xbf16>, vector<8x128xf32> -> vector<8x128xf32>
    %c1_113 = arith.constant 1 : index
    %c0_114 = arith.constant 0 : index
    %c0_115 = arith.constant 0 : index
    %247 = vector.load %arg15[%c1_113, %c0_114, %c0_115] : memref<2x1x128xf32, #tpu.memory_space<vmem>>, vector<1x1x128xf32>
    %248 = vector.shape_cast %247 : vector<1x1x128xf32> to vector<1x128xf32>
    %249 = vector.broadcast %248 : vector<1x128xf32> to vector<8x128xf32>
    %250 = arith.addf %246, %249 : vector<8x128xf32>
    %251 = arith.addf %221, %250 : vector<8x128xf32>
    %c1_116 = arith.constant 1 : index
    %c0_117 = arith.constant 0 : index
    %c0_118 = arith.constant 0 : index
    %252 = vector.load %arg16[%c1_116, %c0_117, %c0_118] : memref<2x1x128xf32, #tpu.memory_space<vmem>>, vector<1x1x128xf32>
    %253 = vector.shape_cast %252 : vector<1x1x128xf32> to vector<1x128xf32>
    %c1_119 = arith.constant 1 : index
    %c0_120 = arith.constant 0 : index
    %c0_121 = arith.constant 0 : index
    %254 = vector.load %arg17[%c1_119, %c0_120, %c0_121] : memref<2x1x128xf32, #tpu.memory_space<vmem>>, vector<1x1x128xf32>
    %255 = vector.shape_cast %254 : vector<1x1x128xf32> to vector<1x128xf32>
    %cst_122 = arith.constant dense<0.000000e+00> : vector<8xf32>
    %256 = vector.multi_reduction <add>, %251, %cst_122 [1] : vector<8x128xf32> to vector<8xf32>
    %257 = vector.shape_cast %256 : vector<8xf32> to vector<8x1xf32>
    %cst_123 = arith.constant 1.280000e+02 : f32
    %258 = vector.broadcast %cst_123 : f32 to vector<8x1xf32>
    %259 = arith.divf %257, %258 : vector<8x1xf32>
    %260 = vector.broadcast %259 : vector<8x1xf32> to vector<8x128xf32>
    %261 = arith.subf %251, %260 : vector<8x128xf32>
    %262 = arith.mulf %261, %261 : vector<8x128xf32>
    %cst_124 = arith.constant dense<0.000000e+00> : vector<8xf32>
    %263 = vector.multi_reduction <add>, %262, %cst_124 [1] : vector<8x128xf32> to vector<8xf32>
    %264 = vector.shape_cast %263 : vector<8xf32> to vector<8x1xf32>
    %cst_125 = arith.constant 1.280000e+02 : f32
    %265 = vector.broadcast %cst_125 : f32 to vector<8x1xf32>
    %266 = arith.divf %264, %265 : vector<8x1xf32>
    %267 = vector.broadcast %259 : vector<8x1xf32> to vector<8x128xf32>
    %268 = arith.subf %251, %267 : vector<8x128xf32>
    %cst_126 = arith.constant 9.99999996E-13 : f32
    %269 = vector.broadcast %cst_126 : f32 to vector<8x1xf32>
    %270 = arith.addf %266, %269 : vector<8x1xf32>
    %271 = math.rsqrt %270 : vector<8x1xf32>
    %272 = vector.broadcast %271 : vector<8x1xf32> to vector<8x128xf32>
    %273 = arith.mulf %268, %272 : vector<8x128xf32>
    %274 = vector.broadcast %253 : vector<1x128xf32> to vector<8x128xf32>
    %275 = arith.mulf %273, %274 : vector<8x128xf32>
    %276 = vector.broadcast %255 : vector<1x128xf32> to vector<8x128xf32>
    %277 = arith.addf %275, %276 : vector<8x128xf32>
    %c0_127 = arith.constant 0 : index
    %c0_128 = arith.constant 0 : index
    %278 = vector.load %arg3[%c0_127, %c0_128] : memref<8x1xf32, #tpu.memory_space<vmem>>, vector<8x1xf32>
    %279 = vector.broadcast %278 : vector<8x1xf32> to vector<8x128xf32>
    %280 = arith.mulf %277, %279 : vector<8x128xf32>
    %cst_129 = arith.constant dense<0.000000e+00> : vector<128xf32>
    %281 = vector.multi_reduction <add>, %280, %cst_129 [0] : vector<8x128xf32> to vector<128xf32>
    %282 = vector.shape_cast %281 : vector<128xf32> to vector<1x128xf32>
    %cst_130 = arith.constant dense<0.000000e+00> : vector<1xf32>
    %283 = vector.multi_reduction <add>, %278, %cst_130 [0] : vector<8x1xf32> to vector<1xf32>
    %284 = vector.shape_cast %283 : vector<1xf32> to vector<1x1xf32>
    %cst_131 = arith.constant 9.99999971E-10 : f32
    %285 = vector.broadcast %cst_131 : f32 to vector<1x1xf32>
    %286 = arith.maximumf %284, %285 : vector<1x1xf32>
    %287 = vector.broadcast %286 : vector<1x1xf32> to vector<1x128xf32>
    %288 = arith.divf %282, %287 : vector<1x128xf32>
    %c0_132 = arith.constant 0 : index
    %c0_133 = arith.constant 0 : index
    %c0_134 = arith.constant 0 : index
    %289 = vector.load %arg18[%c0_132, %c0_133, %c0_134] : memref<1x1x128xf32, #tpu.memory_space<vmem>>, vector<1x1x128xf32>
    %290 = vector.shape_cast %289 : vector<1x1x128xf32> to vector<1x128xf32>
    %291 = vector.shape_cast %288 : vector<1x128xf32> to vector<1x1x128xf32>
    tpu.vector_store %arg18[%c0_132, %c0_133, %c0_134], %291 {strides = array<i32>} : memref<1x1x128xf32, #tpu.memory_space<vmem>>, vector<1x1x128xf32>,
    return
  }
  func.func @transform_0(%arg0: i32) -> (i32, i32) {
    %c0_i32 = arith.constant 0 : i32
    %c0_i32_0 = arith.constant 0 : i32
    return %arg0, %c0_i32 : i32, i32
  }
  func.func @transform_1(%arg0: i32) -> (i32, i32, i32) {
    %c0_i32 = arith.constant 0 : i32
    %c0_i32_0 = arith.constant 0 : i32
    %c0_i32_1 = arith.constant 0 : i32
    return %arg0, %c0_i32, %c0_i32_0 : i32, i32, i32
  }
  func.func @transform_2(%arg0: i32) -> (i32, i32) {
    %c0_i32 = arith.constant 0 : i32
    %c0_i32_0 = arith.constant 0 : i32
    return %arg0, %c0_i32 : i32, i32
  }
  func.func @transform_3(%arg0: i32) -> (i32, i32) {
    %c0_i32 = arith.constant 0 : i32
    %c0_i32_0 = arith.constant 0 : i32
    %c0_i32_1 = arith.constant 0 : i32
    return %c0_i32, %c0_i32_0 : i32, i32
  }
  func.func @transform_4(%arg0: i32) -> (i32, i32) {
    %c0_i32 = arith.constant 0 : i32
    %c0_i32_0 = arith.constant 0 : i32
    %c0_i32_1 = arith.constant 0 : i32
    return %c0_i32, %c0_i32_0 : i32, i32
  }
  func.func @transform_5(%arg0: i32) -> (i32, i32, i32) {
    %c0_i32 = arith.constant 0 : i32
    %c0_i32_0 = arith.constant 0 : i32
    %c0_i32_1 = arith.constant 0 : i32
    %c0_i32_2 = arith.constant 0 : i32
    return %c0_i32, %c0_i32_0, %c0_i32_1 : i32, i32, i32
  }
  func.func @transform_6(%arg0: i32) -> (i32, i32, i32) {
    %c0_i32 = arith.constant 0 : i32
    %c0_i32_0 = arith.constant 0 : i32
    %c0_i32_1 = arith.constant 0 : i32
    %c0_i32_2 = arith.constant 0 : i32
    return %c0_i32, %c0_i32_0, %c0_i32_1 : i32, i32, i32
  }
  func.func @transform_7(%arg0: i32) -> (i32, i32, i32) {
    %c0_i32 = arith.constant 0 : i32
    %c0_i32_0 = arith.constant 0 : i32
    %c0_i32_1 = arith.constant 0 : i32
    %c0_i32_2 = arith.constant 0 : i32
    return %c0_i32, %c0_i32_0, %c0_i32_1 : i32, i32, i32
  }
  func.func @transform_8(%arg0: i32) -> (i32, i32, i32) {
    %c0_i32 = arith.constant 0 : i32
    %c0_i32_0 = arith.constant 0 : i32
    %c0_i32_1 = arith.constant 0 : i32
    %c0_i32_2 = arith.constant 0 : i32
    return %c0_i32, %c0_i32_0, %c0_i32_1 : i32, i32, i32
  }
  func.func @transform_9(%arg0: i32) -> (i32, i32, i32) {
    %c0_i32 = arith.constant 0 : i32
    %c0_i32_0 = arith.constant 0 : i32
    %c0_i32_1 = arith.constant 0 : i32
    %c0_i32_2 = arith.constant 0 : i32
    return %c0_i32, %c0_i32_0, %c0_i32_1 : i32, i32, i32
  }
  func.func @transform_10(%arg0: i32) -> (i32, i32, i32) {
    %c0_i32 = arith.constant 0 : i32
    %c0_i32_0 = arith.constant 0 : i32
    %c0_i32_1 = arith.constant 0 : i32
    %c0_i32_2 = arith.constant 0 : i32
    return %c0_i32, %c0_i32_0, %c0_i32_1 : i32, i32, i32
  }
  func.func @transform_11(%arg0: i32) -> (i32, i32, i32) {
    %c0_i32 = arith.constant 0 : i32
    %c0_i32_0 = arith.constant 0 : i32
    %c0_i32_1 = arith.constant 0 : i32
    %c0_i32_2 = arith.constant 0 : i32
    return %c0_i32, %c0_i32_0, %c0_i32_1 : i32, i32, i32
  }
  func.func @transform_12(%arg0: i32) -> (i32, i32, i32) {
    %c0_i32 = arith.constant 0 : i32
    %c0_i32_0 = arith.constant 0 : i32
    %c0_i32_1 = arith.constant 0 : i32
    %c0_i32_2 = arith.constant 0 : i32
    return %c0_i32, %c0_i32_0, %c0_i32_1 : i32, i32, i32
  }
  func.func @transform_13(%arg0: i32) -> (i32, i32, i32) {
    %c0_i32 = arith.constant 0 : i32
    %c0_i32_0 = arith.constant 0 : i32
    %c0_i32_1 = arith.constant 0 : i32
    %c0_i32_2 = arith.constant 0 : i32
    return %c0_i32, %c0_i32_0, %c0_i32_1 : i32, i32, i32
  }
  func.func @transform_14(%arg0: i32) -> (i32, i32, i32) {
    %c0_i32 = arith.constant 0 : i32
    %c0_i32_0 = arith.constant 0 : i32
    %c0_i32_1 = arith.constant 0 : i32
    %c0_i32_2 = arith.constant 0 : i32
    return %c0_i32, %c0_i32_0, %c0_i32_1 : i32, i32, i32
  }
  func.func @transform_15(%arg0: i32) -> (i32, i32, i32) {
    %c0_i32 = arith.constant 0 : i32
    %c0_i32_0 = arith.constant 0 : i32
    %c0_i32_1 = arith.constant 0 : i32
    %c0_i32_2 = arith.constant 0 : i32
    return %c0_i32, %c0_i32_0, %c0_i32_1 : i32, i32, i32
  }
  func.func @transform_16(%arg0: i32) -> (i32, i32, i32) {
    %c0_i32 = arith.constant 0 : i32
    %c0_i32_0 = arith.constant 0 : i32
    %c0_i32_1 = arith.constant 0 : i32
    %c0_i32_2 = arith.constant 0 : i32
    return %c0_i32, %c0_i32_0, %c0_i32_1 : i32, i32, i32
  }
  func.func @transform_17(%arg0: i32) -> (i32, i32, i32) {
    %c0_i32 = arith.constant 0 : i32
    %c0_i32_0 = arith.constant 0 : i32
    %c0_i32_1 = arith.constant 0 : i32
    return %arg0, %c0_i32, %c0_i32_0 : i32, i32, i32
  }
}

</mosaic_0001>

<bundles_post_ra>
// kernel: tpu_custom_call.1
= control target key start
LH: loop header
LB: loop body
LE: loop exit
PB: predicated region body
PF: predicated region fallthrough
CT: control target
= control target key end

     0   :  { %s6497_s0 = inlined_call_operand.vmem [shape: f32[16,128], index: 0, kind: input, shape index: {}]   ;;  %s6498_s1 = inlined_call_operand.vmem [shape: f32[2,1,8], index: 1, kind: input, shape index: {}]   ;;  %s6499_s2 = inlined_call_operand.vmem [shape: f32[16,1], index: 2, kind: input, shape index: {}]   ;;  %s6500_s3 = inlined_call_operand.hbm [shape: f32[1,128], index: 3, kind: input, shape index: {}]   ;;  %s6501_s4 = inlined_call_operand.hbm [shape: f32[1,128], index: 4, kind: input, shape index: {}]   ;;  %s6502_s5 = inlined_call_operand.hbm [shape: bf16[2,128,384], index: 5, kind: input, shape index: {}]   ;;  %s6503_s6 = inlined_call_operand.vmem [shape: f32[2,1,384], index: 6, kind: input, shape index: {}]   ;;  %s6504_s7 = inlined_call_operand.hbm [shape: bf16[2,128,128], index: 7, kind: input, shape index: {}]   ;;  %s6505_s8 = inlined_call_operand.vmem [shape: f32[2,1,128], index: 8, kind: input, shape index: {}]   ;;  %s6506_s9 = inlined_call_operand.vmem [shape: f32[2,1,128], index: 9, kind: input, shape index: {}]   ;;  %s6507_s10 = inlined_call_operand.vmem [shape: f32[2,1,128], index: 10, kind: input, shape index: {}]   ;;  %s6508_s11 = inlined_call_operand.hbm [shape: bf16[2,128,256], index: 11, kind: input, shape index: {}]   ;;  %s6509_s12 = inlined_call_operand.vmem [shape: f32[2,1,256], index: 12, kind: input, shape index: {}]   ;;  %s6510_s13 = inlined_call_operand.hbm [shape: bf16[2,256,128], index: 13, kind: input, shape index: {}]   ;;  %s6511_s14 = inlined_call_operand.vmem [shape: f32[2,1,128], index: 14, kind: input, shape index: {}]   ;;  %s6512_s15 = inlined_call_operand.vmem [shape: f32[2,1,128], index: 15, kind: input, shape index: {}]   ;;  %s6513_s16 = inlined_call_operand.vmem [shape: f32[2,1,128], index: 16, kind: input, shape index: {}]   ;;  %s6514_s17 = inlined_call_operand.hbm [shape: f32[2,1,128], index: 17, kind: output, shape index: {}]  }
   0x1   :  { %6530 = sst [smem:[#allocation27_spill]] %s6497_s0 }
   0x2   :  { %6531 = sst [smem:[#allocation28_spill]] %s6498_s1 }
   0x3   :  { %6532 = sst [smem:[#allocation29_spill]] %s6500_s3 }
   0x4   :  { %6533 = sst [smem:[#allocation30_spill]] %s6501_s4 }
   0x5   :  { %6534 = sst [smem:[#allocation31_spill]] %s6514_s17 }
   0x6   :  { %22 = vsyncpa [#allocation3], 0 }
   0x7   :  { %23 = vsyncpa [#allocation6], 0 }
   0x8   :  { %24 = vsyncpa [#allocation9], 0 }
   0x9   :  { %25 = vsyncpa [#allocation12], 0 }
   0xa   :  { %26 = vsyncpa [#allocation4], 0 }
   0xb   :  { %28 = vsyncpa [#allocation4 + $0x1], 0  ;;  %s5751_s24 = smov 0   ;;  %s5753_s25 = smov 0  }
   0xc   :  { %s5755_s26 = smov 0   ;;  %s5757_s27 = smov 0  }
   0xd LB: > { %6535 = sst [smem:[#allocation19_spill]] %s5626_s24  ;;  %s5772_s28 = sadd.s32 4294967295, %s5638_s27   ;;  %s5638_s27 = sphi %s5757_s27, %s6571_s27   ;;  %s5634_s26 = sphi %s5755_s26, %s6574_s26   ;;  %s5630_s25 = sphi %s5753_s25, %s6573_s25   ;;  %s5626_s24 = sphi %s5751_s24, %s6572_s24  }
   0xe   : > { %6536 = sst [smem:[#allocation20_spill]] %s5630_s25  ;;  %s4583_s29 = sadd.s32 4294967294, %s5638_s27  }
   0xf   : > { %6537 = sst [smem:[#allocation21_spill]] %s5634_s26  ;;  %s5776_s0 = sadd.s32 1, %s5638_s27  }
  0x10   : > { %6538 = sst [smem:[#allocation22_spill]] %s5638_s27  ;;  %s413_s30 = sadd.s32 1, %s5634_s26 }
  0x11   : > { %6539 = sst [smem:[#allocation23_spill]] %s5776_s0  ;;  %s410_s18 = ssub.s32 %s5638_s27, %s5776_s0 }
  0x12   : > { %p423_p0 = scmp.ne.s32.totalorder %s5634_s26, %s5630_s25  ;;  %p411_p1 = scmp.eq.s32.totalorder %s410_s18, 0 }
  0x13   : > { %p424_p2 = scmp.eq.s32.totalorder %s5772_s28, 1  ;;  %p429_p3 = scmp.ne.s32.totalorder %s5630_s25, %s5626_s24 }
  0x14   : > { %p430_p4 = scmp.eq.s32.totalorder %s4583_s29, 1  ;;  %p4584_p7 = scmp.ge.s32.totalorder %s5638_s27, 1 }
  0x15   : > { %s5787_s19 = scalar_select %p411_p1, %s5634_s26, %s413_s30  }
  0x16   : > { %p5789_p5 = por %p424_p2, %p423_p0  ;;  %p5793_p6 = por %p430_p4, %p429_p3 }
  0x17   : > { %6540 = sst [smem:[#allocation24_spill]] %s5787_s19  ;;  %p437_p8 = scmp.lt.s32.totalorder %s5638_s27, 3 }
  0x18   : > { %s6541_s1 = scalar_select %p5789_p5, 1, 0 }
  0x19   : > { %s6543_s20 = scalar_select %p5793_p6, 1, 0 }
  0x1a   : > { %6542 = sst [smem:[#allocation25_spill]] %s6541_s1  ;;  %p6522_p9 = scmp.eq.s32.totalorder %s5772_s28, 0 }
  0x1b   : > { %6544 = sst [smem:[#allocation26_spill]] %s6543_s20  ;;  %p5800_p10 = pnand %p4584_p7, %p437_p8 }
  0x1c   : > { %s5640_s22 = smov [#allocation5]   ;;  %s5641_s29 = smov [#allocation8]  }
  0x1d   : > { %s6545_s21 = scalar_select %p5800_p10, 1, 0 }
  0x1e   : > { %s461_s23 = sshll.u32 %s5640_s22, 4  ;;  %p5089_p11 = pneg %p5800_p10  ;;  %s462_s23 = int_to_ptr.vmem [resolvable:$true] %s461_s23 }
  0x1f   : > { %s487_s30 = sshll.u32 %s5641_s29, 4  ;;  %s5642_s19 = smov [#allocation2]   ;;  %s5812_s30 = int_to_ptr.vmem [resolvable:$true] %s487_s30 }
  0x20   : > { %p5808_p12 = pnand %p6522_p9, %p5089_p11  ;;  %s5814_s26 = sshll.u32 %s5642_s19, 4  ;;  %s451_s26 = int_to_ptr.vmem [resolvable:$true] %s5814_s26 }
  0x21   : > { %s6547_s4 = sld [smem:[#allocation30_spill]] }
  0x22   : > { %p5824_p0 = pneg %p5808_p12 }
  0x27   : > { %s5392_s22 = scalar_lea.hbm %s6547_s4, 16 }
  0x28   : > { %p5393_p13 = scmp.ne.s32.totalorder %s6547_s4, %s5392_s22  ;;  %p5399_p3 = scmp.lt.u32.totalorder %s5392_s22, %s6547_s4 }
  0x2a   : > { %p5395_p1 = pnand %p5824_p0, %p5393_p13 }
  0x2c   : > { %p5396_p2 = pneg %p5395_p1 }
  0x2e   : > { %p5401_p4 = pnand %p5399_p3, %p5396_p2 }
  0x30   : > { %5404 = shalt.err (!%p5401_p4)
}
  0x31   : > { %s5405_s0 = scalar_lea.vmem %s462_s23, 16  ;;  %s5412_s24 = scalar_lea.vmem %s462_s23, 32 }
  0x32   : > { %p5406_p7 = scmp.ne.s32.totalorder %s462_s23, %s5405_s0  ;;  %p5413_p9 = scmp.lt.s32.totalorder %s462_s23, %s462_s23 }
  0x33   : > { %p5414_p6 = scmp.lt.s32.totalorder %s5412_s24, %s5405_s0 }
  0x34   : > { %p5408_p8 = pnand %p5406_p7, %p5824_p0 }
  0x35   : > { %p5415_p5 = por %p5414_p6, %p5413_p9 }
  0x36   : > { %p5409_p11 = pneg %p5408_p8 }
  0x38   : > { %p5416_p10 = pnand %p5415_p5, %p5409_p11 }
  0x3a   : > { %5419 = shalt.err (!%p5416_p10)
}
  0x3b   : > { %5095 = dma.hbm_to_vmem [thread:$0]  (!%p5808_p12), %s6547_s4, 16, %s462_s23, [#allocation6]  }
  0x3c   : > { %s5420_s19 = scalar_lea.hbm %s6504_s7, 2048 }
  0x3d   : > { %p5421_p13 = scmp.ne.s32.totalorder %s6504_s7, %s5420_s19  ;;  %p5427_p5 = scmp.lt.u32.totalorder %s5420_s19, %s6504_s7 }
  0x3f   : > { %p5423_p1 = pnand %p5421_p13, %p5824_p0 }
  0x41   : > { %p5424_p6 = pneg %p5423_p1 }
  0x43   : > { %p5429_p9 = pnand %p5427_p5, %p5424_p6 }
  0x45   : > { %5432 = shalt.err (!%p5429_p9)
}
  0x46   : > { %s5433_s23 = scalar_lea.vmem %s5812_s30, 2048  ;;  %p5441_p4 = scmp.lt.s32.totalorder %s5812_s30, %s5812_s30 }
  0x47   : > { %p5434_p10 = scmp.ne.s32.totalorder %s5812_s30, %s5433_s23  ;;  %p5442_p7 = scmp.lt.s32.totalorder %s5433_s23, %s5433_s23 }
  0x49   : > { %p5436_p2 = pnand %p5434_p10, %p5824_p0  ;;  %p5443_p8 = por %p5442_p7, %p5441_p4 }
  0x4b   : > { %p5437_p3 = pneg %p5436_p2 }
  0x4d   : > { %p5444_p11 = pnand %p5443_p8, %p5437_p3 }
  0x4f   : > { %5447 = shalt.err (!%p5444_p11)
}
  0x50   : > { %s6528_s25 = smov 64   ;;  %s6529_s1 = smov 4  }
  0x51   : > { %5101 = dma.hbm_to_vmem [thread:$0]  (!%p5808_p12), %s6504_s7, 2048, %s5812_s30, [#allocation9], %s6528_s25, %s6528_s25, %s6529_s1  }
  0x52   : > { %s6549_s3 = sld [smem:[#allocation29_spill]] }
  0x58   : > { %s5448_s19 = scalar_lea.hbm %s6549_s3, 16 }
  0x59   : > { %p5449_p13 = scmp.ne.s32.totalorder %s6549_s3, %s5448_s19  ;;  %p5455_p5 = scmp.lt.u32.totalorder %s5448_s19, %s6549_s3 }
  0x5b   : > { %p5451_p1 = pnand %p5449_p13, %p5824_p0 }
  0x5d   : > { %p5452_p6 = pneg %p5451_p1 }
  0x5f   : > { %p5457_p9 = pnand %p5455_p5, %p5452_p6 }
  0x61   : > { %5460 = shalt.err (!%p5457_p9)
}
  0x62   : > { %s5461_s27 = scalar_lea.vmem %s451_s26, 16  ;;  %s5468_s30 = scalar_lea.vmem %s451_s26, 32 }
  0x63   : > { %p5462_p10 = scmp.ne.s32.totalorder %s451_s26, %s5461_s27  ;;  %p5469_p4 = scmp.lt.s32.totalorder %s451_s26, %s451_s26 }
  0x64   : > { %p5470_p7 = scmp.lt.s32.totalorder %s5468_s30, %s5461_s27 }
  0x65   : > { %p5464_p2 = pnand %p5462_p10, %p5824_p0 }
  0x66   : > { %p5471_p8 = por %p5470_p7, %p5469_p4 }
  0x67   : > { %p5465_p3 = pneg %p5464_p2 }
  0x69   : > { %p5472_p11 = pnand %p5471_p8, %p5465_p3 }
  0x6b   : > { %5475 = shalt.err (!%p5472_p11)
}
  0x6c   : > { %5092 = dma.hbm_to_vmem [thread:$0]  (!%p5808_p12), %s6549_s3, 16, %s451_s26, [#allocation3]  }
  0x6d   : > { %s5645_s4 = smov [#allocation7]   ;;  %s5476_s24 = scalar_lea.hbm %s6502_s5, 6144 }
  0x6e   : > { %s471_s22 = sshll.u32 %s5645_s4, 4  ;;  %p5477_p13 = scmp.ne.s32.totalorder %s6502_s5, %s5476_s24  ;;  %s472_s22 = int_to_ptr.vmem [resolvable:$true] %s471_s22 }
  0x6f   : > { %p5483_p5 = scmp.lt.u32.totalorder %s5476_s24, %s6502_s5 }
  0x70   : > { %p5479_p1 = pnand %p5477_p13, %p5824_p0 }
  0x72   : > { %p5480_p6 = pneg %p5479_p1 }
  0x74   : > { %p5485_p9 = pnand %p5483_p5, %p5480_p6 }
  0x76   : > { %5488 = shalt.err (!%p5485_p9)
}
  0x77   : > { %s5489_s26 = scalar_lea.vmem %s472_s22, 6144  ;;  %p5497_p4 = scmp.lt.s32.totalorder %s472_s22, %s472_s22 }
  0x78   : > { %p5490_p10 = scmp.ne.s32.totalorder %s472_s22, %s5489_s26  ;;  %p5498_p7 = scmp.lt.s32.totalorder %s5489_s26, %s5489_s26 }
  0x7a   : > { %p5492_p2 = pnand %p5490_p10, %p5824_p0  ;;  %p5499_p8 = por %p5498_p7, %p5497_p4 }
  0x7c   : > { %p5493_p3 = pneg %p5492_p2 }
  0x7e   : > { %p5500_p11 = pnand %p5499_p8, %p5493_p3 }
  0x80   : > { %5503 = shalt.err (!%p5500_p11)
}
  0x81   : > { %s5646_s25 = smov 192   ;;  %s5647_s20 = smov 12  }
  0x82   : > { %5098 = dma.hbm_to_vmem [thread:$0]  (!%p5808_p12), %s6502_s5, 6144, %s472_s22, [#allocation6], %s5646_s25, %s5646_s25, %s5647_s20  }
  0x83   : > { %s5648_s19 = smov [#allocation10]   ;;  %s5504_s27 = scalar_lea.hbm %s6508_s11, 4096 }
  0x84   : > { %s509_s0 = sshll.u32 %s5648_s19, 4  ;;  %p5505_p13 = scmp.ne.s32.totalorder %s6508_s11, %s5504_s27  ;;  %s510_s0 = int_to_ptr.vmem [resolvable:$true] %s509_s0 }
  0x85   : > { %p5511_p5 = scmp.lt.u32.totalorder %s5504_s27, %s6508_s11 }
  0x86   : > { %p5507_p1 = pnand %p5505_p13, %p5824_p0 }
  0x88   : > { %p5508_p6 = pneg %p5507_p1 }
  0x8a   : > { %p5513_p9 = pnand %p5511_p5, %p5508_p6 }
  0x8c   : > { %5516 = shalt.err (!%p5513_p9)
}
  0x8d   : > { %s5517_s22 = scalar_lea.vmem %s510_s0, 4096  ;;  %p5525_p4 = scmp.lt.s32.totalorder %s510_s0, %s510_s0 }
  0x8e   : > { %p5518_p10 = scmp.ne.s32.totalorder %s510_s0, %s5517_s22  ;;  %p5526_p7 = scmp.lt.s32.totalorder %s5517_s22, %s5517_s22 }
  0x90   : > { %p5520_p2 = pnand %p5518_p10, %p5824_p0  ;;  %p5527_p8 = por %p5526_p7, %p5525_p4 }
  0x92   : > { %p5521_p3 = pneg %p5520_p2 }
  0x94   : > { %p5528_p11 = pnand %p5527_p8, %p5521_p3 }
  0x96   : > { %5531 = shalt.err (!%p5528_p11)
}
  0x97   : > { %s5649_s25 = smov 128   ;;  %s5650_s20 = smov 8  }
  0x98   : > { %5104 = dma.hbm_to_vmem [thread:$0]  (!%p5808_p12), %s6508_s11, 4096, %s510_s0, [#allocation9], %s5649_s25, %s5649_s25, %s5650_s20  }
  0x99   : > { %s5651_s17 = smov [#allocation11]   ;;  %s5532_s23 = scalar_lea.hbm %s6510_s13, 4096 }
  0x9a   : > { %s525_s4 = sshll.u32 %s5651_s17, 4  ;;  %p5533_p13 = scmp.ne.s32.totalorder %s6510_s13, %s5532_s23  ;;  %s526_s4 = int_to_ptr.vmem [resolvable:$true] %s525_s4 }
  0x9b   : > { %p5539_p5 = scmp.lt.u32.totalorder %s5532_s23, %s6510_s13 }
  0x9c   : > { %p5535_p1 = pnand %p5533_p13, %p5824_p0 }
  0x9e   : > { %p5536_p6 = pneg %p5535_p1 }
  0xa0   : > { %p5541_p9 = pnand %p5539_p5, %p5536_p6 }
  0xa2   : > { %5544 = shalt.err (!%p5541_p9)
}
  0xa3   : > { %s5545_s0 = scalar_lea.vmem %s526_s4, 4096  ;;  %p5553_p4 = scmp.lt.s32.totalorder %s526_s4, %s526_s4 }
  0xa4   : > { %p5546_p10 = scmp.ne.s32.totalorder %s526_s4, %s5545_s0  ;;  %p5554_p7 = scmp.lt.s32.totalorder %s5545_s0, %s5545_s0 }
  0xa6   : > { %p5548_p2 = pnand %p5546_p10, %p5824_p0  ;;  %p5555_p8 = por %p5554_p7, %p5553_p4 }
  0xa8   : > { %p5549_p3 = pneg %p5548_p2 }
  0xaa   : > { %p5556_p11 = pnand %p5555_p8, %p5549_p3 }
  0xac   : > { %5559 = shalt.err (!%p5556_p11)
}
  0xad   : > { %s6550_s25 = smov 4   ;;  %s6551_s20 = smov 64  }
  0xae   : > { %5107 = dma.hbm_to_vmem [thread:$0]  (!%p5808_p12), %s6510_s13, 4096, %s526_s4, [#allocation12], %s6551_s20, %s6551_s20, %s6550_s25  }
  0xaf   : > { %p6552_p13 = scmp.ne.s32.totalorder %s6545_s21, 0 }
  0xb0   : > { %p6553_p0 = scmp.eq.s32.totalorder (!%p6552_p13), %s5772_s28, 0 }
  0xb1   : > { %570 = sbr.rel (%p6552_p13) target bundleno = 5780 (0x1694), region = 88 }
  0xb8   : > { %5605 = dma.done.wait (%p6553_p0), [#allocation3], 16   ;;  %p6554_p1 = pmov %p6553_p0 }
  0xb9   : > { %p6555_p6 = pmov %p6553_p0 }
  0xba   : > { %5607 = vsyncadd (%p6554_p1), [#allocation3], 4294967280 }
  0xbb   : > { %5609 = dma.done.wait (%p6555_p6), [#allocation6], 6160   ;;  %p6556_p5 = pmov %p6553_p0 }
  0xbc   : > { %p6557_p9 = pmov %p6553_p0 }
  0xbd   : > { %5611 = vsyncadd (%p6556_p5), [#allocation6], 4294961136 }
  0xbe   : > { %5613 = dma.done.wait (%p6557_p9), [#allocation9], 6144   ;;  %p6558_p12 = pmov %p6553_p0 }
  0xbf   : > { %p6559_p10 = pmov %p6553_p0 }
  0xc0   : > { %5615 = vsyncadd (%p6558_p12), [#allocation9], 4294961152 }
  0xc1   : > { %5617 = dma.done.wait (%p6559_p10), [#allocation12], 4096   ;;  %p6560_p2 = pmov %p6553_p0 }
  0xc2   : > { %p647_p3 = scmp.lt.s32.totalorder %s5772_s28, 1  ;;  %s6561_s4 = sld [smem:[#allocation27_spill]]  ;;  %v5179_v1 = vld [vmem:[#allocation7 + $0x4] ss:$12 sps:$4 sm:$0xff]   ;;  %v5181_v2 = vld [vmem:[#allocation7] ss:$12 sps:$4 sm:$0xff]   ;;  %v724_v41 = vlaneseq }
  0xc3   : > { %5619 = vsyncadd (%p6560_p2), [#allocation12], 4294963200  ;;  %v5652_v3 = vmov 0.0   ;;  %v5182_v4 = vld [vmem:[#allocation7 + $0x8] ss:$12 sps:$4 sm:$0xff]   ;;  %867 = vmatprep.subr.bf16.mxu0 %v5179_v1  ;;  %v5653_v25 = vmov 0  }
  0xc4   : > { %s5962_s21 = scalar_select %p647_p3, %s5772_s28, 1  ;;  %4887 = vmatprep.subr.bf16.mxu1 %v5652_v3  ;;  %v5183_v5 = vld [vmem:[#allocation7 + $0x1c] ss:$12 sps:$4 sm:$0xff]   ;;  %v5185_v6 = vld [vmem:[#allocation7 + $0x18] ss:$12 sps:$4 sm:$0xff]   ;;  %868 = vmatpush1.bf16.msra.mxu0 %v5181_v2  ;;  %vm5654_vm0 = vmmov 0  }
  0xc5   : > { %v5186_v7 = vld [vmem:[#allocation7 + $0x20] ss:$12 sps:$4 sm:$0xff]   ;;  %4888 = vmatpush3.bf16.msra.mxu1 %v5182_v4  ;;  %869 = vmatprep.subr.bf16.mxu0 %v5183_v5  ;;  %v5189_v13 = vld [vmem:[#allocation7 + $0x30] ss:$12 sps:$4 sm:$0xff]   ;;  %v5190_v14 = vld [vmem:[#allocation7 + $0x38] ss:$12 sps:$4 sm:$0xff]  }
  0xc6   : > { %s4599_s18 = sshll.u32 %s5962_s21, 3  ;;  %v5187_v8 = vld [vmem:[#allocation7 + $0x34] ss:$12 sps:$4 sm:$0xff]   ;;  %4889 = vmatprep.subr.bf16.mxu1 %v5652_v3  ;;  %v5191_v15 = vld [vmem:[#allocation7 + $0x4c] ss:$12 sps:$4 sm:$0xff]   ;;  %899 = vmatprep.mubr.bf16.mxu0 %v5653_v25  ;;  %v5993_v42 = vshrl.u32 %v724_v41, 7 }
  0xc7   : > { %v5193_v16 = vld [vmem:[#allocation7 + $0x48] ss:$12 sps:$4 sm:$0xff]   ;;  %v5194_v17 = vld [vmem:[#allocation7 + $0x50] ss:$12 sps:$4 sm:$0xff]   ;;  %v5197_v19 = vld [vmem:[#allocation7 + $0x60] ss:$12 sps:$4 sm:$0xff]   ;;  %4903 = vmatprep.mubr.msk.bf16.mxu1 %vm5654_vm0, %v5652_v3  ;;  %5177 = vset.pattern.permute.xlu0 %v5653_v25  ;;  %s657_s29 = scalar_lea.vmem %s6499_s2, %s4599_s18 }
  0xc8   : > { %s650_s19 = scalar_lea.vmem %s6561_s4, %s4599_s18  ;;  %870 = vmatpush1.bf16.msra.mxu0 %v5185_v6  ;;  %v5195_v18 = vld [vmem:[#allocation7 + $0x64] ss:$12 sps:$4 sm:$0xff]   ;;  %v5198_v20 = vld [vmem:[#allocation7 + $0x68] ss:$12 sps:$4 sm:$0xff]   ;;  %v5202_v23 = vld [vmem:[#allocation7 + $0x80] ss:$12 sps:$4 sm:$0xff]   ;;  %5178 = vset.pattern.permute.xlu1 %v5653_v25 }
  0xc9   : > { %v659_v0 = vld [vmem:[%s650_s19] sm:$0xff]  ;;  %4890 = vmatpush3.bf16.msra.mxu1 %v5186_v7  ;;  %871 = vmatprep.subr.bf16.mxu0 %v5187_v8  ;;  %v5201_v22 = vld [vmem:[#allocation7 + $0x78] ss:$12 sps:$4 sm:$0xff]   ;;  %v5209_v29 = vld [vmem:[#allocation7 + $0xa8] ss:$12 sps:$4 sm:$0xff]   ;;  %v5996_v43 = vsub.s32 1, %v5993_v42 }
  0xca   : > { %662 = vadd.xlane.f32.xlu0 %v659_v0  ;;  %4891 = vmatprep.subr.bf16.mxu1 %v5652_v3  ;;  %v5199_v21 = vld [vmem:[#allocation7 + $0x7c] ss:$12 sps:$4 sm:$0xff]   ;;  %v5203_v24 = vld [vmem:[#allocation7 + $0x94] ss:$12 sps:$4 sm:$0xff]   ;;  %v5206_v27 = vld [vmem:[#allocation7 + $0x98] ss:$12 sps:$4 sm:$0xff]  }
  0xcb   : > { %v5205_v26 = vld [vmem:[#allocation7 + $0x90] ss:$12 sps:$4 sm:$0xff]   ;;  %v5207_v28 = vld [vmem:[#allocation7 + $0xac] ss:$12 sps:$4 sm:$0xff]   ;;  %v6006_v46 = vsub.s32 0, %v5993_v42  ;;  %s5655_s27 = smov 32  }
  0xcc   : > { %872 = vmatpush1.bf16.msra.mxu0 %v5189_v13  ;;  %v5210_v30 = vld [vmem:[#allocation7 + $0xb0] ss:$12 sps:$4 sm:$0xff]   ;;  %s5656_s30 = smov 96   ;;  %s5657_s26 = smov 64   ;;  %v5658_v60 = vmov 1983009808  }
  0xcd   : > { %4892 = vmatpush3.bf16.msra.mxu1 %v5190_v14  ;;  %873 = vmatprep.subr.bf16.mxu0 %v5191_v15  ;;  %v4601_v35 = vld [vmem:[#allocation2] ss:$0 sm:$0xff]  ;;  %v4602_v37 = vld [vmem:[#allocation5] ss:$0 sm:$0xff]  ;;  %v959_v61 = vunpack.c.l.s4 %v5658_v60  ;;  %v5659_v62 = vmov 1934713408  }
  0xce   : > { %4893 = vmatprep.subr.bf16.mxu1 %v5652_v3  ;;  %v6001_v44 = vld [vmem:[%s6503_s6] sm:$0x7]  ;;  %v976_v63 = vunpack.c.l.s4 %v5659_v62  ;;  %vm1461_vm1 = vcmask 261120   ;;  %s6562_s25 = sld [smem:[#allocation28_spill]]  ;;  %vm1646_vm2 = vcmask 64512   ;;  %vm1698_vm3 = vcmask 1043456  }
  0xcf   : > { %v731_v45 = vrot.slane %v6001_v44, %v5996_v43  ;;  %v727_v56 = vrot.slane %v6001_v44, %v6006_v46  ;;  %vm2029_vm4 = vcmask 523264   ;;  %vm2031_vm5 = vcmask 785408   ;;  %s6565_s0 = sld [smem:[#allocation31_spill]] }
  0xd0   : > { %874 = vmatpush1.bf16.msra.mxu0 %v5193_v16  ;;  %v977_v1 = vunpack.c.0.s8 %v976_v63  ;;  %vm4417_vm6 = vcmask 7168  }
  0xd1   : > { %4894 = vmatpush3.bf16.msra.mxu1 %v5194_v17  ;;  %875 = vmatprep.subr.bf16.mxu0 %v5195_v18 }
  0xd2   : > { %4895 = vmatprep.subr.bf16.mxu1 %v5652_v3  ;;  %v6022_v6 = vsub.s32 %v977_v1, %v5993_v42 }
  0xd4   : > { %876 = vmatpush1.bf16.msra.mxu0 %v5197_v19  ;;  %s6088_s20 = scalar_lea.vmem %s6562_s25, %s5962_s21  ;;  %s6563_s21 = sld [smem:[#allocation20_spill]] }
  0xd5   : > { %4896 = vmatpush3.bf16.msra.mxu1 %v5198_v20  ;;  %877 = vmatprep.subr.bf16.mxu0 %v5199_v21 }
  0xd6   : > { %4897 = vmatprep.subr.bf16.mxu1 %v5652_v3 }
  0xd8   : > { %878 = vmatpush1.bf16.msra.mxu0 %v5201_v22 }
  0xd9   : > { %4898 = vmatpush3.bf16.msra.mxu1 %v5202_v23  ;;  %879 = vmatprep.subr.bf16.mxu0 %v5203_v24 }
  0xda   : > { %4899 = vmatprep.subr.bf16.mxu1 %v5652_v3  ;;  %s645_s19 = sand.u32 1, %s6563_s21  }
  0xdb   : > { %s4435_s3 = scalar_lea.sflag [#allocation4], %s645_s19 }
  0xdc   : > { %880 = vmatpush1.bf16.msra.mxu0 %v5205_v26 }
  0xdd   : > { %4900 = vmatpush3.bf16.msra.mxu1 %v5206_v27  ;;  %881 = vmatprep.subr.bf16.mxu0 %v5207_v28 }
  0xde   : > { %4901 = vmatprep.subr.bf16.mxu1 %v5652_v3 }
  0xe0   : > { %882 = vmatpush1.bf16.msra.mxu0 %v5209_v29 }
  0xe1   : > { %4902 = vmatpush3.bf16.msra.mxu1 %v5210_v30  ;;  %4931 = vmatprep.subr.bf16.mxu0 %v5652_v3 }
  0xe2   : > { %4907 = vmatprep.subr.bf16.mxu1 %v5652_v3 }
 0x157   : > { %v663_v9 = vpop.xlane.xlu0 %662 }
 0x158   : > { %v665_v10 = vmul.f32 0.0078125, %v663_v9 }
 0x15a   : > { %v666_v11 = vsub.f32 %v659_v0, %v665_v10  ;;  %v960_v0 = vunpack.c.0.s8 %v959_v61 }
 0x15c   : > { %v667_v12 = vmul.f32 %v666_v11, %v666_v11  ;;  %v6019_v2 = vsub.s32 %v960_v0, %v5993_v42 }
 0x15e   : > { %668 = vadd.xlane.f32.xlu0 %v667_v12 }
 0x1eb   : > { %v669_v31 = vpop.xlane.xlu0 %668 }
 0x1ec   : > { %v670_v32 = vmul.f32 0.0078125, %v669_v31 }
 0x1ee   : > { %v671_v33 = vadd.f32 1e-12, %v670_v32 }
 0x1f0   : > { %5339 = vrsqrt.f32 %v671_v33 }
 0x1fa   : > { %v5340_v34 = vpop.eup %5339 }
 0x1fb   : > { %v673_v36 = vmul.f32 %v5340_v34, %v666_v11 }
 0x1fd   : > { %v680_v38 = vmul.f32 %v4601_v35, %v673_v36 }
 0x1ff   : > { %v5985_v39 = vadd.f32 %v4602_v37, %v680_v38 }
 0x201   : > { %v689_v40 = vpack.c.bf16 %v5985_v39, %v5985_v39 }
 0x203   : > { %900 = vmatmul.mubr.bf16.vlgmr.msra.gmra.mrb[0].mxu0 %v689_v40  ;;  %4904 = vmatmul.mubr.bf16.vlgmr.msra.gmra.mrb[0].mxu1 %v689_v40 }
 0x204   : > { %4909 = vmatprep.mubr.msk.bf16.mxu1 %vm5654_vm0, %v5652_v3  ;;  %4933 = vmatprep.mubr.msk.bf16.mxu0 %vm5654_vm0, %v5652_v3 }
 0x2d6   : > { %v901_v47 = vpop.f32.mrb[0].mxu0  ;;  %v6008_v48 = vpop.f32.mrb[0].mxu1 }
 0x2d7   : > { %v903_v49 = vpop.f32.mrb[1].mxu0  ;;  %v4905_v50 = vpop.f32.mrb[1].mxu1  ;;  %v902_v58 = vadd.f32 %v901_v47, %v727_v56 }
 0x2d8   : > { %v904_v51 = vadd.f32 %v903_v49, %v731_v45  ;;  %v905_v52 = vpop.f32.mrb[2].mxu0  ;;  %v945_v53 = vpop.f32.mrb[2].mxu1 }
 0x2d9   : > { %v906_v54 = vpop.f32.mrb[3].mxu0  ;;  %v4906_v55 = vpop.f32.mrb[3].mxu1  ;;  %v948_v59 = vpack.c.bf16 %v902_v58, %v902_v58 }
 0x2da   : > { %v949_v57 = vpack.c.bf16 %v904_v51, %v904_v51 }
 0x2db   : > { %v964_v27 = vrot.slane %v948_v59, %v6019_v2 }
 0x2dc   : > { %1124 = vrot.lane.b32.xlu0 %v949_v57, %s5655_s27  ;;  %1120 = vrot.lane.b32.xlu1 %v949_v57, %s5656_s30  ;;  %v1132_v15 = vrot.slane %v949_v57, %v6019_v2 }
 0x2e0   : > { %1122 = vrot.lane.b32.xlu1 %v949_v57, %s5657_s26 }
 0x2e4   : > { %952 = vrot.lane.b32.xlu1 %v948_v59, %s5656_s30 }
 0x2e8   : > { %954 = vrot.lane.b32.xlu1 %v948_v59, %s5657_s26 }
 0x2ec   : > { %956 = vrot.lane.b32.xlu1 %v948_v59, %s5655_s27 }
 0x34e   : > { %v1125_v4 = vpop.permute.xlu0 %1124  ;;  %v1121_v5 = vpop.permute.xlu1 %1120 }
 0x34f   : > { %v1174_v7 = vrot.slane %v1125_v4, %v6019_v2  ;;  %v1166_v8 = vrot.slane %v1121_v5, %v6019_v2 }
 0x351   : > { %v1175_v9 = vcombine.low %v1166_v8, %v1174_v7  ;;  %v1176_v10 = vcombine.high %v1166_v8, %v1174_v7 }
 0x352   : > { %v1123_v11 = vpop.permute.xlu1 %1122 }
 0x353   : > { %v1183_v12 = vrot.slane %v1175_v9, %v6022_v6  ;;  %v1190_v13 = vrot.slane %v1176_v10, %v6022_v6  ;;  %v1140_v14 = vrot.slane %v1123_v11, %v6019_v2 }
 0x355   : > { %v1191_v16 = vcombine.high %v1183_v12, %v5653_v25  ;;  %v1141_v17 = vcombine.low %v1132_v15, %v1140_v14  ;;  %v1142_v18 = vcombine.high %v1132_v15, %v1140_v14  ;;  %v1192_v20 = vcombine.high %v1190_v13, %v5653_v25 }
 0x356   : > { %v953_v19 = vpop.permute.xlu1 %952  ;;  %v1198_v23 = vshrl.u32 %v1183_v12, 16  ;;  %v1214_v26 = vshrl.u32 %v1190_v13, 16 }
 0x357   : > { %v1149_v21 = vrot.slane %v1141_v17, %v6022_v6  ;;  %v1156_v22 = vrot.slane %v1142_v18, %v6022_v6  ;;  %v1206_v24 = vshrl.u32 %v1191_v16, 16  ;;  %v1222_v33 = vshrl.u32 %v1192_v20, 16 }
 0x358   : > { %v998_v58 = vrot.slane %v953_v19, %v6019_v2 }
 0x359   : > { %v1157_v28 = vcombine.high %v1149_v21, %v5653_v25  ;;  %v1158_v29 = vcombine.high %v1156_v22, %v5653_v25  ;;  %v1195_v30 = vpack.i.b16 %v1183_v12, %v1149_v21  ;;  %v1197_v31 = vshrl.u32 %v1149_v21, 16 }
 0x35a   : > { %v955_v32 = vpop.permute.xlu1 %954  ;;  %v1211_v34 = vpack.i.b16 %v1190_v13, %v1156_v22  ;;  %v1213_v35 = vshrl.u32 %v1156_v22, 16 }
 0x35b   : > { %v972_v36 = vrot.slane %v955_v32, %v6019_v2  ;;  %v1199_v37 = vpack.i.b16 %v1198_v23, %v1197_v31  ;;  %v1203_v38 = vpack.i.b16 %v1191_v16, %v1157_v28  ;;  %v1205_v40 = vshrl.u32 %v1157_v28, 16 }
 0x35c   : > { %v1219_v41 = vpack.i.b16 %v1192_v20, %v1158_v29  ;;  %v1215_v45 = vpack.i.b16 %v1214_v26, %v1213_v35  ;;  %v1221_v47 = vshrl.u32 %v1158_v29, 16  ;;  %v1225_v49 = vcombine.low %v1195_v30, %v1211_v34 }
 0x35d   : > { %v973_v50 = vcombine.low %v964_v27, %v972_v36  ;;  %v1207_v51 = vpack.i.b16 %v1206_v24, %v1205_v40  ;;  %v974_v53 = vcombine.high %v964_v27, %v972_v36 }
 0x35e   : > { %v1233_v52 = vcombine.low %v1203_v38, %v1219_v41  ;;  %v957_v54 = vpop.permute.xlu1 %956  ;;  %v1223_v55 = vpack.i.b16 %v1222_v33, %v1221_v47  ;;  %v1250_v56 = vcombine.low %v1199_v37, %v1215_v45  ;;  %v1232_v62 = vrot.slane %v1225_v49, %v6019_v2 }
 0x35f   : > { %v981_v57 = vrot.slane %v973_v50, %v6022_v6  ;;  %v988_v59 = vrot.slane %v974_v53, %v6022_v6  ;;  %v1006_v60 = vrot.slane %v957_v54, %v6019_v2 }
 0x360   : > { %v1240_v61 = vrot.slane %v1233_v52, %v6019_v2  ;;  %v1258_v63 = vcombine.low %v1207_v51, %v1223_v55  ;;  %v1257_v8 = vrot.slane %v1250_v56, %v6019_v2 }
 0x361   : > { %v989_v0 = vcombine.high %v981_v57, %v5653_v25  ;;  %v990_v1 = vcombine.high %v988_v59, %v5653_v25  ;;  %v1007_v4 = vcombine.low %v998_v58, %v1006_v60  ;;  %v1008_v5 = vcombine.high %v998_v58, %v1006_v60 }
 0x362   : > { %v1241_v7 = vcombine.low %v1232_v62, %v1240_v61  ;;  %v1265_v9 = vrot.slane %v1258_v63, %v6019_v2  ;;  %v1029_v10 = vshrl.u32 %v981_v57, 16  ;;  %v1045_v14 = vshrl.u32 %v988_v59, 16 }
 0x363   : > { %v1015_v11 = vrot.slane %v1007_v4, %v6022_v6  ;;  %v1022_v12 = vrot.slane %v1008_v5, %v6022_v6  ;;  %v1037_v13 = vshrl.u32 %v989_v0, 16  ;;  %v1053_v15 = vshrl.u32 %v990_v1, 16 }
 0x364   : > { %v1266_v16 = vcombine.low %v1257_v8, %v1265_v9  ;;  %v1248_v23 = vrot.slane %v1241_v7, %v6022_v6 }
 0x365   : > { %v1023_v17 = vcombine.high %v1015_v11, %v5653_v25  ;;  %v1024_v18 = vcombine.high %v1022_v12, %v5653_v25  ;;  %v1027_v19 = vpack.i.b16 %v1015_v11, %v981_v57  ;;  %v1030_v20 = vshrl.u32 %v1015_v11, 16 }
 0x366   : > { %v1043_v21 = vpack.i.b16 %v1022_v12, %v988_v59  ;;  %v1046_v22 = vshrl.u32 %v1022_v12, 16  ;;  %v1273_v24 = vrot.slane %v1266_v16, %v6022_v6  ;;  %v1278_v53 = vshrl.u32 %v1248_v23, 16 }
 0x367   : > { %v1031_v26 = vpack.i.b16 %v1030_v20, %v1029_v10  ;;  %v1035_v27 = vpack.i.b16 %v1023_v17, %v989_v0  ;;  %v1038_v28 = vshrl.u32 %v1023_v17, 16  ;;  %v1051_v29 = vpack.i.b16 %v1024_v18, %v990_v1 }
 0x368   : > { %v1047_v30 = vpack.i.b16 %v1046_v22, %v1045_v14  ;;  %v1054_v31 = vshrl.u32 %v1024_v18, 16  ;;  %v1057_v32 = vcombine.low %v1027_v19, %v1043_v21  ;;  %v1277_v33 = vpack.i.b16 %v1273_v24, %v1248_v23 }
 0x369   : > { %v1039_v34 = vpack.i.b16 %v1038_v28, %v1037_v13  ;;  %v1065_v35 = vcombine.low %v1035_v27, %v1051_v29  ;;  %v1279_v51 = vshrl.u32 %v1273_v24, 16  ;;  %v1274_v59 = vcombine.high %v1273_v24, %v5653_v25 }
 0x36a   : > { %v1055_v36 = vpack.i.b16 %v1054_v31, %v1053_v15  ;;  %v1082_v37 = vcombine.low %v1031_v26, %v1047_v30  ;;  %v1466_v38 = vsel %vm1461_vm1, %v1277_v33, 0  ;;  %v1064_v41 = vrot.slane %v1057_v32, %v6019_v2  ;;  %v4627_v15 = vld [vmem:[%s6088_s20] ss:$0 sm:$0xff] }
 0x36b   : > { %v1072_v40 = vrot.slane %v1065_v35, %v6019_v2  ;;  %4908 = vmatpush3.bf16.xpose.msra.mxu1 %v1466_v38  ;;  %v1280_v56 = vpack.i.b16 %v1279_v51, %v1278_v53  ;;  %v1249_v61 = vcombine.high %v1248_v23, %v5653_v25  ;;  %v1285_v4 = vshrl.u32 %v1274_v59, 16 }
 0x36c   : > { %v1090_v45 = vcombine.low %v1039_v34, %v1055_v36  ;;  %4913 = vmatprep.subr.bf16.mxu1 %v5652_v3  ;;  %v1089_v49 = vrot.slane %v1082_v37, %v6019_v2 }
 0x36d   : > { %v1073_v47 = vcombine.low %v1064_v41, %v1072_v40  ;;  %v1512_v58 = vsel %vm1461_vm1, %v1280_v56, 0  ;;  %v1283_v63 = vpack.i.b16 %v1274_v59, %v1249_v61  ;;  %v1284_v7 = vshrl.u32 %v1249_v61, 16 }
 0x36e   : > { %v1097_v50 = vrot.slane %v1090_v45, %v6019_v2  ;;  %v734_v45 = vsub.s32 2, %v5993_v42 }
 0x36f   : > { %v1080_v54 = vrot.slane %v1073_v47, %v6022_v6  ;;  %v1558_v1 = vsel %vm1461_vm1, %v1283_v63, 0  ;;  %v1286_v9 = vpack.i.b16 %v1285_v4, %v1284_v7 }
 0x370   : > { %v1098_v52 = vcombine.low %v1089_v49, %v1097_v50  ;;  %v735_v47 = vrot.slane %v6001_v44, %v734_v45 }
 0x371   : > { %v1110_v62 = vshrl.u32 %v1080_v54, 16  ;;  %v1081_v8 = vcombine.high %v1080_v54, %v5653_v25  ;;  %v1604_v11 = vsel %vm1461_vm1, %v1286_v9, 0 }
 0x372   : > { %v1105_v55 = vrot.slane %v1098_v52, %v6022_v6  ;;  %v943_v49 = vadd.f32 %v6008_v48, %v735_v47 }
 0x373   : > { %v1116_v13 = vshrl.u32 %v1081_v8, 16 }
 0x374   : > { %v1109_v57 = vpack.i.b16 %v1105_v55, %v1080_v54  ;;  %v1111_v60 = vshrl.u32 %v1105_v55, 16  ;;  %v1106_v5 = vcombine.high %v1105_v55, %v5653_v25  ;;  %v950_v50 = vpack.c.bf16 %v943_v49, %v943_v49 }
 0x376   : > { %4910 = vmatmul.mubr.msk.bf16.vlgmr.msra.gmra.mrb[4].mxu1 %vm1461_vm1, %v1109_v57  ;;  %v1112_v0 = vpack.i.b16 %v1111_v60, %v1110_v62  ;;  %v1115_v10 = vpack.i.b16 %v1106_v5, %v1081_v8  ;;  %v1117_v12 = vshrl.u32 %v1106_v5, 16 }
 0x377   : > { %4914 = vmatpush3.bf16.xpose.msra.mxu1 %v1512_v58  ;;  %4915 = vmatprep.mubr.msk.bf16.mxu1 %vm5654_vm0, %v5652_v3 }
 0x378   : > { %4919 = vmatprep.subr.bf16.mxu1 %v5652_v3  ;;  %v1118_v14 = vpack.i.b16 %v1117_v12, %v1116_v13 }
 0x37e   : > { %4916 = vmatmul.mubr.msk.bf16.vlgmr.msra.gmra.mrb[8].mxu1 %vm1461_vm1, %v1112_v0 }
 0x37f   : > { %4920 = vmatpush3.bf16.xpose.msra.mxu1 %v1558_v1  ;;  %4921 = vmatprep.mubr.msk.bf16.mxu1 %vm5654_vm0, %v5652_v3 }
 0x380   : > { %4925 = vmatprep.subr.bf16.mxu1 %v5652_v3 }
 0x386   : > { %4922 = vmatmul.mubr.msk.bf16.vlgmr.msra.gmra.mrb[12].mxu1 %vm1461_vm1, %v1115_v10  ;;  %v1300_v10 = vrot.slane %v950_v50, %v6019_v2 }
 0x387   : > { %4926 = vmatpush3.bf16.xpose.msra.mxu1 %v1604_v11  ;;  %4927 = vmatprep.mubr.msk.bf16.mxu1 %vm5654_vm0, %v5652_v3 }
 0x388   : > { %4937 = vmatprep.subr.bf16.mxu1 %v5652_v3 }
 0x38e   : > { %4928 = vmatmul.mubr.msk.bf16.vlgmr.msra.gmra.mrb[16].mxu1 %vm1461_vm1, %v1118_v14 }
 0x38f   : > { %4939 = vmatprep.mubr.msk.bf16.mxu1 %vm5654_vm0, %v5652_v3 }
 0x449   : > { %v1502_v16 = vpop.f32.mrb[4].mxu1 }
 0x44a   : > { %v1503_v17 = vadd.f32 %v4627_v15, %v1502_v16  ;;  %v4911_v18 = vpop.f32.mrb[5].mxu1 }
 0x44b   : > { %v1505_v19 = vpop.f32.mrb[6].mxu1 }
 0x44c   : > { %v4912_v20 = vpop.f32.mrb[7].mxu1  ;;  %v1647_v21 = vsel %vm1646_vm2, %v1503_v17, -inf }
 0x44d   : > { %1648 = vmax.xlane.f32.xlu1 %v1647_v21 }
 0x451   : > { %v1548_v22 = vpop.f32.mrb[8].mxu1 }
 0x452   : > { %v1549_v23 = vadd.f32 %v4627_v15, %v1548_v22  ;;  %v4917_v24 = vpop.f32.mrb[9].mxu1 }
 0x453   : > { %v1551_v26 = vpop.f32.mrb[10].mxu1 }
 0x454   : > { %v4918_v27 = vpop.f32.mrb[11].mxu1  ;;  %v1650_v28 = vsel %vm1646_vm2, %v1549_v23, -inf }
 0x455   : > { %1651 = vmax.xlane.f32.xlu0 %v1650_v28 }
 0x459   : > { %v1594_v29 = vpop.f32.mrb[12].mxu1 }
 0x45a   : > { %v1595_v30 = vadd.f32 %v4627_v15, %v1594_v29  ;;  %v4923_v31 = vpop.f32.mrb[13].mxu1 }
 0x45b   : > { %v1597_v32 = vpop.f32.mrb[14].mxu1 }
 0x45c   : > { %v4924_v33 = vpop.f32.mrb[15].mxu1  ;;  %v1653_v34 = vsel %vm1646_vm2, %v1595_v30, -inf }
 0x45d   : > { %1654 = vmax.xlane.f32.xlu1 %v1653_v34 }
 0x461   : > { %v1640_v35 = vpop.f32.mrb[16].mxu1 }
 0x462   : > { %v1641_v36 = vadd.f32 %v4627_v15, %v1640_v35  ;;  %v4929_v37 = vpop.f32.mrb[17].mxu1 }
 0x463   : > { %v1643_v38 = vpop.f32.mrb[18].mxu1 }
 0x464   : > { %v4930_v40 = vpop.f32.mrb[19].mxu1  ;;  %v1656_v41 = vsel %vm1646_vm2, %v1641_v36, -inf }
 0x465   : > { %1657 = vmax.xlane.f32.xlu1 %v1656_v41 }
 0x476   : > { %1290 = vrot.lane.b32.xlu1 %v950_v50, %s5657_s26 }
 0x4da   : > { %v1649_v51 = vpop.xlane.xlu1 %1648 }
 0x4db   : > { %v1659_v52 = vsub.f32 %v1503_v17, %v1649_v51 }
 0x4dd   : > { %v1663_v53 = vmul.f32 1.442695, %v1659_v52 }
 0x4df   : > { %5341 = vpow2.f32 %v1663_v53 }
 0x4e2   : > { %v1652_v54 = vpop.xlane.xlu0 %1651 }
 0x4e3   : > { %v1660_v55 = vsub.f32 %v1549_v23, %v1652_v54 }
 0x4e5   : > { %v1665_v56 = vmul.f32 1.442695, %v1660_v55 }
 0x4e7   : > { %5343 = vpow2.f32 %v1665_v56 }
 0x4e9   : > { %v6101_v57 = vpop.eup %5341 }
 0x4ea   : > { %v1671_v58 = vsel %vm1646_vm2, %v6101_v57, 0.0  ;;  %v1655_v59 = vpop.xlane.xlu1 %1654 }
 0x4eb   : > { %1672 = vadd.xlane.f32.xlu0 %v1671_v58  ;;  %v1661_v60 = vsub.f32 %v1595_v30, %v1655_v59 }
 0x4ed   : > { %v1667_v61 = vmul.f32 1.442695, %v1661_v60 }
 0x4ef   : > { %5345 = vpow2.f32 %v1667_v61 }
 0x4f1   : > { %v6105_v44 = vpop.eup %5343 }
 0x4f2   : > { %v1674_v48 = vsel %vm1646_vm2, %v6105_v44, 0.0  ;;  %v1658_v62 = vpop.xlane.xlu1 %1657 }
 0x4f3   : > { %1675 = vadd.xlane.f32.xlu1 %v1674_v48  ;;  %v1662_v63 = vsub.f32 %v1641_v36, %v1658_v62 }
 0x4f5   : > { %v1669_v0 = vmul.f32 1.442695, %v1662_v63 }
 0x4f6   : > { %v1291_v8 = vpop.permute.xlu1 %1290 }
 0x4f7   : > { %5347 = vpow2.f32 %v1669_v0  ;;  %v1308_v9 = vrot.slane %v1291_v8, %v6019_v2 }
 0x4f9   : > { %v6111_v1 = vpop.eup %5345  ;;  %v1309_v12 = vcombine.low %v1300_v10, %v1308_v9  ;;  %v1310_v13 = vcombine.high %v1300_v10, %v1308_v9 }
 0x4fa   : > { %v1677_v4 = vsel %vm1646_vm2, %v6111_v1, 0.0 }
 0x4fb   : > { %v1317_v15 = vrot.slane %v1309_v12, %v6022_v6  ;;  %v1324_v17 = vrot.slane %v1310_v13, %v6022_v6 }
 0x4fd   : > { %v1325_v21 = vcombine.high %v1317_v15, %v5653_v25  ;;  %v1326_v24 = vcombine.high %v1324_v17, %v5653_v25  ;;  %v1365_v28 = vshrl.u32 %v1317_v15, 16  ;;  %v1381_v30 = vshrl.u32 %v1324_v17, 16 }
 0x4ff   : > { %v1373_v29 = vshrl.u32 %v1325_v21, 16  ;;  %v1389_v35 = vshrl.u32 %v1326_v24, 16 }
 0x501   : > { %1288 = vrot.lane.b32.xlu0 %v950_v50, %s5656_s30  ;;  %v6115_v5 = vpop.eup %5347 }
 0x502   : > { %v1680_v7 = vsel %vm1646_vm2, %v6115_v5, 0.0 }
 0x504   : > { %1292 = vrot.lane.b32.xlu1 %v950_v50, %s5655_s27 }
 0x520   : > { %1678 = vadd.xlane.f32.xlu0 %v1677_v4 }
 0x528   : > { %1681 = vadd.xlane.f32.xlu1 %v1680_v7 }
 0x578   : > { %v1673_v11 = vpop.xlane.xlu0 %1672 }
 0x579   : > { %5349 = vrcp.f32 %v1673_v11 }
 0x57c   : > { %v1289_v16 = vpop.permute.xlu0 %1288 }
 0x57d   : > { %v1334_v19 = vrot.slane %v1289_v16, %v6019_v2 }
 0x580   : > { %v1676_v14 = vpop.xlane.xlu1 %1675 }
 0x581   : > { %5351 = vrcp.f32 %v1676_v14 }
 0x583   : > { %v5350_v63 = vpop.eup %5349 }
 0x584   : > { %v1293_v18 = vpop.permute.xlu1 %1292  ;;  %v1687_v9 = vmul.f32 %v5350_v63, %v6101_v57 }
 0x585   : > { %v1342_v20 = vrot.slane %v1293_v18, %v6019_v2 }
 0x587   : > { %v1343_v22 = vcombine.low %v1334_v19, %v1342_v20  ;;  %v1344_v23 = vcombine.high %v1334_v19, %v1342_v20 }
 0x589   : > { %v1351_v26 = vrot.slane %v1343_v22, %v6022_v6  ;;  %v1358_v27 = vrot.slane %v1344_v23, %v6022_v6 }
 0x58b   : > { %v1359_v31 = vcombine.high %v1351_v26, %v5653_v25  ;;  %v1360_v32 = vcombine.high %v1358_v27, %v5653_v25  ;;  %v1363_v33 = vpack.i.b16 %v1351_v26, %v1317_v15  ;;  %v1366_v34 = vshrl.u32 %v1351_v26, 16  ;;  %v5352_v7 = vpop.eup %5351 }
 0x58c   : > { %v1379_v36 = vpack.i.b16 %v1358_v27, %v1324_v17  ;;  %v1382_v37 = vshrl.u32 %v1358_v27, 16  ;;  %v1688_v14 = vmul.f32 %v5352_v7, %v6105_v44 }
 0x58d   : > { %v1367_v38 = vpack.i.b16 %v1366_v34, %v1365_v28  ;;  %v1371_v40 = vpack.i.b16 %v1359_v31, %v1325_v21  ;;  %v1374_v41 = vshrl.u32 %v1359_v31, 16  ;;  %v1387_v47 = vpack.i.b16 %v1360_v32, %v1326_v24  ;;  %v5212_v34 = vld [vmem:[#allocation8 + $0x8] sm:$0xff]  }
 0x58e   : > { %v1383_v49 = vpack.i.b16 %v1382_v37, %v1381_v30  ;;  %v1390_v50 = vshrl.u32 %v1360_v32, 16  ;;  %v1393_v51 = vcombine.low %v1363_v33, %v1379_v36  ;;  %v1691_v21 = vpack.c.bf16 %v1687_v9, %v1687_v9  ;;  %v5211_v33 = vld [vmem:[#allocation8] sm:$0xff]   ;;  %v5216_v36 = vld [vmem:[#allocation8 + $0x28] sm:$0xff]  }
 0x58f   : > { %v1375_v52 = vpack.i.b16 %v1374_v41, %v1373_v29  ;;  %v1401_v53 = vcombine.low %v1371_v40, %v1387_v47  ;;  %v1692_v23 = vpack.c.bf16 %v1688_v14, %v1688_v14 }
 0x590   : > { %v1391_v54 = vpack.i.b16 %v1390_v50, %v1389_v35  ;;  %v1418_v55 = vcombine.low %v1367_v38, %v1383_v49  ;;  %v1400_v56 = vrot.slane %v1393_v51, %v6019_v2  ;;  %v5214_v35 = vld [vmem:[#allocation8 + $0x18] sm:$0xff]  }
 0x591   : > { %v1408_v58 = vrot.slane %v1401_v53, %v6019_v2 }
 0x592   : > { %v1426_v48 = vcombine.low %v1375_v52, %v1391_v54  ;;  %v1425_v60 = vrot.slane %v1418_v55, %v6019_v2 }
 0x593   : > { %v1409_v59 = vcombine.low %v1400_v56, %v1408_v58 }
 0x594   : > { %v1433_v61 = vrot.slane %v1426_v48, %v6019_v2 }
 0x595   : > { %v1416_v62 = vrot.slane %v1409_v59, %v6022_v6 }
 0x596   : > { %v1434_v0 = vcombine.low %v1425_v60, %v1433_v61 }
 0x597   : > { %v1417_v4 = vcombine.high %v1416_v62, %v5653_v25  ;;  %v1446_v11 = vshrl.u32 %v1416_v62, 16 }
 0x598   : > { %v1441_v8 = vrot.slane %v1434_v0, %v6022_v6 }
 0x599   : > { %v1452_v15 = vshrl.u32 %v1417_v4, 16 }
 0x59a   : > { %v1445_v10 = vpack.i.b16 %v1441_v8, %v1416_v62  ;;  %v1447_v12 = vshrl.u32 %v1441_v8, 16  ;;  %v1442_v13 = vcombine.high %v1441_v8, %v5653_v25 }
 0x59c   : > { %v1700_v16 = vsel %vm1698_vm3, %v1445_v10, 0  ;;  %v1448_v17 = vpack.i.b16 %v1447_v12, %v1446_v11  ;;  %v1451_v18 = vpack.i.b16 %v1442_v13, %v1417_v4  ;;  %v1453_v19 = vshrl.u32 %v1442_v13, 16  ;;  %v5217_v13 = vld [vmem:[#allocation8 + $0x30] sm:$0xff]  }
 0x59d   : > { %4932 = vmatpush3.bf16.msra.mxu0 %v1700_v16 }
 0x59e   : > { %v1746_v20 = vsel %vm1698_vm3, %v1448_v17, 0  ;;  %4943 = vmatprep.subr.bf16.mxu0 %v5652_v3  ;;  %v1454_v57 = vpack.i.b16 %v1453_v19, %v1452_v15  ;;  %v1792_v22 = vsel %vm1698_vm3, %v1451_v18, 0 }
 0x59f   : > { %4938 = vmatpush3.bf16.msra.mxu1 %v1746_v20 }
 0x5a0   : > { %4934 = vmatmul.mubr.msk.bf16.vlgmr.msra.gmra.mrb[4].mxu0 %vm1646_vm2, %v1691_v21  ;;  %4949 = vmatprep.subr.bf16.mxu1 %v5652_v3  ;;  %v1838_v44 = vsel %vm1698_vm3, %v1454_v57, 0 }
 0x5a1   : > { %4944 = vmatpush3.bf16.msra.mxu0 %v1792_v22  ;;  %4945 = vmatprep.mubr.msk.bf16.mxu0 %vm5654_vm0, %v5652_v3 }
 0x5a2   : > { %4940 = vmatmul.mubr.msk.bf16.vlgmr.msra.gmra.mrb[20].mxu1 %vm1646_vm2, %v1692_v23  ;;  %4955 = vmatprep.subr.bf16.mxu0 %v5652_v3 }
 0x5a3   : > { %4950 = vmatpush3.bf16.msra.mxu1 %v1838_v44  ;;  %4951 = vmatprep.mubr.msk.bf16.mxu1 %vm5654_vm0, %v5652_v3 }
 0x5ad   : > { %v1679_v24 = vpop.xlane.xlu0 %1678 }
 0x5ae   : > { %5353 = vrcp.f32 %v1679_v24  ;;  %v5218_v24 = vld [vmem:[#allocation8 + $0x38] sm:$0xff]  }
 0x5b5   : > { %v1682_v26 = vpop.xlane.xlu1 %1681 }
 0x5b6   : > { %5355 = vrcp.f32 %v1682_v26 }
 0x5b8   : > { %v5354_v27 = vpop.eup %5353 }
 0x5b9   : > { %v1689_v28 = vmul.f32 %v5354_v27, %v6111_v1  ;;  %v5213_v1 = vld [vmem:[#allocation8 + $0x10] sm:$0xff]  }
 0x5bb   : > { %v1693_v29 = vpack.c.bf16 %v1689_v28, %v1689_v28 }
 0x5bd   : > { %4946 = vmatmul.mubr.msk.bf16.vlgmr.msra.gmra.mrb[8].mxu0 %vm1646_vm2, %v1693_v29 }
 0x5be   : > { %4971 = vmatprep.mubr.msk.bf16.mxu0 %vm5654_vm0, %v5652_v3  ;;  %4956 = vmatpush3.bf16.msra.mxu0 %v5211_v33 }
 0x5bf   : > { %4957 = vmatprep.subr.bf16.mxu0 %v5652_v3 }
 0x5c0   : > { %v5356_v30 = vpop.eup %5355 }
 0x5c1   : > { %v1690_v31 = vmul.f32 %v5356_v30, %v6115_v5  ;;  %v5215_v5 = vld [vmem:[#allocation8 + $0x20] sm:$0xff]  }
 0x5c2   : > { %4958 = vmatpush3.bf16.msra.mxu0 %v5212_v34 }
 0x5c3   : > { %v1694_v32 = vpack.c.bf16 %v1690_v31, %v1690_v31  ;;  %4959 = vmatprep.subr.bf16.mxu0 %v5652_v3 }
 0x5c5   : > { %4952 = vmatmul.mubr.msk.bf16.vlgmr.msra.gmra.mrb[24].mxu1 %vm1646_vm2, %v1694_v32 }
 0x5c6   : > { %2314 = vmatprep.mubr.bf16.mxu1 %v5653_v25  ;;  %4960 = vmatpush3.bf16.msra.mxu0 %v5213_v1 }
 0x5c7   : > { %4961 = vmatprep.subr.bf16.mxu0 %v5652_v3 }
 0x5ca   : > { %4962 = vmatpush3.bf16.msra.mxu0 %v5214_v35 }
 0x5cb   : > { %4963 = vmatprep.subr.bf16.mxu0 %v5652_v3 }
 0x5ce   : > { %4964 = vmatpush3.bf16.msra.mxu0 %v5215_v5 }
 0x5cf   : > { %4965 = vmatprep.subr.bf16.mxu0 %v5652_v3 }
 0x5d2   : > { %4966 = vmatpush3.bf16.msra.mxu0 %v5216_v36 }
 0x5d3   : > { %4967 = vmatprep.subr.bf16.mxu0 %v5652_v3 }
 0x5d6   : > { %4968 = vmatpush3.bf16.msra.mxu0 %v5217_v13  ;;  %v5237_v13 = vld [vmem:[#allocation10 + $0x60] ss:$8 sps:$4 sm:$0xff]  }
 0x5d7   : > { %4969 = vmatprep.subr.bf16.mxu0 %v5652_v3 }
 0x5da   : > { %4970 = vmatpush3.bf16.msra.mxu0 %v5218_v24 }
 0x673   : > { %v1736_v37 = vpop.f32.mrb[4].mxu0 }
 0x674   : > { %v4935_v38 = vpop.f32.mrb[5].mxu0 }
 0x675   : > { %v1739_v40 = vpop.f32.mrb[6].mxu0  ;;  %v1782_v41 = vpop.f32.mrb[20].mxu1 }
 0x676   : > { %v4936_v47 = vpop.f32.mrb[7].mxu0  ;;  %v4941_v49 = vpop.f32.mrb[21].mxu1 }
 0x677   : > { %v1785_v50 = vpop.f32.mrb[22].mxu1 }
 0x678   : > { %v4942_v51 = vpop.f32.mrb[23].mxu1  ;;  %v4638_v50 = vld [vmem:[%s6505_s8] ss:$0 sm:$0xff] }
 0x690   : > { %v1828_v52 = vpop.f32.mrb[8].mxu0 }
 0x691   : > { %v1880_v53 = vcombine.low %v1736_v37, %v1828_v52  ;;  %v1881_v54 = vcombine.high %v1736_v37, %v1828_v52  ;;  %v4947_v55 = vpop.f32.mrb[9].mxu0 }
 0x692   : > { %v1831_v56 = vpop.f32.mrb[10].mxu0 }
 0x693   : > { %v4948_v58 = vpop.f32.mrb[11].mxu0  ;;  %v1888_v63 = vrot.slane %v1880_v53, %v6019_v2  ;;  %v1895_v0 = vrot.slane %v1881_v54, %v6019_v2 }
 0x694   : > { %v5219_v58 = vld [vmem:[#allocation10] ss:$8 sps:$4 sm:$0xff]  }
 0x698   : > { %v1874_v48 = vpop.f32.mrb[24].mxu1 }
 0x699   : > { %v1896_v59 = vcombine.low %v1782_v41, %v1874_v48  ;;  %v1897_v60 = vcombine.high %v1782_v41, %v1874_v48  ;;  %v4953_v61 = vpop.f32.mrb[25].mxu1  ;;  %v5221_v48 = vld [vmem:[#allocation10 + $0x4] ss:$8 sps:$4 sm:$0xff]  }
 0x69a   : > { %v1877_v62 = vpop.f32.mrb[26].mxu1  ;;  %2282 = vmatprep.subr.bf16.mxu1 %v5221_v48  ;;  %v5227_v61 = vld [vmem:[#allocation10 + $0x24] ss:$8 sps:$4 sm:$0xff]  }
 0x69b   : > { %v1904_v4 = vrot.slane %v1896_v59, %v6019_v2  ;;  %v1911_v7 = vrot.slane %v1897_v60, %v6019_v2  ;;  %v4954_v8 = vpop.f32.mrb[27].mxu1  ;;  %v5224_v59 = vld [vmem:[#allocation10 + $0x14] ss:$8 sps:$4 sm:$0xff]   ;;  %2283 = vmatpush1.bf16.msra.mxu1 %v5219_v58  ;;  %v5222_v60 = vld [vmem:[#allocation10 + $0x10] ss:$8 sps:$4 sm:$0xff]  }
 0x69c   : > { %2284 = vmatprep.subr.bf16.mxu1 %v5224_v59  ;;  %v5225_v62 = vld [vmem:[#allocation10 + $0x20] ss:$8 sps:$4 sm:$0xff]   ;;  %v5230_v8 = vld [vmem:[#allocation10 + $0x34] ss:$8 sps:$4 sm:$0xff]  }
 0x69d   : > { %v1912_v9 = vcombine.low %v1888_v63, %v1904_v4  ;;  %v1913_v10 = vcombine.high %v1888_v63, %v1904_v4  ;;  %v1928_v11 = vcombine.low %v1895_v0, %v1911_v7  ;;  %v1929_v12 = vcombine.high %v1895_v0, %v1911_v7 }
 0x69f   : > { %v1920_v14 = vrot.slane %v1912_v9, %v6022_v6  ;;  %v1927_v15 = vrot.slane %v1913_v10, %v6022_v6  ;;  %v1936_v16 = vrot.slane %v1928_v11, %v6022_v6  ;;  %v1943_v17 = vrot.slane %v1929_v12, %v6022_v6  ;;  %2285 = vmatpush1.bf16.msra.mxu1 %v5222_v60  ;;  %v5233_v9 = vld [vmem:[#allocation10 + $0x44] ss:$8 sps:$4 sm:$0xff]   ;;  %v5231_v10 = vld [vmem:[#allocation10 + $0x40] ss:$8 sps:$4 sm:$0xff]   ;;  %v5236_v11 = vld [vmem:[#allocation10 + $0x54] ss:$8 sps:$4 sm:$0xff]  }
 0x6a0   : > { %2286 = vmatprep.subr.bf16.mxu1 %v5227_v61  ;;  %v5234_v12 = vld [vmem:[#allocation10 + $0x50] ss:$8 sps:$4 sm:$0xff]  }
 0x6a1   : > { %v1948_v18 = vcombine.low %v1920_v14, %v1927_v15  ;;  %v4636_v19 = vcombine.high %v1920_v14, %v1927_v15  ;;  %v1964_v20 = vcombine.low %v1936_v16, %v1943_v17  ;;  %v4637_v21 = vcombine.high %v1936_v16, %v1943_v17  ;;  %v5239_v14 = vld [vmem:[#allocation10 + $0x64] ss:$8 sps:$4 sm:$0xff]   ;;  %v5242_v15 = vld [vmem:[#allocation10 + $0x74] ss:$8 sps:$4 sm:$0xff]   ;;  %v5240_v16 = vld [vmem:[#allocation10 + $0x70] ss:$8 sps:$4 sm:$0xff]  }
 0x6a3   : > { %v1955_v57 = vrot.slane %v1948_v18, %v6019_v2  ;;  %v1963_v22 = vrot.slane %v4636_v19, %v6019_v2  ;;  %v1971_v23 = vrot.slane %v1964_v20, %v6019_v2  ;;  %v1979_v44 = vrot.slane %v4637_v21, %v6019_v2  ;;  %2287 = vmatpush1.bf16.msra.mxu1 %v5225_v62  ;;  %v4647_v21 = vld [vmem:[%s6506_s9] ss:$0 sm:$0xff] }
 0x6a4   : > { %2288 = vmatprep.subr.bf16.mxu1 %v5230_v8 }
 0x6a5   : > { %v1981_v26 = vcombine.high %v1955_v57, %v1963_v22  ;;  %v1997_v27 = vcombine.high %v1971_v23, %v1979_v44  ;;  %v1980_v28 = vcombine.low %v1955_v57, %v1963_v22  ;;  %v1996_v29 = vcombine.low %v1971_v23, %v1979_v44  ;;  %v4648_v22 = vld [vmem:[%s6507_s10] ss:$0 sm:$0xff] }
 0x6a7   : > { %v1995_v30 = vrot.slane %v1981_v26, %v6022_v6  ;;  %v2011_v31 = vrot.slane %v1997_v27, %v6022_v6  ;;  %v1988_v32 = vrot.slane %v1980_v28, %v6022_v6  ;;  %v2004_v33 = vrot.slane %v1996_v29, %v6022_v6  ;;  %v5243_v26 = vld [vmem:[#allocation11 + $0x40] sm:$0xff]   ;;  %v5245_v28 = vld [vmem:[#allocation11 + $0x48] sm:$0xff]  }
 0x6a8   : > { %v5244_v27 = vld [vmem:[#allocation11] sm:$0xff]   ;;  %4809 = vmatprep.subr.bf16.mxu0 %v5243_v26  ;;  %v5246_v29 = vld [vmem:[#allocation11 + $0x8] sm:$0xff]  }
 0x6a9   : > { %v2014_v34 = vcombine.low %v1995_v30, %v2011_v31  ;;  %v2013_v1 = vcombine.high %v1988_v32, %v2004_v33  ;;  %v2015_v35 = vcombine.high %v1995_v30, %v2011_v31  ;;  %v2012_v5 = vcombine.low %v1988_v32, %v2004_v33  ;;  %v5247_v30 = vld [vmem:[#allocation11 + $0x50] sm:$0xff]   ;;  %v5249_v32 = vld [vmem:[#allocation11 + $0x58] sm:$0xff]  }
 0x6aa   : > { %v5248_v31 = vld [vmem:[#allocation11 + $0x10] sm:$0xff]   ;;  %v5250_v33 = vld [vmem:[#allocation11 + $0x18] sm:$0xff]  }
 0x6ab   : > { %2021 = vrot.lane.b32.xlu1 %v2014_v34, %s5657_s26  ;;  %2017 = vrot.lane.b32.xlu0 %v2013_v1, %s5655_s27  ;;  %v5251_v34 = vld [vmem:[#allocation11 + $0x60] sm:$0xff]   ;;  %v5262_v26 = vld [vmem:[#allocation7 + $0xc8] ss:$12 sps:$4 sm:$0xff]  }
 0x6ac   : > { %v5252_v1 = vld [vmem:[#allocation11 + $0x20] sm:$0xff]  }
 0x6af   : > { %2025 = vrot.lane.b32.xlu0 %v2015_v35, %s5656_s30  ;;  %v5253_v35 = vld [vmem:[#allocation11 + $0x68] sm:$0xff]  }
 0x71d   : > { %v2018_v36 = vpop.permute.xlu0 %2017  ;;  %v2022_v37 = vpop.permute.xlu1 %2021 }
 0x71e   : > { %v2028_v38 = vsel %vm1461_vm1, %v2012_v5, %v2018_v36  ;;  %v5254_v5 = vld [vmem:[#allocation11 + $0x28] sm:$0xff]   ;;  %v5255_v36 = vld [vmem:[#allocation11 + $0x70] sm:$0xff]  }
 0x71f   : > { %v2030_v41 = vsel %vm2029_vm4, %v2028_v38, %v2022_v37  ;;  %v5256_v37 = vld [vmem:[#allocation11 + $0x30] sm:$0xff]   ;;  %v5257_v38 = vld [vmem:[#allocation11 + $0x78] sm:$0xff]  }
 0x721   : > { %v2026_v40 = vpop.permute.xlu0 %2025 }
 0x722   : > { %v2032_v47 = vsel %vm2031_vm5, %v2030_v41, %v2026_v40  ;;  %v5258_v40 = vld [vmem:[#allocation11 + $0x38] sm:$0xff]  }
 0x723   : > { %v2033_v49 = vpack.c.bf16 %v2032_v47, %v2032_v47  ;;  %v2190_v41 = vld [vmem:[%s6509_s12] sm:$0x3] }
 0x724   : > { %v2195_v47 = vrot.slane %v2190_v41, %v6006_v46 }
 0x725   : > { %4972 = vmatmul.mubr.bf16.vlgmr.msra.gmra.mrb[12].mxu0 %v2033_v49  ;;  %v2199_v49 = vrot.slane %v2190_v41, %v5996_v43  ;;  %v5281_v41 = vld [vmem:[#allocation7 + $0x13c] ss:$12 sps:$4 sm:$0xff]  }
 0x726   : > { %4810 = vmatpush3.bf16.msra.mxu0 %v5244_v27  ;;  %v5265_v27 = vld [vmem:[#allocation7 + $0xdc] ss:$12 sps:$4 sm:$0xff]  }
 0x727   : > { %4811 = vmatprep.subr.bf16.mxu0 %v5245_v28  ;;  %v5266_v28 = vld [vmem:[#allocation7 + $0xe0] ss:$12 sps:$4 sm:$0xff]  }
 0x72a   : > { %4812 = vmatpush3.bf16.msra.mxu0 %v5246_v29  ;;  %v5263_v29 = vld [vmem:[#allocation7 + $0xd8] ss:$12 sps:$4 sm:$0xff]  }
 0x72b   : > { %4813 = vmatprep.subr.bf16.mxu0 %v5247_v30  ;;  %v5269_v30 = vld [vmem:[#allocation7 + $0xf4] ss:$12 sps:$4 sm:$0xff]  }
 0x72e   : > { %4814 = vmatpush3.bf16.msra.mxu0 %v5248_v31  ;;  %v5267_v31 = vld [vmem:[#allocation7 + $0xf0] ss:$12 sps:$4 sm:$0xff]  }
 0x72f   : > { %4815 = vmatprep.subr.bf16.mxu0 %v5249_v32 }
 0x732   : > { %4816 = vmatpush3.bf16.msra.mxu0 %v5250_v33 }
 0x733   : > { %4817 = vmatprep.subr.bf16.mxu0 %v5251_v34 }
 0x736   : > { %4818 = vmatpush3.bf16.msra.mxu0 %v5252_v1  ;;  %v5270_v1 = vld [vmem:[#allocation7 + $0xf8] ss:$12 sps:$4 sm:$0xff]  }
 0x737   : > { %4819 = vmatprep.subr.bf16.mxu0 %v5253_v35  ;;  %v5273_v35 = vld [vmem:[#allocation7 + $0x10c] ss:$12 sps:$4 sm:$0xff]  }
 0x73a   : > { %4820 = vmatpush3.bf16.msra.mxu0 %v5254_v5  ;;  %v5271_v5 = vld [vmem:[#allocation7 + $0x108] ss:$12 sps:$4 sm:$0xff]  }
 0x73b   : > { %4821 = vmatprep.subr.bf16.mxu0 %v5255_v36  ;;  %v5274_v36 = vld [vmem:[#allocation7 + $0x110] ss:$12 sps:$4 sm:$0xff]  }
 0x73e   : > { %4822 = vmatpush3.bf16.msra.mxu0 %v5256_v37  ;;  %v5277_v37 = vld [vmem:[#allocation7 + $0x124] ss:$12 sps:$4 sm:$0xff]  }
 0x73f   : > { %4823 = vmatprep.subr.bf16.mxu0 %v5257_v38  ;;  %v5275_v38 = vld [vmem:[#allocation7 + $0x120] ss:$12 sps:$4 sm:$0xff]  }
 0x742   : > { %4824 = vmatpush3.bf16.msra.mxu0 %v5258_v40  ;;  %v5278_v40 = vld [vmem:[#allocation7 + $0x128] ss:$12 sps:$4 sm:$0xff]  }
 0x743   : > { %4975 = vmatprep.subr.bf16.mxu0 %v5652_v3 }
 0x7f8   : > { %v2139_v51 = vpop.f32.mrb[12].mxu0 }
 0x7f9   : > { %v2140_v52 = vadd.f32 %v4638_v50, %v2139_v51  ;;  %v4973_v53 = vpop.f32.mrb[13].mxu0 }
 0x7fa   : > { %v2142_v54 = vpop.f32.mrb[14].mxu0 }
 0x7fb   : > { %v4974_v55 = vpop.f32.mrb[15].mxu0  ;;  %v2145_v56 = vadd.f32 %v2140_v52, %v5985_v39  ;;  %v5228_v39 = vld [vmem:[#allocation10 + $0x30] ss:$8 sps:$4 sm:$0xff]  }
 0x7fc   : > { %2289 = vmatpush1.bf16.msra.mxu1 %v5228_v39 }
 0x7fd   : > { %2148 = vadd.xlane.f32.xlu1 %v2145_v56  ;;  %2290 = vmatprep.subr.bf16.mxu1 %v5233_v9 }
 0x800   : > { %2291 = vmatpush1.bf16.msra.mxu1 %v5231_v10 }
 0x801   : > { %2292 = vmatprep.subr.bf16.mxu1 %v5236_v11 }
 0x804   : > { %2293 = vmatpush1.bf16.msra.mxu1 %v5234_v12 }
 0x805   : > { %2294 = vmatprep.subr.bf16.mxu1 %v5239_v14 }
 0x808   : > { %2295 = vmatpush1.bf16.msra.mxu1 %v5237_v13 }
 0x809   : > { %2296 = vmatprep.subr.bf16.mxu1 %v5242_v15 }
 0x80c   : > { %2297 = vmatpush1.bf16.msra.mxu1 %v5240_v16 }
 0x88a   : > { %v2149_v63 = vpop.xlane.xlu1 %2148 }
 0x88b   : > { %v2150_v0 = vmul.f32 0.0078125, %v2149_v63 }
 0x88d   : > { %v2151_v4 = vsub.f32 %v2145_v56, %v2150_v0 }
 0x88f   : > { %v2152_v7 = vmul.f32 %v2151_v4, %v2151_v4 }
 0x891   : > { %2153 = vadd.xlane.f32.xlu0 %v2152_v7 }
 0x91e   : > { %v2154_v17 = vpop.xlane.xlu0 %2153 }
 0x91f   : > { %v2155_v18 = vmul.f32 0.0078125, %v2154_v17  ;;  %v4665_v17 = vld [vmem:[%s6511_s14] ss:$0 sm:$0xff] }
 0x921   : > { %v2156_v19 = vadd.f32 1e-12, %v2155_v18 }
 0x923   : > { %5357 = vrsqrt.f32 %v2156_v19 }
 0x92d   : > { %v5358_v20 = vpop.eup %5357 }
 0x92e   : > { %v2158_v57 = vmul.f32 %v5358_v20, %v2151_v4 }
 0x930   : > { %v2165_v23 = vmul.f32 %v4647_v21, %v2158_v57 }
 0x932   : > { %v6200_v44 = vadd.f32 %v4648_v22, %v2165_v23  ;;  %v5259_v23 = vld [vmem:[#allocation7 + $0xc0] ss:$12 sps:$4 sm:$0xff]  }
 0x934   : > { %v2173_v24 = vpack.c.bf16 %v6200_v44, %v6200_v44 }
 0x936   : > { %2315 = vmatmul.mubr.bf16.vlgmr.msra.gmra.mrb[28].mxu1 %v2173_v24  ;;  %v5261_v24 = vld [vmem:[#allocation7 + $0xc4] ss:$12 sps:$4 sm:$0xff]  }
 0x937   : > { %2758 = vmatprep.mubr.bf16.mxu1 %v5653_v25  ;;  %2726 = vmatprep.subr.bf16.mxu1 %v5261_v24 }
 0x938   : > { %2727 = vmatpush1.bf16.msra.mxu1 %v5259_v23 }
 0x939   : > { %2728 = vmatprep.subr.bf16.mxu1 %v5265_v27 }
 0x93c   : > { %2729 = vmatpush1.bf16.msra.mxu1 %v5263_v29 }
 0x93d   : > { %2730 = vmatprep.subr.bf16.mxu1 %v5269_v30 }
 0x940   : > { %2731 = vmatpush1.bf16.msra.mxu1 %v5267_v31 }
 0x941   : > { %2732 = vmatprep.subr.bf16.mxu1 %v5273_v35 }
 0x944   : > { %2733 = vmatpush1.bf16.msra.mxu1 %v5271_v5 }
 0x945   : > { %2734 = vmatprep.subr.bf16.mxu1 %v5277_v37 }
 0x948   : > { %2735 = vmatpush1.bf16.msra.mxu1 %v5275_v38 }
 0x949   : > { %2736 = vmatprep.subr.bf16.mxu1 %v5281_v41 }
 0xa09   : > { %v2316_v50 = vpop.f32.mrb[28].mxu1 }
 0xa0a   : > { %v2317_v51 = vadd.f32 %v2316_v50, %v2195_v47  ;;  %v2318_v52 = vpop.f32.mrb[29].mxu1  ;;  %v5279_v47 = vld [vmem:[#allocation7 + $0x138] ss:$12 sps:$4 sm:$0xff]   ;;  %v5283_v50 = vld [vmem:[#allocation7 + $0x150] ss:$12 sps:$4 sm:$0xff]  }
 0xa0b   : > { %v2319_v53 = vadd.f32 %v2318_v52, %v2199_v49  ;;  %v2320_v54 = vpop.f32.mrb[30].mxu1  ;;  %v5282_v49 = vld [vmem:[#allocation7 + $0x140] ss:$12 sps:$4 sm:$0xff]   ;;  %2737 = vmatpush1.bf16.msra.mxu1 %v5279_v47  ;;  %v5286_v52 = vld [vmem:[#allocation7 + $0x158] ss:$12 sps:$4 sm:$0xff]  }
 0xa0c   : > { %v2323_v55 = vmul.f32 %v2317_v51, %v2317_v51  ;;  %v2321_v56 = vpop.f32.mrb[31].mxu1  ;;  %v5287_v54 = vld [vmem:[#allocation7 + $0x168] ss:$12 sps:$4 sm:$0xff]  }
 0xa0d   : > { %v2324_v58 = vmul.f32 %v2319_v53, %v2319_v53 }
 0xa0e   : > { %v2325_v48 = vmul.f32 %v2323_v55, %v2317_v51  ;;  %v5290_v55 = vld [vmem:[#allocation7 + $0x170] ss:$12 sps:$4 sm:$0xff]  }
 0xa0f   : > { %v2326_v59 = vmul.f32 %v2324_v58, %v2319_v53 }
 0xa10   : > { %v2327_v60 = vmul.f32 0.044715, %v2325_v48 }
 0xa11   : > { %v2328_v61 = vmul.f32 0.044715, %v2326_v59 }
 0xa12   : > { %v2329_v62 = vadd.f32 %v2327_v60, %v2317_v51  ;;  %v4682_v60 = vld [vmem:[%s6512_s15] ss:$0 sm:$0xff] }
 0xa13   : > { %v2330_v63 = vadd.f32 %v2328_v61, %v2319_v53 }
 0xa14   : > { %v2331_v0 = vmul.f32 0.7978846, %v2329_v62  ;;  %v4683_v62 = vld [vmem:[%s6513_s16] ss:$0 sm:$0xff] }
 0xa15   : > { %v2332_v4 = vmul.f32 0.7978846, %v2330_v63 }
 0xa16   : > { %5359 = vtanh.f32 %v2331_v0 }
 0xa17   : > { %5361 = vtanh.f32 %v2332_v4 }
 0xa20   : > { %v5360_v7 = vpop.eup %5359 }
 0xa21   : > { %v5362_v8 = vpop.eup %5361  ;;  %v2335_v39 = vadd.f32 1.0, %v5360_v7  ;;  %v6243_v7 = vld [vmem:[%s6503_s6 + $0x3] sm:$0x7] }
 0xa22   : > { %v2336_v9 = vadd.f32 1.0, %v5362_v8  ;;  %v2590_v8 = vrot.slane %v6243_v7, %v5996_v43 }
 0xa23   : > { %v2337_v10 = vmul.f32 0.5, %v2335_v39  ;;  %v2586_v39 = vrot.slane %v6243_v7, %v6006_v46 }
 0xa24   : > { %v2338_v11 = vmul.f32 0.5, %v2336_v9 }
 0xa25   : > { %v2339_v12 = vmul.f32 %v2337_v10, %v2317_v51  ;;  %v5285_v51 = vld [vmem:[#allocation7 + $0x154] ss:$12 sps:$4 sm:$0xff]  }
 0xa26   : > { %v2340_v13 = vmul.f32 %v2338_v11, %v2319_v53  ;;  %v5289_v53 = vld [vmem:[#allocation7 + $0x16c] ss:$12 sps:$4 sm:$0xff]   ;;  %2738 = vmatprep.subr.bf16.mxu1 %v5285_v51 }
 0xa27   : > { %v2341_v15 = vpack.c.bf16 %v2339_v12, %v2339_v12  ;;  %2739 = vmatpush1.bf16.msra.mxu1 %v5283_v50 }
 0xa28   : > { %v2342_v14 = vpack.c.bf16 %v2340_v13, %v2340_v13  ;;  %2740 = vmatprep.subr.bf16.mxu1 %v5289_v53 }
 0xa2a   : > { %2510 = vmatprep.mubr.bf16.mxu0 %v2342_v14 }
 0xa2b   : > { %2511 = vmatmul.mubr.bf16.vlgmr.msra.gmra.mrb[16].mxu0 %v2341_v15  ;;  %2741 = vmatpush1.bf16.msra.mxu1 %v5287_v54 }
 0xa2c   : > { %4991 = vmatprep.mubr.msk.bf16.mxu0 %vm5654_vm0, %v5652_v3  ;;  %4976 = vmatpush3.bf16.msra.mxu0 %v5262_v26 }
 0xa2d   : > { %4977 = vmatprep.subr.bf16.mxu0 %v5652_v3  ;;  %4995 = vmatprep.subr.bf16.mxu1 %v5652_v3 }
 0xa30   : > { %4978 = vmatpush3.bf16.msra.mxu0 %v5266_v28 }
 0xa31   : > { %4979 = vmatprep.subr.bf16.mxu0 %v5652_v3 }
 0xa34   : > { %4980 = vmatpush3.bf16.msra.mxu0 %v5270_v1 }
 0xa35   : > { %4981 = vmatprep.subr.bf16.mxu0 %v5652_v3 }
 0xa38   : > { %4982 = vmatpush3.bf16.msra.mxu0 %v5274_v36 }
 0xa39   : > { %4983 = vmatprep.subr.bf16.mxu0 %v5652_v3 }
 0xa3c   : > { %4984 = vmatpush3.bf16.msra.mxu0 %v5278_v40 }
 0xa3d   : > { %4985 = vmatprep.subr.bf16.mxu0 %v5652_v3 }
 0xa40   : > { %4986 = vmatpush3.bf16.msra.mxu0 %v5282_v49 }
 0xa41   : > { %4987 = vmatprep.subr.bf16.mxu0 %v5652_v3 }
 0xa44   : > { %4988 = vmatpush3.bf16.msra.mxu0 %v5286_v52 }
 0xa45   : > { %4989 = vmatprep.subr.bf16.mxu0 %v5652_v3 }
 0xa48   : > { %4990 = vmatpush3.bf16.msra.mxu0 %v5290_v55 }
 0xa49   : > { %5019 = vmatprep.subr.bf16.mxu0 %v5652_v3 }
 0xafe   : > { %v4825_v16 = vpop.f32.mrb[16].mxu0 }
 0xaff   : > { %v4826_v18 = vpop.f32.mrb[17].mxu0 }
 0xb00   : > { %v4827_v19 = vadd.f32 %v4826_v18, %v4825_v16  ;;  %v4828_v20 = vpop.f32.mrb[18].mxu0 }
 0xb01   : > { %v4829_v21 = vpop.f32.mrb[19].mxu0 }
 0xb02   : > { %v2513_v57 = vadd.f32 %v4827_v19, %v4665_v17 }
 0xb04   : > { %v2518_v22 = vadd.f32 %v2513_v57, %v6200_v44 }
 0xb06   : > { %2521 = vadd.xlane.f32.xlu0 %v2518_v22 }
 0xb93   : > { %v2522_v44 = vpop.xlane.xlu0 %2521 }
 0xb94   : > { %v2523_v32 = vmul.f32 0.0078125, %v2522_v44 }
 0xb96   : > { %v2524_v33 = vsub.f32 %v2518_v22, %v2523_v32 }
 0xb98   : > { %v2525_v34 = vmul.f32 %v2524_v33, %v2524_v33 }
 0xb9a   : > { %2526 = vadd.xlane.f32.xlu1 %v2525_v34 }
 0xc27   : > { %v2527_v56 = vpop.xlane.xlu1 %2526 }
 0xc28   : > { %v2528_v58 = vmul.f32 0.0078125, %v2527_v56 }
 0xc2a   : > { %v2529_v48 = vadd.f32 1e-12, %v2528_v58 }
 0xc2c   : > { %5363 = vrsqrt.f32 %v2529_v48 }
 0xc36   : > { %v5364_v59 = vpop.eup %5363 }
 0xc37   : > { %v2531_v61 = vmul.f32 %v5364_v59, %v2524_v33 }
 0xc39   : > { %v2538_v63 = vmul.f32 %v4682_v60, %v2531_v61 }
 0xc3b   : > { %v6232_v0 = vadd.f32 %v4683_v62, %v2538_v63 }
 0xc3d   : > { %v2546_v4 = vpack.c.bf16 %v6232_v0, %v6232_v0 }
 0xc3f   : > { %2759 = vmatmul.mubr.bf16.vlgmr.msra.gmra.mrb[32].mxu1 %v2546_v4  ;;  %4992 = vmatmul.mubr.bf16.vlgmr.msra.gmra.mrb[20].mxu0 %v2546_v4 }
 0xc40   : > { %4997 = vmatprep.mubr.msk.bf16.mxu1 %vm5654_vm0, %v5652_v3  ;;  %5021 = vmatprep.mubr.msk.bf16.mxu0 %vm5654_vm0, %v5652_v3 }
 0xd12   : > { %v2760_v9 = vpop.f32.mrb[32].mxu1  ;;  %v6249_v10 = vpop.f32.mrb[20].mxu0 }
 0xd13   : > { %v2762_v11 = vpop.f32.mrb[33].mxu1  ;;  %v4993_v12 = vpop.f32.mrb[21].mxu0  ;;  %v2761_v18 = vadd.f32 %v2760_v9, %v2586_v39 }
 0xd14   : > { %v2763_v13 = vadd.f32 %v2762_v11, %v2590_v8  ;;  %v2764_v14 = vpop.f32.mrb[34].mxu1  ;;  %v2804_v15 = vpop.f32.mrb[22].mxu0 }
 0xd15   : > { %v2765_v16 = vpop.f32.mrb[35].mxu1  ;;  %v4994_v17 = vpop.f32.mrb[23].mxu0  ;;  %v2807_v20 = vpack.c.bf16 %v2761_v18, %v2761_v18 }
 0xd16   : > { %v2808_v19 = vpack.c.bf16 %v2763_v13, %v2763_v13 }
 0xd17   : > { %v2823_v36 = vrot.slane %v2807_v20, %v6019_v2 }
 0xd18   : > { %2981 = vrot.lane.b32.xlu1 %v2808_v19, %s5657_s26  ;;  %2979 = vrot.lane.b32.xlu0 %v2808_v19, %s5656_s30  ;;  %v2991_v22 = vrot.slane %v2808_v19, %v6019_v2 }
 0xd1c   : > { %2983 = vrot.lane.b32.xlu1 %v2808_v19, %s5655_s27  ;;  %2811 = vrot.lane.b32.xlu0 %v2807_v20, %s5656_s30 }
 0xd20   : > { %2813 = vrot.lane.b32.xlu1 %v2807_v20, %s5657_s26  ;;  %2815 = vrot.lane.b32.xlu0 %v2807_v20, %s5655_s27 }
 0xd8a   : > { %v2982_v21 = vpop.permute.xlu1 %2981  ;;  %v2980_v57 = vpop.permute.xlu0 %2979 }
 0xd8b   : > { %v2999_v23 = vrot.slane %v2982_v21, %v6019_v2  ;;  %v3025_v44 = vrot.slane %v2980_v57, %v6019_v2 }
 0xd8d   : > { %v3000_v24 = vcombine.low %v2991_v22, %v2999_v23  ;;  %v3001_v26 = vcombine.high %v2991_v22, %v2999_v23 }
 0xd8e   : > { %v2984_v27 = vpop.permute.xlu1 %2983  ;;  %v2812_v28 = vpop.permute.xlu0 %2811 }
 0xd8f   : > { %v3008_v29 = vrot.slane %v3000_v24, %v6022_v6  ;;  %v3015_v30 = vrot.slane %v3001_v26, %v6022_v6  ;;  %v3033_v31 = vrot.slane %v2984_v27, %v6019_v2  ;;  %v2857_v35 = vrot.slane %v2812_v28, %v6019_v2 }
 0xd91   : > { %v3016_v32 = vcombine.high %v3008_v29, %v5653_v25  ;;  %v3017_v33 = vcombine.high %v3015_v30, %v5653_v25  ;;  %v3034_v34 = vcombine.low %v3025_v44, %v3033_v31  ;;  %v3035_v1 = vcombine.high %v3025_v44, %v3033_v31 }
 0xd92   : > { %v2814_v5 = vpop.permute.xlu1 %2813  ;;  %v2816_v37 = vpop.permute.xlu0 %2815  ;;  %v3056_v38 = vshrl.u32 %v3008_v29, 16  ;;  %v3072_v40 = vshrl.u32 %v3015_v30, 16 }
 0xd93   : > { %v2831_v41 = vrot.slane %v2814_v5, %v6019_v2  ;;  %v2865_v47 = vrot.slane %v2816_v37, %v6019_v2  ;;  %v3064_v49 = vshrl.u32 %v3016_v32, 16  ;;  %v3080_v50 = vshrl.u32 %v3017_v33, 16 }
 0xd94   : > { %v3042_v51 = vrot.slane %v3034_v34, %v6022_v6  ;;  %v3049_v52 = vrot.slane %v3035_v1, %v6022_v6 }
 0xd95   : > { %v2832_v53 = vcombine.low %v2823_v36, %v2831_v41  ;;  %v2833_v54 = vcombine.high %v2823_v36, %v2831_v41  ;;  %v2866_v55 = vcombine.low %v2857_v35, %v2865_v47  ;;  %v2867_v56 = vcombine.high %v2857_v35, %v2865_v47 }
 0xd96   : > { %v3050_v58 = vcombine.high %v3042_v51, %v5653_v25  ;;  %v3051_v48 = vcombine.high %v3049_v52, %v5653_v25  ;;  %v3054_v59 = vpack.i.b16 %v3042_v51, %v3008_v29  ;;  %v3057_v60 = vshrl.u32 %v3042_v51, 16 }
 0xd97   : > { %v3070_v61 = vpack.i.b16 %v3049_v52, %v3015_v30  ;;  %v3073_v62 = vshrl.u32 %v3049_v52, 16  ;;  %v2840_v63 = vrot.slane %v2832_v53, %v6022_v6  ;;  %v2847_v4 = vrot.slane %v2833_v54, %v6022_v6 }
 0xd98   : > { %v3058_v8 = vpack.i.b16 %v3057_v60, %v3056_v38  ;;  %v3062_v39 = vpack.i.b16 %v3050_v58, %v3016_v32  ;;  %v3065_v9 = vshrl.u32 %v3050_v58, 16  ;;  %v3078_v11 = vpack.i.b16 %v3051_v48, %v3017_v33 }
 0xd99   : > { %v3074_v12 = vpack.i.b16 %v3073_v62, %v3072_v40  ;;  %v3081_v13 = vshrl.u32 %v3051_v48, 16  ;;  %v3084_v14 = vcombine.low %v3054_v59, %v3070_v61  ;;  %v2848_v15 = vcombine.high %v2840_v63, %v5653_v25 }
 0xd9a   : > { %v3066_v16 = vpack.i.b16 %v3065_v9, %v3064_v49  ;;  %v3092_v17 = vcombine.low %v3062_v39, %v3078_v11  ;;  %v2849_v18 = vcombine.high %v2847_v4, %v5653_v25  ;;  %v2888_v57 = vshrl.u32 %v2840_v63, 16 }
 0xd9b   : > { %v3082_v19 = vpack.i.b16 %v3081_v13, %v3080_v50  ;;  %v3091_v20 = vrot.slane %v3084_v14, %v6019_v2  ;;  %v3109_v21 = vcombine.low %v3058_v8, %v3074_v12  ;;  %v2896_v22 = vshrl.u32 %v2848_v15, 16 }
 0xd9c   : > { %v2904_v23 = vshrl.u32 %v2847_v4, 16  ;;  %v2874_v24 = vrot.slane %v2866_v55, %v6022_v6  ;;  %v2881_v26 = vrot.slane %v2867_v56, %v6022_v6  ;;  %v2912_v28 = vshrl.u32 %v2849_v18, 16 }
 0xd9d   : > { %v3117_v27 = vcombine.low %v3066_v16, %v3082_v19  ;;  %v3099_v29 = vrot.slane %v3092_v17, %v6019_v2  ;;  %v3116_v30 = vrot.slane %v3109_v21, %v6019_v2 }
 0xd9e   : > { %v2882_v31 = vcombine.high %v2874_v24, %v5653_v25  ;;  %v2883_v44 = vcombine.high %v2881_v26, %v5653_v25  ;;  %v2886_v32 = vpack.i.b16 %v2874_v24, %v2840_v63  ;;  %v2889_v33 = vshrl.u32 %v2874_v24, 16 }
 0xd9f   : > { %v2902_v34 = vpack.i.b16 %v2881_v26, %v2847_v4  ;;  %v2905_v1 = vshrl.u32 %v2881_v26, 16  ;;  %v3100_v35 = vcombine.low %v3091_v20, %v3099_v29  ;;  %v3124_v5 = vrot.slane %v3117_v27, %v6019_v2 }
 0xda0   : > { %v2890_v36 = vpack.i.b16 %v2889_v33, %v2888_v57  ;;  %v2894_v37 = vpack.i.b16 %v2882_v31, %v2848_v15  ;;  %v2897_v38 = vshrl.u32 %v2882_v31, 16  ;;  %v2910_v40 = vpack.i.b16 %v2883_v44, %v2849_v18  ;;  %v5391_v33 = vld [vmem:[%s6088_s20] ss:$0 sm:$0xff] }
 0xda1   : > { %v2906_v41 = vpack.i.b16 %v2905_v1, %v2904_v23  ;;  %v2913_v47 = vshrl.u32 %v2883_v44, 16  ;;  %v2916_v50 = vcombine.low %v2886_v32, %v2902_v34  ;;  %v3125_v52 = vcombine.low %v3116_v30, %v3124_v5 }
 0xda2   : > { %v2898_v49 = vpack.i.b16 %v2897_v38, %v2896_v22  ;;  %v2924_v51 = vcombine.low %v2894_v37, %v2910_v40  ;;  %v3107_v56 = vrot.slane %v3100_v35, %v6022_v6 }
 0xda3   : > { %v2914_v53 = vpack.i.b16 %v2913_v47, %v2912_v28  ;;  %v2941_v54 = vcombine.low %v2890_v36, %v2906_v41  ;;  %v3132_v58 = vrot.slane %v3125_v52, %v6022_v6  ;;  %v2923_v59 = vrot.slane %v2916_v50, %v6019_v2 }
 0xda4   : > { %v2931_v55 = vrot.slane %v2924_v51, %v6019_v2  ;;  %v3137_v9 = vshrl.u32 %v3107_v56, 16  ;;  %v3108_v18 = vcombine.high %v3107_v56, %v5653_v25 }
 0xda5   : > { %v2949_v48 = vcombine.low %v2898_v49, %v2914_v53  ;;  %v3136_v60 = vpack.i.b16 %v3132_v58, %v3107_v56  ;;  %v2948_v61 = vrot.slane %v2941_v54, %v6019_v2  ;;  %v3138_v8 = vshrl.u32 %v3132_v58, 16 }
 0xda6   : > { %v2932_v63 = vcombine.low %v2923_v59, %v2931_v55  ;;  %v3133_v16 = vcombine.high %v3132_v58, %v5653_v25  ;;  %v3143_v24 = vshrl.u32 %v3108_v18, 16 }
 0xda7   : > { %v2956_v62 = vrot.slane %v2949_v48, %v6019_v2  ;;  %v3318_v4 = vsel %vm1461_vm1, %v3136_v60, 0  ;;  %v3139_v13 = vpack.i.b16 %v3138_v8, %v3137_v9 }
 0xda8   : > { %4996 = vmatpush3.bf16.xpose.msra.mxu1 %v3318_v4  ;;  %v2939_v12 = vrot.slane %v2932_v63, %v6022_v6  ;;  %v3142_v20 = vpack.i.b16 %v3133_v16, %v3108_v18  ;;  %v3144_v22 = vshrl.u32 %v3133_v16, 16 }
 0xda9   : > { %v2957_v39 = vcombine.low %v2948_v61, %v2956_v62  ;;  %5001 = vmatprep.subr.bf16.mxu1 %v5652_v3  ;;  %v3364_v15 = vsel %vm1461_vm1, %v3139_v13, 0  ;;  %v2594_v62 = vrot.slane %v6243_v7, %v734_v45 }
 0xdaa   : > { %v2969_v19 = vshrl.u32 %v2939_v12, 16  ;;  %v3410_v57 = vsel %vm1461_vm1, %v3142_v20, 0  ;;  %v2940_v26 = vcombine.high %v2939_v12, %v5653_v25  ;;  %v3145_v27 = vpack.i.b16 %v3144_v22, %v3143_v24 }
 0xdab   : > { %v2964_v11 = vrot.slane %v2957_v39, %v6022_v6  ;;  %v2802_v63 = vadd.f32 %v6249_v10, %v2594_v62 }
 0xdac   : > { %v3456_v29 = vsel %vm1461_vm1, %v3145_v27, 0  ;;  %v2975_v31 = vshrl.u32 %v2940_v26, 16 }
 0xdad   : > { %v2968_v14 = vpack.i.b16 %v2964_v11, %v2939_v12  ;;  %v2970_v17 = vshrl.u32 %v2964_v11, 16  ;;  %v2965_v23 = vcombine.high %v2964_v11, %v5653_v25  ;;  %v2809_v4 = vpack.c.bf16 %v2802_v63, %v2802_v63 }
 0xdaf   : > { %4998 = vmatmul.mubr.msk.bf16.vlgmr.msra.gmra.mrb[36].mxu1 %vm1461_vm1, %v2968_v14  ;;  %v2971_v21 = vpack.i.b16 %v2970_v17, %v2969_v19  ;;  %v2974_v28 = vpack.i.b16 %v2965_v23, %v2940_v26  ;;  %v2976_v30 = vshrl.u32 %v2965_v23, 16  ;;  %v3159_v26 = vrot.slane %v2809_v4, %v6019_v2 }
 0xdb0   : > { %5002 = vmatpush3.bf16.xpose.msra.mxu1 %v3364_v15  ;;  %5003 = vmatprep.mubr.msk.bf16.mxu1 %vm5654_vm0, %v5652_v3 }
 0xdb1   : > { %5007 = vmatprep.subr.bf16.mxu1 %v5652_v3  ;;  %v2977_v44 = vpack.i.b16 %v2976_v30, %v2975_v31 }
 0xdb7   : > { %5004 = vmatmul.mubr.msk.bf16.vlgmr.msra.gmra.mrb[40].mxu1 %vm1461_vm1, %v2971_v21 }
 0xdb8   : > { %5008 = vmatpush3.bf16.xpose.msra.mxu1 %v3410_v57  ;;  %5009 = vmatprep.mubr.msk.bf16.mxu1 %vm5654_vm0, %v5652_v3 }
 0xdb9   : > { %5013 = vmatprep.subr.bf16.mxu1 %v5652_v3 }
 0xdbf   : > { %5010 = vmatmul.mubr.msk.bf16.vlgmr.msra.gmra.mrb[44].mxu1 %vm1461_vm1, %v2974_v28 }
 0xdc0   : > { %5014 = vmatpush3.bf16.xpose.msra.mxu1 %v3456_v29  ;;  %5015 = vmatprep.mubr.msk.bf16.mxu1 %vm5654_vm0, %v5652_v3 }
 0xdc1   : > { %5025 = vmatprep.subr.bf16.mxu1 %v5652_v3 }
 0xdc7   : > { %5016 = vmatmul.mubr.msk.bf16.vlgmr.msra.gmra.mrb[48].mxu1 %vm1461_vm1, %v2977_v44 }
 0xdc8   : > { %5027 = vmatprep.mubr.msk.bf16.mxu1 %vm5654_vm0, %v5652_v3 }
 0xe82   : > { %v3354_v32 = vpop.f32.mrb[36].mxu1 }
 0xe83   : > { %v3355_v34 = vadd.f32 %v5391_v33, %v3354_v32  ;;  %v4999_v1 = vpop.f32.mrb[37].mxu1 }
 0xe84   : > { %v3357_v35 = vpop.f32.mrb[38].mxu1 }
 0xe85   : > { %v5000_v5 = vpop.f32.mrb[39].mxu1  ;;  %v3498_v36 = vsel %vm1646_vm2, %v3355_v34, -inf }
 0xe86   : > { %3499 = vmax.xlane.f32.xlu1 %v3498_v36 }
 0xe8a   : > { %v3400_v37 = vpop.f32.mrb[40].mxu1 }
 0xe8b   : > { %v3401_v38 = vadd.f32 %v5391_v33, %v3400_v37  ;;  %v5005_v40 = vpop.f32.mrb[41].mxu1 }
 0xe8c   : > { %v3403_v41 = vpop.f32.mrb[42].mxu1 }
 0xe8d   : > { %v5006_v47 = vpop.f32.mrb[43].mxu1  ;;  %v3501_v49 = vsel %vm1646_vm2, %v3401_v38, -inf }
 0xe8e   : > { %3502 = vmax.xlane.f32.xlu0 %v3501_v49 }
 0xe92   : > { %v3446_v50 = vpop.f32.mrb[44].mxu1 }
 0xe93   : > { %v3447_v51 = vadd.f32 %v5391_v33, %v3446_v50  ;;  %v5011_v52 = vpop.f32.mrb[45].mxu1 }
 0xe94   : > { %v3449_v53 = vpop.f32.mrb[46].mxu1 }
 0xe95   : > { %v5012_v54 = vpop.f32.mrb[47].mxu1  ;;  %v3504_v55 = vsel %vm1646_vm2, %v3447_v51, -inf }
 0xe96   : > { %3505 = vmax.xlane.f32.xlu0 %v3504_v55 }
 0xe9a   : > { %v3492_v56 = vpop.f32.mrb[48].mxu1 }
 0xe9b   : > { %v3493_v58 = vadd.f32 %v5391_v33, %v3492_v56  ;;  %v5017_v48 = vpop.f32.mrb[49].mxu1 }
 0xe9c   : > { %v3495_v59 = vpop.f32.mrb[50].mxu1 }
 0xe9d   : > { %v5018_v60 = vpop.f32.mrb[51].mxu1  ;;  %v3507_v61 = vsel %vm1646_vm2, %v3493_v58, -inf }
 0xe9e   : > { %3508 = vmax.xlane.f32.xlu1 %v3507_v61 }
 0xeaf   : > { %3149 = vrot.lane.b32.xlu1 %v2809_v4, %s5657_s26 }
 0xf13   : > { %v3500_v8 = vpop.xlane.xlu1 %3499 }
 0xf14   : > { %v3510_v39 = vsub.f32 %v3355_v34, %v3500_v8 }
 0xf16   : > { %v3514_v9 = vmul.f32 1.442695, %v3510_v39 }
 0xf18   : > { %5365 = vpow2.f32 %v3514_v9 }
 0xf1b   : > { %v3503_v11 = vpop.xlane.xlu0 %3502 }
 0xf1c   : > { %v3511_v12 = vsub.f32 %v3401_v38, %v3503_v11 }
 0xf1e   : > { %v3516_v13 = vmul.f32 1.442695, %v3511_v12 }
 0xf20   : > { %5367 = vpow2.f32 %v3516_v13 }
 0xf22   : > { %v6327_v14 = vpop.eup %5365 }
 0xf23   : > { %v3522_v42 = vsel %vm1646_vm2, %v6327_v14, 0.0  ;;  %v3506_v10 = vpop.xlane.xlu0 %3505 }
 0xf24   : > { %3523 = vadd.xlane.f32.xlu0 %v3522_v42  ;;  %v3512_v15 = vsub.f32 %v3447_v51, %v3506_v10 }
 0xf26   : > { %v3518_v16 = vmul.f32 1.442695, %v3512_v15 }
 0xf28   : > { %5369 = vpow2.f32 %v3518_v16 }
 0xf2a   : > { %v6331_v45 = vpop.eup %5367 }
 0xf2b   : > { %v3525_v7 = vsel %vm1646_vm2, %v6331_v45, 0.0  ;;  %v3509_v17 = vpop.xlane.xlu1 %3508 }
 0xf2c   : > { %3526 = vadd.xlane.f32.xlu1 %v3525_v7  ;;  %v3513_v18 = vsub.f32 %v3493_v58, %v3509_v17 }
 0xf2e   : > { %v3520_v19 = vmul.f32 1.442695, %v3513_v18 }
 0xf2f   : > { %v3150_v23 = vpop.permute.xlu1 %3149 }
 0xf30   : > { %5371 = vpow2.f32 %v3520_v19  ;;  %v3167_v24 = vrot.slane %v3150_v23, %v6019_v2 }
 0xf32   : > { %v6337_v20 = vpop.eup %5369  ;;  %v3168_v28 = vcombine.low %v3159_v26, %v3167_v24  ;;  %v3169_v29 = vcombine.high %v3159_v26, %v3167_v24 }
 0xf33   : > { %v3528_v21 = vsel %vm1646_vm2, %v6337_v20, 0.0 }
 0xf34   : > { %v3176_v31 = vrot.slane %v3168_v28, %v6022_v6  ;;  %v3183_v32 = vrot.slane %v3169_v29, %v6022_v6 }
 0xf36   : > { %v3184_v35 = vcombine.high %v3176_v31, %v5653_v25  ;;  %v3185_v37 = vcombine.high %v3183_v32, %v5653_v25  ;;  %v3224_v41 = vshrl.u32 %v3176_v31, 16  ;;  %v3240_v49 = vshrl.u32 %v3183_v32, 16 }
 0xf38   : > { %v3232_v47 = vshrl.u32 %v3184_v35, 16  ;;  %v3248_v54 = vshrl.u32 %v3185_v37, 16 }
 0xf3a   : > { %3147 = vrot.lane.b32.xlu0 %v2809_v4, %s5656_s30  ;;  %v6341_v57 = vpop.eup %5371 }
 0xf3b   : > { %v3531_v22 = vsel %vm1646_vm2, %v6341_v57, 0.0 }
 0xf3d   : > { %3151 = vrot.lane.b32.xlu1 %v2809_v4, %s5655_s27 }
 0xf59   : > { %3529 = vadd.xlane.f32.xlu0 %v3528_v21 }
 0xf61   : > { %3532 = vadd.xlane.f32.xlu1 %v3531_v22 }
 0xfb1   : > { %v3524_v27 = vpop.xlane.xlu0 %3523 }
 0xfb2   : > { %5373 = vrcp.f32 %v3524_v27 }
 0xfb5   : > { %v3148_v44 = vpop.permute.xlu0 %3147 }
 0xfb6   : > { %v3193_v34 = vrot.slane %v3148_v44, %v6019_v2 }
 0xfb9   : > { %v3527_v30 = vpop.xlane.xlu1 %3526 }
 0xfba   : > { %5375 = vrcp.f32 %v3527_v30 }
 0xfbc   : > { %v5374_v16 = vpop.eup %5373 }
 0xfbd   : > { %v3152_v33 = vpop.permute.xlu1 %3151  ;;  %v3538_v22 = vmul.f32 %v5374_v16, %v6327_v14 }
 0xfbe   : > { %v3201_v1 = vrot.slane %v3152_v33, %v6019_v2 }
 0xfc0   : > { %v3202_v5 = vcombine.low %v3193_v34, %v3201_v1  ;;  %v3203_v36 = vcombine.high %v3193_v34, %v3201_v1  ;;  %v3542_v34 = vpack.c.bf16 %v3538_v22, %v3538_v22 }
 0xfc2   : > { %v3210_v38 = vrot.slane %v3202_v5, %v6022_v6  ;;  %v3217_v40 = vrot.slane %v3203_v36, %v6022_v6 }
 0xfc4   : > { %v3218_v50 = vcombine.high %v3210_v38, %v5653_v25  ;;  %v3219_v51 = vcombine.high %v3217_v40, %v5653_v25  ;;  %v3222_v52 = vpack.i.b16 %v3210_v38, %v3176_v31  ;;  %v3225_v53 = vshrl.u32 %v3210_v38, 16  ;;  %v5376_v19 = vpop.eup %5375 }
 0xfc5   : > { %v3238_v55 = vpack.i.b16 %v3217_v40, %v3183_v32  ;;  %v3241_v56 = vshrl.u32 %v3217_v40, 16  ;;  %v3539_v28 = vmul.f32 %v5376_v19, %v6331_v45 }
 0xfc6   : > { %v3226_v58 = vpack.i.b16 %v3225_v53, %v3224_v41  ;;  %v3230_v48 = vpack.i.b16 %v3218_v50, %v3184_v35  ;;  %v3233_v59 = vshrl.u32 %v3218_v50, 16  ;;  %v3246_v60 = vpack.i.b16 %v3219_v51, %v3185_v37  ;;  %v5291_v50 = vld [vmem:[#allocation8 + $0x40] sm:$0xff]   ;;  %v5296_v53 = vld [vmem:[#allocation8 + $0x68] sm:$0xff]  }
 0xfc7   : > { %v3242_v61 = vpack.i.b16 %v3241_v56, %v3240_v49  ;;  %v3249_v62 = vshrl.u32 %v3219_v51, 16  ;;  %v3252_v63 = vcombine.low %v3222_v52, %v3238_v55  ;;  %v3543_v35 = vpack.c.bf16 %v3539_v28, %v3539_v28  ;;  %v5292_v51 = vld [vmem:[#allocation8 + $0x48] sm:$0xff]   ;;  %v5294_v52 = vld [vmem:[#allocation8 + $0x58] sm:$0xff]  }
 0xfc8   : > { %v3234_v4 = vpack.i.b16 %v3233_v59, %v3232_v47  ;;  %v3260_v8 = vcombine.low %v3230_v48, %v3246_v60 }
 0xfc9   : > { %v3250_v39 = vpack.i.b16 %v3249_v62, %v3248_v54  ;;  %v3277_v9 = vcombine.low %v3226_v58, %v3242_v61  ;;  %v3259_v11 = vrot.slane %v3252_v63, %v6019_v2 }
 0xfca   : > { %v3267_v12 = vrot.slane %v3260_v8, %v6019_v2 }
 0xfcb   : > { %v3285_v13 = vcombine.low %v3234_v4, %v3250_v39  ;;  %v3284_v7 = vrot.slane %v3277_v9, %v6019_v2 }
 0xfcc   : > { %v3268_v42 = vcombine.low %v3259_v11, %v3267_v12 }
 0xfcd   : > { %v3292_v10 = vrot.slane %v3285_v13, %v6019_v2 }
 0xfce   : > { %v3275_v15 = vrot.slane %v3268_v42, %v6022_v6 }
 0xfcf   : > { %v3293_v17 = vcombine.low %v3284_v7, %v3292_v10 }
 0xfd0   : > { %v3276_v18 = vcombine.high %v3275_v15, %v5653_v25  ;;  %v3305_v24 = vshrl.u32 %v3275_v15, 16 }
 0xfd1   : > { %v3300_v21 = vrot.slane %v3293_v17, %v6022_v6 }
 0xfd2   : > { %v3311_v29 = vshrl.u32 %v3276_v18, 16 }
 0xfd3   : > { %v3304_v23 = vpack.i.b16 %v3300_v21, %v3275_v15  ;;  %v3306_v26 = vshrl.u32 %v3300_v21, 16  ;;  %v3301_v27 = vcombine.high %v3300_v21, %v5653_v25 }
 0xfd5   : > { %v3550_v30 = vsel %vm1698_vm3, %v3304_v23, 0  ;;  %v3307_v31 = vpack.i.b16 %v3306_v26, %v3305_v24  ;;  %v3310_v44 = vpack.i.b16 %v3301_v27, %v3276_v18  ;;  %v3312_v32 = vshrl.u32 %v3301_v27, 16  ;;  %v5297_v23 = vld [vmem:[#allocation8 + $0x70] sm:$0xff]  }
 0xfd6   : > { %5020 = vmatpush3.bf16.msra.mxu0 %v3550_v30 }
 0xfd7   : > { %v3596_v33 = vsel %vm1698_vm3, %v3307_v31, 0  ;;  %5031 = vmatprep.subr.bf16.mxu0 %v5652_v3  ;;  %v3313_v14 = vpack.i.b16 %v3312_v32, %v3311_v29  ;;  %v3642_v1 = vsel %vm1698_vm3, %v3310_v44, 0 }
 0xfd8   : > { %5026 = vmatpush3.bf16.msra.mxu1 %v3596_v33 }
 0xfd9   : > { %5022 = vmatmul.mubr.msk.bf16.vlgmr.msra.gmra.mrb[24].mxu0 %vm1646_vm2, %v3542_v34  ;;  %5037 = vmatprep.subr.bf16.mxu1 %v5652_v3  ;;  %v3688_v45 = vsel %vm1698_vm3, %v3313_v14, 0 }
 0xfda   : > { %5032 = vmatpush3.bf16.msra.mxu0 %v3642_v1  ;;  %5033 = vmatprep.mubr.msk.bf16.mxu0 %vm5654_vm0, %v5652_v3  ;;  %v5298_v1 = vld [vmem:[#allocation8 + $0x78] sm:$0xff]  }
 0xfdb   : > { %5028 = vmatmul.mubr.msk.bf16.vlgmr.msra.gmra.mrb[52].mxu1 %vm1646_vm2, %v3543_v35  ;;  %5043 = vmatprep.subr.bf16.mxu0 %v5652_v3 }
 0xfdc   : > { %5038 = vmatpush3.bf16.msra.mxu1 %v3688_v45  ;;  %5039 = vmatprep.mubr.msk.bf16.mxu1 %vm5654_vm0, %v5652_v3 }
 0xfe6   : > { %v3530_v5 = vpop.xlane.xlu0 %3529 }
 0xfe7   : > { %5377 = vrcp.f32 %v3530_v5 }
 0xfee   : > { %v3533_v36 = vpop.xlane.xlu1 %3532 }
 0xfef   : > { %5379 = vrcp.f32 %v3533_v36 }
 0xff1   : > { %v5378_v37 = vpop.eup %5377 }
 0xff2   : > { %v3540_v38 = vmul.f32 %v5378_v37, %v6337_v20  ;;  %v5293_v20 = vld [vmem:[#allocation8 + $0x50] sm:$0xff]  }
 0xff4   : > { %v3544_v40 = vpack.c.bf16 %v3540_v38, %v3540_v38 }
 0xff6   : > { %5034 = vmatmul.mubr.msk.bf16.vlgmr.msra.gmra.mrb[28].mxu0 %vm1646_vm2, %v3544_v40 }
 0xff7   : > { %5059 = vmatprep.mubr.msk.bf16.mxu0 %vm5654_vm0, %v5652_v3  ;;  %5044 = vmatpush3.bf16.msra.mxu0 %v5291_v50 }
 0xff8   : > { %5045 = vmatprep.subr.bf16.mxu0 %v5652_v3 }
 0xff9   : > { %v5380_v41 = vpop.eup %5379 }
 0xffa   : > { %v3541_v47 = vmul.f32 %v5380_v41, %v6341_v57  ;;  %v5295_v57 = vld [vmem:[#allocation8 + $0x60] sm:$0xff]  }
 0xffb   : > { %5046 = vmatpush3.bf16.msra.mxu0 %v5292_v51 }
 0xffc   : > { %v3545_v49 = vpack.c.bf16 %v3541_v47, %v3541_v47  ;;  %5047 = vmatprep.subr.bf16.mxu0 %v5652_v3 }
 0xffe   : > { %5040 = vmatmul.mubr.msk.bf16.vlgmr.msra.gmra.mrb[56].mxu1 %vm1646_vm2, %v3545_v49 }
 0xfff   : > { %4168 = vmatprep.mubr.bf16.mxu1 %v5653_v25  ;;  %5048 = vmatpush3.bf16.msra.mxu0 %v5293_v20 }
0x1000   : > { %5049 = vmatprep.subr.bf16.mxu0 %v5652_v3 }
0x1003   : > { %5050 = vmatpush3.bf16.msra.mxu0 %v5294_v52 }
0x1004   : > { %5051 = vmatprep.subr.bf16.mxu0 %v5652_v3 }
0x1007   : > { %5052 = vmatpush3.bf16.msra.mxu0 %v5295_v57 }
0x1008   : > { %5053 = vmatprep.subr.bf16.mxu0 %v5652_v3 }
0x100b   : > { %5054 = vmatpush3.bf16.msra.mxu0 %v5296_v53 }
0x100c   : > { %5055 = vmatprep.subr.bf16.mxu0 %v5652_v3 }
0x100f   : > { %5056 = vmatpush3.bf16.msra.mxu0 %v5297_v23 }
0x1010   : > { %5057 = vmatprep.subr.bf16.mxu0 %v5652_v3 }
0x1013   : > { %5058 = vmatpush3.bf16.msra.mxu0 %v5298_v1  ;;  %v5328_v1 = vld [vmem:[#allocation11 + $0x90] sm:$0xff]  }
0x10ac   : > { %v3586_v25 = vpop.f32.mrb[24].mxu0 }
0x10ad   : > { %v5023_v54 = vpop.f32.mrb[25].mxu0 }
0x10ae   : > { %v3589_v55 = vpop.f32.mrb[26].mxu0  ;;  %v3632_v56 = vpop.f32.mrb[52].mxu1 }
0x10af   : > { %v5024_v58 = vpop.f32.mrb[27].mxu0  ;;  %v5029_v48 = vpop.f32.mrb[53].mxu1 }
0x10b0   : > { %v3635_v59 = vpop.f32.mrb[54].mxu1 }
0x10b1   : > { %v5030_v60 = vpop.f32.mrb[55].mxu1 }
0x10b2   : > { %v5299_v60 = vld [vmem:[#allocation10 + $0x80] ss:$8 sps:$4 sm:$0xff]  }
0x10c9   : > { %v3678_v61 = vpop.f32.mrb[28].mxu0 }
0x10ca   : > { %v3730_v62 = vcombine.low %v3586_v25, %v3678_v61  ;;  %v3731_v63 = vcombine.high %v3586_v25, %v3678_v61  ;;  %v5035_v4 = vpop.f32.mrb[29].mxu0  ;;  %v4720_v25 = vld [vmem:[%s6505_s8 + $0x1] ss:$0 sm:$0xff]  ;;  %v5301_v61 = vld [vmem:[#allocation10 + $0x84] ss:$8 sps:$4 sm:$0xff]  }
0x10cb   : > { %v3681_v8 = vpop.f32.mrb[30].mxu0  ;;  %4136 = vmatprep.subr.bf16.mxu1 %v5301_v61  ;;  %v5307_v4 = vld [vmem:[#allocation10 + $0xa4] ss:$8 sps:$4 sm:$0xff]  }
0x10cc   : > { %v5036_v39 = vpop.f32.mrb[31].mxu0  ;;  %v3738_v7 = vrot.slane %v3730_v62, %v6019_v2  ;;  %v3745_v10 = vrot.slane %v3731_v63, %v6019_v2  ;;  %v5304_v62 = vld [vmem:[#allocation10 + $0x94] ss:$8 sps:$4 sm:$0xff]   ;;  %4137 = vmatpush1.bf16.msra.mxu1 %v5299_v60  ;;  %v5302_v63 = vld [vmem:[#allocation10 + $0x90] ss:$8 sps:$4 sm:$0xff]  }
0x10cd   : > { %4138 = vmatprep.subr.bf16.mxu1 %v5304_v62  ;;  %v5305_v8 = vld [vmem:[#allocation10 + $0xa0] ss:$8 sps:$4 sm:$0xff]  }
0x10d0   : > { %4139 = vmatpush1.bf16.msra.mxu1 %v5302_v63 }
0x10d1   : > { %v3724_v9 = vpop.f32.mrb[56].mxu1  ;;  %4140 = vmatprep.subr.bf16.mxu1 %v5307_v4 }
0x10d2   : > { %v3746_v11 = vcombine.low %v3632_v56, %v3724_v9  ;;  %v3747_v12 = vcombine.high %v3632_v56, %v3724_v9  ;;  %v5041_v13 = vpop.f32.mrb[57].mxu1 }
0x10d3   : > { %v3727_v42 = vpop.f32.mrb[58].mxu1  ;;  %v5310_v13 = vld [vmem:[#allocation10 + $0xb4] ss:$8 sps:$4 sm:$0xff]  }
0x10d4   : > { %v3754_v15 = vrot.slane %v3746_v11, %v6019_v2  ;;  %v3761_v16 = vrot.slane %v3747_v12, %v6019_v2  ;;  %v5042_v17 = vpop.f32.mrb[59].mxu1  ;;  %4141 = vmatpush1.bf16.msra.mxu1 %v5305_v8  ;;  %v5313_v42 = vld [vmem:[#allocation10 + $0xc4] ss:$8 sps:$4 sm:$0xff]  }
0x10d5   : > { %4142 = vmatprep.subr.bf16.mxu1 %v5310_v13  ;;  %v5319_v17 = vld [vmem:[#allocation10 + $0xe4] ss:$8 sps:$4 sm:$0xff]  }
0x10d6   : > { %v3762_v18 = vcombine.low %v3738_v7, %v3754_v15  ;;  %v3763_v19 = vcombine.high %v3738_v7, %v3754_v15  ;;  %v3778_v21 = vcombine.low %v3745_v10, %v3761_v16  ;;  %v3779_v22 = vcombine.high %v3745_v10, %v3761_v16  ;;  %v5311_v7 = vld [vmem:[#allocation10 + $0xc0] ss:$8 sps:$4 sm:$0xff]   ;;  %v5316_v10 = vld [vmem:[#allocation10 + $0xd4] ss:$8 sps:$4 sm:$0xff]   ;;  %v5314_v15 = vld [vmem:[#allocation10 + $0xd0] ss:$8 sps:$4 sm:$0xff]  }
0x10d7   : > { %v5317_v16 = vld [vmem:[#allocation10 + $0xe0] ss:$8 sps:$4 sm:$0xff]  }
0x10d8   : > { %v3770_v24 = vrot.slane %v3762_v18, %v6022_v6  ;;  %v3777_v26 = vrot.slane %v3763_v19, %v6022_v6  ;;  %v3786_v27 = vrot.slane %v3778_v21, %v6022_v6  ;;  %v3793_v28 = vrot.slane %v3779_v22, %v6022_v6  ;;  %v5322_v18 = vld [vmem:[#allocation10 + $0xf4] ss:$8 sps:$4 sm:$0xff]   ;;  %v5320_v19 = vld [vmem:[#allocation10 + $0xf0] ss:$8 sps:$4 sm:$0xff]  }
0x10da   : > { %v3798_v29 = vcombine.low %v3770_v24, %v3777_v26  ;;  %v4717_v30 = vcombine.high %v3770_v24, %v3777_v26  ;;  %v3814_v31 = vcombine.low %v3786_v27, %v3793_v28  ;;  %v4718_v44 = vcombine.high %v3786_v27, %v3793_v28  ;;  %v4731_v26 = vld [vmem:[%s6506_s9 + $0x1] ss:$0 sm:$0xff] }
0x10db   : > { %v4732_v28 = vld [vmem:[%s6507_s10 + $0x1] ss:$0 sm:$0xff] }
0x10dc   : > { %v3805_v32 = vrot.slane %v3798_v29, %v6019_v2  ;;  %v3813_v33 = vrot.slane %v4717_v30, %v6019_v2  ;;  %v3821_v34 = vrot.slane %v3814_v31, %v6019_v2  ;;  %v3829_v14 = vrot.slane %v4718_v44, %v6019_v2  ;;  %v5323_v44 = vld [vmem:[#allocation11 + $0xc0] sm:$0xff]  }
0x10dd   : > { %4865 = vmatprep.subr.bf16.mxu0 %v5323_v44 }
0x10de   : > { %v3831_v35 = vcombine.high %v3805_v32, %v3813_v33  ;;  %v3847_v45 = vcombine.high %v3821_v34, %v3829_v14  ;;  %v3830_v5 = vcombine.low %v3805_v32, %v3813_v33  ;;  %v3846_v36 = vcombine.low %v3821_v34, %v3829_v14  ;;  %v5324_v32 = vld [vmem:[#allocation11 + $0x80] sm:$0xff]   ;;  %v5325_v33 = vld [vmem:[#allocation11 + $0xc8] sm:$0xff]   ;;  %v5327_v14 = vld [vmem:[#allocation11 + $0xd0] sm:$0xff]  }
0x10df   : > { %v5326_v34 = vld [vmem:[#allocation11 + $0x88] sm:$0xff]  }
0x10e0   : > { %v3845_v37 = vrot.slane %v3831_v35, %v6022_v6  ;;  %v3861_v38 = vrot.slane %v3847_v45, %v6022_v6  ;;  %v3838_v3 = vrot.slane %v3830_v5, %v6022_v6  ;;  %v3854_v40 = vrot.slane %v3846_v36, %v6022_v6  ;;  %v5329_v35 = vld [vmem:[#allocation11 + $0xd8] sm:$0xff]   ;;  %v5331_v5 = vld [vmem:[#allocation11 + $0xe0] sm:$0xff]  }
0x10e1   : > { %v5330_v45 = vld [vmem:[#allocation11 + $0x98] sm:$0xff]   ;;  %v5332_v36 = vld [vmem:[#allocation11 + $0xa0] sm:$0xff]  }
0x10e2   : > { %v3864_v41 = vcombine.low %v3845_v37, %v3861_v38  ;;  %v3863_v47 = vcombine.high %v3838_v3, %v3854_v40  ;;  %v3865_v49 = vcombine.high %v3845_v37, %v3861_v38  ;;  %v3862_v50 = vcombine.low %v3838_v3, %v3854_v40  ;;  %v5333_v37 = vld [vmem:[#allocation11 + $0xe8] sm:$0xff]   ;;  %v5335_v3 = vld [vmem:[#allocation11 + $0xf0] sm:$0xff]  }
0x10e3   : > { %v5334_v38 = vld [vmem:[#allocation11 + $0xa8] sm:$0xff]   ;;  %v5336_v40 = vld [vmem:[#allocation11 + $0xb0] sm:$0xff]  }
0x10e4   : > { %3871 = vrot.lane.b32.xlu1 %v3864_v41, %s5657_s26  ;;  %3867 = vrot.lane.b32.xlu0 %v3863_v47, %s5655_s27  ;;  %v5337_v41 = vld [vmem:[#allocation11 + $0xf8] sm:$0xff]   ;;  %s6564_s27 = sld [smem:[#allocation25_spill]]  ;;  %s646_s26 = scalar_lea.vmem [#allocation13], %s645_s19 }
0x10e5   : > { %v5338_v47 = vld [vmem:[#allocation11 + $0xb8] sm:$0xff]   ;;  %s4447_s24 = sshll.u32 %s646_s26, 4  ;;  %s6457_s24 = int_to_ptr.vmem [resolvable:$true] %s4447_s24 }
0x10e6   : > { %s5560_s1 = scalar_lea.vmem %s6457_s24, 16 }
0x10e7   : > { %p5561_p4 = scmp.ne.s32.totalorder %s6457_s24, %s5560_s1 }
0x10e8   : > { %3875 = vrot.lane.b32.xlu0 %v3865_v49, %s5656_s30  ;;  %v4733_v49 = vld [vmem:[%s6509_s12 + $0x2] sm:$0x3]  ;;  %s4772_s30 = sshll.u32 %s5772_s28, 4  ;;  %s5660_s28 = smov [#allocation13]  }
0x10e9   : > { %s6455_s25 = scalar_lea.hbm %s6565_s0, %s4772_s30 }
0x10ea   : > { %p6566_p7 = scmp.ne.s32.totalorder %s6564_s27, 0 }
0x10ec   : > { %p5562_p8 = pnand %p5561_p4, %p6566_p7 }
0x10ee   : > { %p5563_p11 = pneg %p5562_p8 }
0x1156   : > { %v3868_v2 = vpop.permute.xlu0 %3867  ;;  %v3872_v51 = vpop.permute.xlu1 %3871 }
0x1157   : > { %v3878_v20 = vsel %vm1461_vm1, %v3862_v50, %v3868_v2  ;;  %v4049_v50 = vrot.slane %v4733_v49, %v6006_v46  ;;  %v4053_v2 = vrot.slane %v4733_v49, %v5996_v43 }
0x1158   : > { %v3879_v57 = vsel %vm2029_vm4, %v3878_v20, %v3872_v51 }
0x115a   : > { %v3876_v52 = vpop.permute.xlu0 %3875 }
0x115b   : > { %v3880_v53 = vsel %vm2031_vm5, %v3879_v57, %v3876_v52 }
0x115c   : > { %v3881_v6 = vpack.c.bf16 %v3880_v53, %v3880_v53 }
0x115e   : > { %5060 = vmatmul.mubr.bf16.vlgmr.msra.gmra.mrb[32].mxu0 %v3881_v6 }
0x115f   : > { %4866 = vmatpush3.bf16.msra.mxu0 %v5324_v32 }
0x1160   : > { %4867 = vmatprep.subr.bf16.mxu0 %v5325_v33 }
0x1163   : > { %4868 = vmatpush3.bf16.msra.mxu0 %v5326_v34 }
0x1164   : > { %4869 = vmatprep.subr.bf16.mxu0 %v5327_v14 }
0x1167   : > { %4870 = vmatpush3.bf16.msra.mxu0 %v5328_v1 }
0x1168   : > { %4871 = vmatprep.subr.bf16.mxu0 %v5329_v35  ;;  %v4770_v35 = vld [vmem:[%s6512_s15 + $0x1] ss:$0 sm:$0xff] }
0x116b   : > { %4872 = vmatpush3.bf16.msra.mxu0 %v5330_v45 }
0x116c   : > { %4873 = vmatprep.subr.bf16.mxu0 %v5331_v5  ;;  %v4771_v5 = vld [vmem:[%s6513_s16 + $0x1] ss:$0 sm:$0xff] }
0x116f   : > { %4874 = vmatpush3.bf16.msra.mxu0 %v5332_v36 }
0x1170   : > { %4875 = vmatprep.subr.bf16.mxu0 %v5333_v37 }
0x1173   : > { %4876 = vmatpush3.bf16.msra.mxu0 %v5334_v38 }
0x1174   : > { %4877 = vmatprep.subr.bf16.mxu0 %v5335_v3 }
0x1177   : > { %4878 = vmatpush3.bf16.msra.mxu0 %v5336_v40 }
0x1178   : > { %4879 = vmatprep.subr.bf16.mxu0 %v5337_v41 }
0x117b   : > { %4880 = vmatpush3.bf16.msra.mxu0 %v5338_v47 }
0x1231   : > { %v3989_v54 = vpop.f32.mrb[32].mxu0 }
0x1232   : > { %v3990_v55 = vadd.f32 %v4720_v25, %v3989_v54  ;;  %v5061_v56 = vpop.f32.mrb[33].mxu0 }
0x1233   : > { %v3992_v58 = vpop.f32.mrb[34].mxu0 }
0x1234   : > { %v5062_v48 = vpop.f32.mrb[35].mxu0  ;;  %v3995_v59 = vadd.f32 %v3990_v55, %v6232_v0  ;;  %v5308_v0 = vld [vmem:[#allocation10 + $0xb0] ss:$8 sps:$4 sm:$0xff]  }
0x1235   : > { %4143 = vmatpush1.bf16.msra.mxu1 %v5308_v0 }
0x1236   : > { %4000 = vadd.xlane.f32.xlu1 %v3995_v59  ;;  %4144 = vmatprep.subr.bf16.mxu1 %v5313_v42  ;;  %v4751_v42 = vld [vmem:[%s6511_s14 + $0x1] ss:$0 sm:$0xff] }
0x1239   : > { %4145 = vmatpush1.bf16.msra.mxu1 %v5311_v7 }
0x123a   : > { %4146 = vmatprep.subr.bf16.mxu1 %v5316_v10 }
0x123d   : > { %4147 = vmatpush1.bf16.msra.mxu1 %v5314_v15 }
0x123e   : > { %4148 = vmatprep.subr.bf16.mxu1 %v5319_v17 }
0x1241   : > { %4149 = vmatpush1.bf16.msra.mxu1 %v5317_v16 }
0x1242   : > { %4150 = vmatprep.subr.bf16.mxu1 %v5322_v18 }
0x1245   : > { %4151 = vmatpush1.bf16.msra.mxu1 %v5320_v19  ;;  %v4404_v19 = vld [vmem:[%s657_s29] sm:$0xff]  ;;  %s5564_s29 = sshll.u32 %s5660_s28, 4  ;;  %s5565_s29 = int_to_ptr.vmem [resolvable:$false] %s5564_s29 }
0x1246   : > { %s5566_s21 = scalar_lea.vmem %s5565_s29, 32  ;;  %p5567_p13 = scmp.lt.s32.totalorder %s6457_s24, %s5565_s29 }
0x1247   : > { %p5568_p0 = scmp.lt.s32.totalorder %s5566_s21, %s5560_s1 }
0x1249   : > { %p5569_p1 = por %p5568_p0, %p5567_p13 }
0x124b   : > { %p5570_p6 = pnand %p5569_p1, %p5563_p11 }
0x12c3   : > { %v4001_v39 = vpop.xlane.xlu1 %4000 }
0x12c4   : > { %v4002_v9 = vmul.f32 0.0078125, %v4001_v39 }
0x12c6   : > { %v4003_v11 = vsub.f32 %v3995_v59, %v4002_v9 }
0x12c8   : > { %v4004_v12 = vmul.f32 %v4003_v11, %v4003_v11 }
0x12ca   : > { %4005 = vadd.xlane.f32.xlu0 %v4004_v12 }
0x1357   : > { %v4006_v21 = vpop.xlane.xlu0 %4005 }
0x1358   : > { %v4007_v22 = vmul.f32 0.0078125, %v4006_v21  ;;  %v4418_v21 = vsel %vm4417_vm6, %v4404_v19, 0.0 }
0x135a   : > { %v4008_v23 = vadd.f32 1e-12, %v4007_v22  ;;  %v4419_v22 = vrot.slane %v4418_v21, 4 }
0x135c   : > { %5381 = vrsqrt.f32 %v4008_v23 }
0x1366   : > { %v5382_v24 = vpop.eup %5381 }
0x1367   : > { %v4010_v27 = vmul.f32 %v5382_v24, %v4003_v11  ;;  %v4420_v24 = vadd.f32 %v4419_v22, %v4418_v21 }
0x1369   : > { %v4017_v29 = vmul.f32 %v4731_v26, %v4010_v27 }
0x136b   : > { %v6426_v30 = vadd.f32 %v4732_v28, %v4017_v29  ;;  %v4421_v28 = vrot.slane %v4420_v24, 2 }
0x136d   : > { %v4025_v31 = vpack.c.bf16 %v6426_v30, %v6426_v30 }
0x136f   : > { %4169 = vmatmul.mubr.bf16.vlgmr.msra.gmra.mrb[60].mxu1 %v4025_v31  ;;  %v4422_v31 = vadd.f32 %v4421_v28, %v4420_v24 }
0x1442   : > { %v4170_v51 = vpop.f32.mrb[60].mxu1 }
0x1443   : > { %v4171_v20 = vadd.f32 %v4170_v51, %v4049_v50  ;;  %v4172_v52 = vpop.f32.mrb[61].mxu1 }
0x1444   : > { %v4173_v57 = vadd.f32 %v4172_v52, %v4053_v2  ;;  %v4174_v53 = vpop.f32.mrb[62].mxu1 }
0x1445   : > { %v4177_v6 = vmul.f32 %v4171_v20, %v4171_v20  ;;  %v4175_v25 = vpop.f32.mrb[63].mxu1 }
0x1446   : > { %v4178_v54 = vmul.f32 %v4173_v57, %v4173_v57 }
0x1447   : > { %v4179_v55 = vmul.f32 %v4177_v6, %v4171_v20 }
0x1448   : > { %v4180_v56 = vmul.f32 %v4178_v54, %v4173_v57 }
0x1449   : > { %v4181_v58 = vmul.f32 0.044715, %v4179_v55 }
0x144a   : > { %v4182_v48 = vmul.f32 0.044715, %v4180_v56 }
0x144b   : > { %v4183_v59 = vadd.f32 %v4181_v58, %v4171_v20 }
0x144c   : > { %v4184_v60 = vadd.f32 %v4182_v48, %v4173_v57 }
0x144d   : > { %v4185_v61 = vmul.f32 0.7978846, %v4183_v59 }
0x144e   : > { %v4186_v62 = vmul.f32 0.7978846, %v4184_v60 }
0x144f   : > { %5383 = vtanh.f32 %v4185_v61 }
0x1450   : > { %5385 = vtanh.f32 %v4186_v62 }
0x1459   : > { %v5384_v46 = vpop.eup %5383 }
0x145a   : > { %v5386_v43 = vpop.eup %5385  ;;  %v4189_v63 = vadd.f32 1.0, %v5384_v46 }
0x145b   : > { %v4190_v4 = vadd.f32 1.0, %v5386_v43 }
0x145c   : > { %v4191_v8 = vmul.f32 0.5, %v4189_v63 }
0x145d   : > { %v4192_v39 = vmul.f32 0.5, %v4190_v4 }
0x145e   : > { %v4193_v9 = vmul.f32 %v4191_v8, %v4171_v20 }
0x145f   : > { %v4194_v11 = vmul.f32 %v4192_v39, %v4173_v57 }
0x1460   : > { %v4195_v13 = vpack.c.bf16 %v4193_v9, %v4193_v9 }
0x1461   : > { %v4196_v12 = vpack.c.bf16 %v4194_v11, %v4194_v11 }
0x1463   : > { %4366 = vmatprep.mubr.bf16.mxu0 %v4196_v12 }
0x1464   : > { %4367 = vmatmul.mubr.bf16.vlgmr.msra.gmra.mrb[36].mxu0 %v4195_v13 }
0x1537   : > { %v4881_v0 = vpop.f32.mrb[36].mxu0 }
0x1538   : > { %v4882_v7 = vpop.f32.mrb[37].mxu0 }
0x1539   : > { %v4883_v10 = vadd.f32 %v4882_v7, %v4881_v0  ;;  %v4884_v15 = vpop.f32.mrb[38].mxu0 }
0x153a   : > { %v4885_v16 = vpop.f32.mrb[39].mxu0 }
0x153b   : > { %v4369_v17 = vadd.f32 %v4883_v10, %v4751_v42 }
0x153d   : > { %v4374_v18 = vadd.f32 %v4369_v17, %v6426_v30  ;;  %v4423_v30 = vrot.slane %v4422_v31, 1 }
0x153f   : > { %4379 = vadd.xlane.f32.xlu0 %v4374_v18  ;;  %v4424_v44 = vadd.f32 %v4423_v30, %v4422_v31 }
0x1541   : > { %v4425_v32 = vmax.f32 %v4424_v44, 1e-09 }
0x1555   : > { %4407 = vperm.xlu0 %5177, %v4404_v19  }
0x15cc   : > { %v4380_v23 = vpop.xlane.xlu0 %4379 }
0x15cd   : > { %v4381_v26 = vmul.f32 0.0078125, %v4380_v23 }
0x15cf   : > { %v4382_v27 = vsub.f32 %v4374_v18, %v4381_v26 }
0x15d1   : > { %v4383_v29 = vmul.f32 %v4382_v27, %v4382_v27 }
0x15d3   : > { %4384 = vadd.xlane.f32.xlu1 %v4383_v29 }
0x15d4   : > { %v4408_v37 = vpop.permute.xlu0 %4407 }
0x15e4   : > { %4428 = vperm.xlu1 %5178, %v4425_v32  }
0x1660   : > { %v4385_v33 = vpop.xlane.xlu1 %4384 }
0x1661   : > { %v4386_v34 = vmul.f32 0.0078125, %v4385_v33 }
0x1663   : > { %v4387_v14 = vadd.f32 1e-12, %v4386_v34 }
0x1664   : > { %v4429_v3 = vpop.permute.xlu1 %4428 }
0x1665   : > { %5387 = vrsqrt.f32 %v4387_v14 }
0x1666   : > { %5389 = vrcp.f32 %v4429_v3 }
0x166f   : > { %v5388_v1 = vpop.eup %5387 }
0x1670   : > { %v4389_v45 = vmul.f32 %v5388_v1, %v4382_v27  ;;  %v5390_v51 = vpop.eup %5389 }
0x1672   : > { %v4396_v36 = vmul.f32 %v4770_v35, %v4389_v45 }
0x1674   : > { %v4403_v38 = vadd.f32 %v4771_v5, %v4396_v36 }
0x1676   : > { %v4410_v40 = vmul.f32 %v4408_v37, %v4403_v38 }
0x1678   : > { %v4411_v41 = vrot.slane %v4410_v40, 4 }
0x167a   : > { %v4412_v47 = vadd.f32 %v4411_v41, %v4410_v40 }
0x167c   : > { %v4413_v49 = vrot.slane %v4412_v47, 2 }
0x167e   : > { %v4414_v50 = vadd.f32 %v4413_v49, %v4412_v47 }
0x1680   : > { %v4415_v2 = vrot.slane %v4414_v50, 1 }
0x1682   : > { %v4416_v20 = vadd.f32 %v4415_v2, %v4414_v50 }
0x1684   : > { %v4432_v52 = vmul.f32 %v5390_v51, %v4416_v20 }
0x1686   : > { %4433 = vst [vmem:[%s646_s26] sm:$0x1] %v4432_v52 }
0x1687   : > { %5573 = shalt.err (!%p5570_p6)
}
0x1688   : > { %s5574_s18 = scalar_lea.hbm %s6455_s25, 16  ;;  %s5578_s20 = scalar_lea.hbm %s6565_s0, 32 }
0x1689   : > { %p5575_p5 = scmp.ne.s32.totalorder %s6455_s25, %s5574_s18  ;;  %p5579_p10 = scmp.lt.u32.totalorder %s6455_s25, %s6565_s0 }
0x168a   : > { %p5580_p2 = scmp.lt.u32.totalorder %s5578_s20, %s5574_s18  ;;  %p5582_p4 = scmp.lt.u32.totalorder %s5574_s18, %s6455_s25 }
0x168b   : > { %p5576_p9 = pnand %p5575_p5, %p6566_p7 }
0x168c   : > { %p5581_p3 = por %p5580_p2, %p5579_p10 }
0x168d   : > { %p5577_p12 = pneg %p5576_p9 }
0x168e   : > { %p5583_p8 = por %p5582_p4, %p5581_p3 }
0x1690   : > { %p5584_p11 = pnand %p5583_p8, %p5577_p12 }
0x1692   : > { %5587 = shalt.err (!%p5584_p11)
}
0x1693   : > { %5087 = dma.vmem_to_hbm [thread:$0]  (%p6566_p7), %s6457_s24, 16, %s6455_s25, %s4435_s3  }
0x1694 PF: > { %s6567_s26 = sld [smem:[#allocation22_spill]]  ;;  %s6568_s23 = sld [smem:[#allocation19_spill]] }
0x1695   : > { %s6569_s22 = sld [smem:[#allocation26_spill]] }
0x169a   : > { %p5124_p13 = scmp.ge.s32.totalorder %s6567_s26, 2  ;;  %s4459_s1 = sand.u32 1, %s6568_s23  }
0x169b   : > { %p6570_p0 = scmp.ne.s32.totalorder %s6569_s22, 0  ;;  %s4460_s28 = scalar_lea.sflag [#allocation4], %s4459_s1 }
0x169d   : > { %p5109_p1 = pnand %p5124_p13, %p6570_p0 }
0x169f   : > { %5621 = dma.done.wait (!%p5109_p1), %s4460_s28, 16  }
0x16a0   : > { %5623 = vsyncadd (!%p5109_p1), %s4460_s28, 4294967280  ;;  %s6571_s27 = sld [smem:[#allocation23_spill]]  ;;  %s6572_s24 = sld [smem:[#allocation20_spill]] }
0x16a1   : > { %s6573_s25 = sld [smem:[#allocation21_spill]]  ;;  %s6574_s26 = sld [smem:[#allocation24_spill]] }
0x16a6   : > { %p31_p6 = scmp.ge.s32.totalorder %s6571_s27, 4  }
0x16a8   :  { %33 = sbr.rel (!%p31_p6) target bundleno = 13 (0xd), region = 166 }
0x16af   :  { %4464 = vsyncpa [#allocation3], 1 }
0x16b0   :  { %4466 = vsyncpa [#allocation3 + $0x1], 1 }
0x16b1   :  { %4467 = vsyncpa [#allocation6], 1 }
0x16b2   :  { %4468 = vsyncpa [#allocation9], 1 }
0x16b3   :  { %4469 = vsyncpa [#allocation12], 1 }
0x16b4   :  { %4470 = vsyncpa [#allocation4], 1 }
0x16b5   :  { %4472 = vsyncpa [#allocation4 + $0x1], 1 }

</bundles_post_ra>
